<compile_context>
chip_gen: v6e
topology: v6e:2x2x1
jax: 0.10.0
libtpu: 0.0.40
codegen_flags: <defaults>
</compile_context>

<pallas_src>
import functools

import jax
import jax.numpy as jnp
from jax.experimental import pallas as pl
from jax.experimental.pallas import tpu as pltpu

_BN_EPS = 1e-5
_VMEM = pl.BlockSpec(memory_space=pltpu.MemorySpace.VMEM)


def _tpu_vmem_bytes():
    """Physical VMEM per core; conservative (v7x) fallback if the query fails."""
    try:
        return int(pltpu.get_tpu_info().vmem_capacity_bytes)
    except Exception:
        return 64 * 1024 * 1024


_VMEM_PHYS = _tpu_vmem_bytes()
# Per-generation scoped-VMEM limit: ~112 MiB on v5e/v6e (128 MiB physical),
# ~54 MiB on v7x (64 MiB physical).  Always leave DMA/compiler headroom.
_VMEM_LIMIT = max(32 * 1024 * 1024,
                  min(_VMEM_PHYS - 10 * 1024 * 1024, 112 * 1024 * 1024))
# Row-tile cap for the pipelined conv matmuls (larger tiles on 128 MiB parts).
_ROW_CAP = 1024 if _VMEM_PHYS >= 100 * 1024 * 1024 else 512


def _cparams(*sem):
    kw = dict(vmem_limit_bytes=_VMEM_LIMIT)
    if sem:
        kw["dimension_semantics"] = tuple(sem)
    return pltpu.CompilerParams(**kw)


def _bn_scale_shift(stats, gamma, beta, n):
    """Per-channel BN scale/shift from rows 0/1 = (sum, sumsq) over n rows."""
    mean = stats[0:1, :] * (1.0 / n)
    var = jnp.maximum(stats[1:2, :] * (1.0 / n) - mean * mean, 0.0)
    scale = gamma * jax.lax.rsqrt(var + _BN_EPS)
    shift = beta - mean * scale
    return scale, shift


# ---------------------------------------------------------------------------
# Kernel 1: row-tiled matmul (conv via im2col) + bias (+ optional pre-ReLU)
#           emitting per-tile BN partial statistics (megacore-friendly).
# ---------------------------------------------------------------------------

def _matmul_stats_kernel(relu_first, row_tile, n_rows, n_rows_padded):
    mask_rows = n_rows_padded != n_rows

    def kernel(x_ref, w_ref, b_ref, y_ref, st_ref):
        y = jnp.dot(x_ref[...], w_ref[...],
                    preferred_element_type=jnp.float32) + b_ref[...]
        if relu_first:                                 # attention: Conv -> ReLU -> BN
            y = jnp.maximum(y, 0.0)
        y_ref[...] = y.astype(y_ref.dtype)             # bf16 activations out

        ym = y
        if mask_rows:                                  # exclude zero-padded rows
            rows = (pl.program_id(0) * row_tile
                    + jax.lax.broadcasted_iota(jnp.int32, (row_tile, 1), 0))
            ym = jnp.where(rows < n_rows, y, 0.0)
        s1 = jnp.sum(ym, axis=0, keepdims=True)
        s2 = jnp.sum(ym * ym, axis=0, keepdims=True)
        st_ref[0] = jnp.concatenate([s1, s2], axis=0)  # per-tile partial (2, Cout)

    return kernel


def _pick_row_tile(n_rows, cap):
    """Largest multiple-of-16 tile <= cap dividing n_rows (no padded rows and no
    post-call slice copy).  None -> fall back to padding + in-kernel masking."""
    best = None
    for t in range(16, min(n_rows, cap) + 1, 16):
        if n_rows % t == 0:
            best = t
    if best is not None and (best == n_rows or best >= 128):
        return best
    return None


def matmul_stats(x2d, w, b, *, relu_first=False):
    """y = x @ w + b (bf16 out), row-tiled/pipelined, plus per-channel (sum, sumsq).

    Per-tile partial stats + "parallel" grid -> shards across both v7x cores;
    the (n_tiles, 2, Cout) reduction is a tiny JAX-level sum."""
    R, Cin = x2d.shape
    Cout = w.shape[1]
    tr = _pick_row_tile(R, _ROW_CAP)
    if tr is None:
        tr = min(_ROW_CAP, max(16, ((R + 15) // 16) * 16))
        Rp = ((R + tr - 1) // tr) * tr
        x2d = jnp.pad(x2d, ((0, Rp - R), (0, 0)))
    else:
        Rp = R
    nt = Rp // tr
    y, st = pl.pallas_call(
        _matmul_stats_kernel(relu_first, tr, R, Rp),
        out_shape=(jax.ShapeDtypeStruct((Rp, Cout), jnp.bfloat16),
                   jax.ShapeDtypeStruct((nt, 2, Cout), jnp.float32)),
        grid=(nt,),
        in_specs=[pl.BlockSpec((tr, Cin), lambda i: (i, 0)),
                  pl.BlockSpec((Cin, Cout), lambda i: (0, 0)),
                  pl.BlockSpec((1, Cout), lambda i: (0, 0))],
        out_specs=(pl.BlockSpec((tr, Cout), lambda i: (i, 0)),
                   pl.BlockSpec((1, 2, Cout), lambda i: (i, 0, 0))),
        # TODO(synk): on v7x, pin the constant-index weight/bias blocks to
        # single-buffering (pl.Buffered(1)) to free VMEM for larger row tiles.
        compiler_params=_cparams("parallel"),          # megacore over row tiles
    )(x2d, w, b)
    stats = jnp.sum(st, axis=0)                        # (2, Cout), tiny
    if Rp != R:
        y = y[:R]
    return y, stats


# ---------------------------------------------------------------------------
# Kernel 2: fused BN-apply (+optional pre-ReLU) + Squeeze-Excitation
#           (+optional residual add + final ReLU).  Grid over batch.
# ---------------------------------------------------------------------------

def _se_kernel(pre_relu, has_residual, final_relu, n_rows):
    def kernel(*refs):
        if has_residual:
            x_ref, st_ref, g_ref, be_ref, w1_ref, w2_ref, r_ref, o_ref = refs
        else:
            x_ref, st_ref, g_ref, be_ref, w1_ref, w2_ref, o_ref = refs
        scale, shift = _bn_scale_shift(st_ref[...], g_ref[...], be_ref[...],
                                       float(n_rows))
        h = x_ref[0].astype(jnp.float32) * scale + shift   # BN with batch stats
        if pre_relu:
            h = jnp.maximum(h, 0.0)
        z = jnp.mean(h, axis=0, keepdims=True)             # squeeze over time -> (1, C)
        z = jnp.maximum(jnp.dot(z.astype(jnp.bfloat16), w1_ref[...],
                                preferred_element_type=jnp.float32), 0.0)
        z = jnp.dot(z.astype(jnp.bfloat16), w2_ref[...],
                    preferred_element_type=jnp.float32)
        gate = 1.0 / (1.0 + jnp.exp(-z))                   # exact sigmoid on (1, C)
        out = h * gate
        if has_residual:
            out = out + r_ref[0].astype(jnp.float32)
        if final_relu:
            out = jnp.maximum(out, 0.0)
        o_ref[0] = out.astype(o_ref.dtype)

    return kernel


def se_block(y2d, stats, gamma, beta, w1, w2, B, T, *, pre_relu,
             residual=None, final_relu=False):
    C = y2d.shape[1]
    x3 = y2d.reshape(B, T, C)
    args = [x3, stats, gamma, beta, w1, w2]
    in_specs = [pl.BlockSpec((1, T, C), lambda b: (b, 0, 0)),
                pl.BlockSpec((2, C), lambda b: (0, 0)),
                pl.BlockSpec((1, C), lambda b: (0, 0)),
                pl.BlockSpec((1, C), lambda b: (0, 0)),
                pl.BlockSpec(w1.shape, lambda b: (0, 0)),
                pl.BlockSpec(w2.shape, lambda b: (0, 0))]
    if residual is not None:
        args.append(residual)
        in_specs.append(pl.BlockSpec((1, T, C), lambda b: (b, 0, 0)))
    return pl.pallas_call(
        _se_kernel(pre_relu, residual is not None, final_relu, B * T),
        out_shape=jax.ShapeDtypeStruct((B, T, C), jnp.bfloat16),
        grid=(B,),
        in_specs=in_specs,
        out_specs=pl.BlockSpec((1, T, C), lambda b: (b, 0, 0)),
        compiler_params=_cparams("parallel"),              # megacore over batch
    )(*args)


# ---------------------------------------------------------------------------
# Kernel 3: fused Res2Net scale chain (bn1+relu, 7x dilated conv+BN+ReLU chain,
#           channel concat).  K taps fused into one bf16 matmul per branch.
# ---------------------------------------------------------------------------

def _scale_chain_kernel(B, T, C, K, dilation, scale, n_rows):
    width = C // scale
    nums = scale - 1
    pad = dilation * (K - 1) // 2
    BT = B * T

    def kernel(x_ref, st_ref, g_ref, be_ref, w_ref, cb_ref, bg_ref, bb_ref, o_ref):
        s1, sh1 = _bn_scale_shift(st_ref[...], g_ref[...], be_ref[...],
                                  float(n_rows))
        # bn1 + relu; keep the hidden in bf16 (halves residency, helps v7x VMEM).
        h = jnp.maximum(x_ref[...].astype(jnp.float32) * s1 + sh1, 0.0)
        h = h.astype(jnp.bfloat16)                          # (B, T, C)
        pieces = []
        sp = None
        for i in range(nums):
            chunk = h[:, :, i * width:(i + 1) * width].astype(jnp.float32)
            sp = chunk if i == 0 else sp + chunk            # f32 running branch input
            spb = sp.astype(jnp.bfloat16)
            if K == 1:
                cols = spb.reshape(BT, width)
            else:
                # Dilated 'same' conv: K taps fused into ONE matmul -- pad the
                # time axis once, concat the K shifted views on the lane axis.
                z = jnp.zeros((B, pad, width), jnp.bfloat16)
                spp = jnp.concatenate([z, spb, z], axis=1)  # (B, T+2*pad, width)
                cols = jnp.concatenate(
                    [spp[:, k * dilation:k * dilation + T, :] for k in range(K)],
                    axis=2).reshape(BT, K * width)
            acc = jnp.dot(cols, w_ref[i],
                          preferred_element_type=jnp.float32) + cb_ref[i]
            # Branch BN is exact: the whole batch is resident in this kernel.
            m = jnp.mean(acc, axis=0, keepdims=True)
            v = jnp.maximum(jnp.mean(acc * acc, axis=0, keepdims=True) - m * m, 0.0)
            yb = (acc - m) * jax.lax.rsqrt(v + _BN_EPS) * bg_ref[i] + bb_ref[i]
            sp = jnp.maximum(yb, 0.0).reshape(B, T, width)  # f32; feeds next branch
            pieces.append(sp.astype(jnp.bfloat16))
        pieces.append(h[:, :, nums * width:])               # untouched last chunk
        o_ref[...] = jnp.concatenate(pieces, axis=2)        # single lane-dense store

    return kernel


def res2net_scale_chain(y1_3d, stats1, g1, b1, convs_w, convs_b, bns_g, bns_b,
                        K, dilation, scale):
    B, T, C = y1_3d.shape
    # TODO(synk): on v7x at large B*T, grid this over batch with a two-pass
    # branch BN (stats-accumulate / apply) and write each branch directly into
    # its channel slice of o_ref instead of pieces+concat, to cut peak VMEM.
    return pl.pallas_call(
        _scale_chain_kernel(B, T, C, K, dilation, scale, B * T),
        out_shape=jax.ShapeDtypeStruct((B, T, C), jnp.bfloat16),
        in_specs=[_VMEM] * 8,
        out_specs=_VMEM,
        compiler_params=_cparams(),
    )(y1_3d, stats1, g1, b1, convs_w, convs_b, bns_g, bns_b)


# ---------------------------------------------------------------------------
# Kernel 4: fused attention tail + attentive statistical pooling.
#           (BN of hidden, 1x1 conv, softmax over time, weighted mean/std.)
# ---------------------------------------------------------------------------

def _attn_pool_kernel(n_rows):
    def kernel(x_ref, h_ref, st_ref, g_ref, be_ref, w2_ref, b2_ref, o_ref):
        x = x_ref[0].astype(jnp.float32)                    # (T, C) pooled features
        scale, shift = _bn_scale_shift(st_ref[...], g_ref[...], be_ref[...],
                                       float(n_rows))
        hb = h_ref[0].astype(jnp.float32) * scale + shift   # BN of relu(conv1(hcat))
        logits = jnp.dot(hb.astype(jnp.bfloat16), w2_ref[...],
                         preferred_element_type=jnp.float32) + b2_ref[...]
        m = jnp.max(logits, axis=0, keepdims=True)
        e = jnp.exp(logits - m)
        wgt = e * pl.reciprocal(jnp.sum(e, axis=0, keepdims=True))   # exact (1, C)
        mean = jnp.sum(x * wgt, axis=0, keepdims=True)
        var = jnp.sum(wgt * (x - mean) ** 2, axis=0, keepdims=True)
        std = jnp.sqrt(var + 1e-8)
        o_ref[0] = jnp.concatenate([mean, std], axis=1)

    return kernel


def attn_stat_pool(hcat, h1, stats, gamma, beta, w2, b2):
    B, T, C = hcat.shape
    A = h1.shape[2]
    out = pl.pallas_call(
        _attn_pool_kernel(B * T),
        out_shape=jax.ShapeDtypeStruct((B, 1, 2 * C), jnp.float32),
        grid=(B,),
        in_specs=[pl.BlockSpec((1, T, C), lambda b: (b, 0, 0)),
                  pl.BlockSpec((1, T, A), lambda b: (b, 0, 0)),
                  pl.BlockSpec((2, A), lambda b: (0, 0)),
                  pl.BlockSpec((1, A), lambda b: (0, 0)),
                  pl.BlockSpec((1, A), lambda b: (0, 0)),
                  pl.BlockSpec(w2.shape, lambda b: (0, 0)),
                  pl.BlockSpec((1, C), lambda b: (0, 0))],
        out_specs=pl.BlockSpec((1, 1, 2 * C), lambda b: (b, 0, 0)),
        compiler_params=_cparams("parallel"),
    )(hcat, h1, stats, gamma, beta, w2, b2)
    return out.reshape(B, 2 * C)


# ---------------------------------------------------------------------------
# Kernel 5: embedding Linear + BatchNorm1d (tiny; single block).
# ---------------------------------------------------------------------------

def _linear_bn_kernel():
    def kernel(x_ref, w_ref, b_ref, g_ref, bb_ref, o_ref):
        y = jnp.dot(x_ref[...].astype(jnp.bfloat16), w_ref[...],
                    preferred_element_type=jnp.float32) + b_ref[...]
        m = jnp.mean(y, axis=0, keepdims=True)
        v = jnp.maximum(jnp.mean(y * y, axis=0, keepdims=True) - m * m, 0.0)
        o_ref[...] = (y - m) * jax.lax.rsqrt(v + _BN_EPS) * g_ref[...] + bb_ref[...]
    return kernel


def linear_bn(x, w, b, gamma, beta):
    B = x.shape[0]
    E = w.shape[1]
    return pl.pallas_call(
        _linear_bn_kernel(),
        out_shape=jax.ShapeDtypeStruct((B, E), jnp.float32),
        in_specs=[_VMEM] * 5,
        out_specs=_VMEM,
        compiler_params=_cparams(),
    )(x, w, b, gamma, beta)


# ---------------------------------------------------------------------------
# Glue (JAX level): im2col, layout, concat of residual outputs.
# ---------------------------------------------------------------------------

def _im2col(x, K, dilation):
    # TODO(synk): for large feature dims, do the K-tap accumulation inside the
    # matmul kernel from a time-haloed block instead of materializing a Kx copy.
    B, T, Cin = x.shape
    if K == 1:
        return x.reshape(B * T, Cin)
    pad = dilation * (K - 1) // 2
    xp = jnp.pad(x, ((0, 0), (pad, pad), (0, 0)))
    cols = [xp[:, k * dilation:k * dilation + T, :] for k in range(K)]
    return jnp.concatenate(cols, axis=2).reshape(B * T, K * Cin)


def ecapa_tdnn_forward(params, x_nct, kernel_sizes, dilations, scale=8):
    B, _, T = x_nct.shape
    R = B * T
    # bf16 activations end-to-end; cast once, before the layout transpose.
    x = jnp.transpose(x_nct.astype(jnp.bfloat16), (0, 2, 1))   # (B, T, Cin)

    # ConvBlock: conv(im2col matmul) -> BN -> ReLU -> SE, in 2 fused kernels.
    c = params['conv1']
    y0, st0 = matmul_stats(_im2col(x, kernel_sizes[0], dilations[0]), c['w'], c['b'])
    h = se_block(y0, st0, c['bn_g'], c['bn_b'], c['se_w1'], c['se_w2'], B, T,
                 pre_relu=True)

    res_outputs = []
    for i, blk in enumerate(params['blocks']):
        k, d = kernel_sizes[i + 1], dilations[i + 1]
        C = blk['conv1_w'].shape[1]
        residual = h
        y1, st1 = matmul_stats(h.reshape(R, -1), blk['conv1_w'], blk['conv1_b'])
        sc = res2net_scale_chain(y1.reshape(B, T, C), st1, blk['bn1_g'], blk['bn1_b'],
                                 blk['convs_w'], blk['convs_b'],
                                 blk['bns_g'], blk['bns_b'], k, d, scale)
        y3, st3 = matmul_stats(sc.reshape(R, C), blk['conv3_w'], blk['conv3_b'])
        h = se_block(y3, st3, blk['bn3_g'], blk['bn3_b'], blk['se_w1'], blk['se_w2'],
                     B, T, pre_relu=False, residual=residual, final_relu=True)
        res_outputs.append(h)

    # TODO(synk): for multi-block configs, write each block's SE output directly
    # into its channel slot of hcat (out_spec channel offset) to skip this concat.
    hcat = res_outputs[0] if len(res_outputs) == 1 else jnp.concatenate(res_outputs, axis=2)

    a = params['attn']
    h1, sta = matmul_stats(hcat.reshape(R, -1), a['w1'], a['b1'], relu_first=True)
    pooled = attn_stat_pool(hcat, h1.reshape(B, T, -1), sta, a['bn_g'], a['bn_b'],
                            a['w2'], a['b2'])

    e = params['emb']
    return linear_bn(pooled, e['w'], e['b'], e['bn_g'], e['bn_b'])


# ---------------------------------------------------------------------------
# Deterministic parameter initialization (weights pre-transposed to (in, out),
# matmul weights in bf16).
# ---------------------------------------------------------------------------

def _normal(key, shape, scale=0.1, dtype=jnp.float32):
    return (scale * jax.random.normal(key, shape, dtype=jnp.float32)).astype(dtype)


def init_params(key, input_dim, channels, kernel_sizes, dilations,
                attention_channels, embedding_dim, scale=8, se_reduction=8):
    keys = iter(jax.random.split(key, 256))
    nk = lambda: next(keys)
    bf16 = jnp.bfloat16

    C0 = channels[0]
    params = {
        'conv1': {
            'w': _normal(nk(), (kernel_sizes[0] * input_dim, C0), dtype=bf16),
            'b': jnp.zeros((1, C0), jnp.float32),               # ConvBlock conv: bias=False
            'bn_g': jnp.ones((1, C0), jnp.float32),
            'bn_b': jnp.zeros((1, C0), jnp.float32),
            'se_w1': _normal(nk(), (C0, C0 // se_reduction), dtype=bf16),
            'se_w2': _normal(nk(), (C0 // se_reduction, C0), dtype=bf16),
        }
    }

    blocks = []
    for i in range(1, len(channels)):
        cin, cout = channels[i - 1], channels[i]
        kk = kernel_sizes[i]
        width = cout // scale
        nums = scale - 1
        blk = {
            'conv1_w': _normal(nk(), (cin, cout), dtype=bf16),
            'conv1_b': _normal(nk(), (1, cout), 0.05),
            'bn1_g': jnp.ones((1, cout), jnp.float32),
            'bn1_b': jnp.zeros((1, cout), jnp.float32),
            # (branch, K*width, width): K dilated taps fused into one matmul.
            'convs_w': _normal(nk(), (nums, kk * width, width), dtype=bf16),
            'convs_b': _normal(nk(), (nums, 1, width), 0.05),
            'bns_g': jnp.ones((nums, 1, width), jnp.float32),
            'bns_b': jnp.zeros((nums, 1, width), jnp.float32),
            'conv3_w': _normal(nk(), (cout, cout), dtype=bf16),
            'conv3_b': _normal(nk(), (1, cout), 0.05),
            'bn3_g': jnp.ones((1, cout), jnp.float32),
            'bn3_b': jnp.zeros((1, cout), jnp.float32),
            'se_w1': _normal(nk(), (cout, cout // se_reduction), dtype=bf16),
            'se_w2': _normal(nk(), (cout // se_reduction, cout), dtype=bf16),
        }
        blocks.append(blk)
    params['blocks'] = blocks

    c_att_in = channels[-1]                                     # as in the module code
    params['attn'] = {
        'w1': _normal(nk(), (c_att_in, attention_channels), dtype=bf16),
        'b1': _normal(nk(), (1, attention_channels), 0.05),
        'bn_g': jnp.ones((1, attention_channels), jnp.float32),
        'bn_b': jnp.zeros((1, attention_channels), jnp.float32),
        'w2': _normal(nk(), (attention_channels, c_att_in), dtype=bf16),
        'b2': _normal(nk(), (1, c_att_in), 0.05),
    }
    params['emb'] = {
        'w': _normal(nk(), (channels[-1] * 2, embedding_dim), dtype=bf16),
        'b': jnp.zeros((1, embedding_dim), jnp.float32),
        'bn_g': jnp.ones((1, embedding_dim), jnp.float32),
        'bn_b': jnp.zeros((1, embedding_dim), jnp.float32),
    }
    return params


# ---------------------------------------------------------------------------

if __name__ == "__main__":
    B, T = 2, 32
    input_dim = 16
    channels = [32, 32]            # consistent small config (see TODO at top)
    kernel_sizes = [5, 3]
    dilations = [1, 2]
    attention_channels = 16
    embedding_dim = 16

    key = jax.random.PRNGKey(0)
    pkey, xkey = jax.random.split(key)
    params = init_params(pkey, input_dim, channels, kernel_sizes, dilations,
                         attention_channels, embedding_dim)

    # PyTorch Conv1d input layout: (batch, channels, time)
    x = jax.random.normal(xkey, (B, input_dim, T), dtype=jnp.float32)

    fwd = jax.jit(functools.partial(ecapa_tdnn_forward,
                                    kernel_sizes=tuple(kernel_sizes),
                                    dilations=tuple(dilations)))
    out = jax.block_until_ready(fwd(params, x))
    assert out.shape == (B, embedding_dim), out.shape
    assert bool(jnp.all(jnp.isfinite(out)))
    print("KERNEL_OK")
</pallas_src>

<mosaic_0001>
module attributes {stable_mosaic.version = 11 : i64} {
  func.func @kernel(%arg0: i32, %arg1: memref<64x80xbf16, #tpu.memory_space<vmem>>, %arg2: memref<80x32xbf16, #tpu.memory_space<vmem>>, %arg3: memref<1x32xf32, #tpu.memory_space<vmem>>, %arg4: memref<64x32xbf16, #tpu.memory_space<vmem>>, %arg5: memref<1x2x32xf32, #tpu.memory_space<vmem>>) attributes {dimension_semantics = [#tpu.dimension_semantics<parallel>], iteration_bounds = array<i64: 1>, scalar_prefetch = 0 : i64, scratch_operands = 0 : i64, tpu.core_type = #tpu.core_type<tc>, window_params = [{transform_indices = @transform_0, window_bounds = array<i64: 64, 80>}, {pipeline_mode = #tpu.pipeline_mode<synchronous>, transform_indices = @transform_1, window_bounds = array<i64: 80, 32>}, {pipeline_mode = #tpu.pipeline_mode<synchronous>, transform_indices = @transform_2, window_bounds = array<i64: 1, 32>}, {transform_indices = @transform_3, window_bounds = array<i64: 64, 32>}, {transform_indices = @transform_4, window_bounds = array<i64: 1, 2, 32>}]} {
    %c0 = arith.constant 0 : index
    %c0_0 = arith.constant 0 : index
    %0 = vector.load %arg1[%c0, %c0_0] : memref<64x80xbf16, #tpu.memory_space<vmem>>, vector<64x80xbf16>
    %c0_1 = arith.constant 0 : index
    %c0_2 = arith.constant 0 : index
    %1 = vector.load %arg2[%c0_1, %c0_2] : memref<80x32xbf16, #tpu.memory_space<vmem>>, vector<80x32xbf16>
    %cst = arith.constant dense<0.000000e+00> : vector<64x32xf32>
    %2 = tpu.matmul %0, %1, %cst {dimension_numbers = #tpu.dot_dimension_numbers<[1], [0], [0], [1], [0, 0, 1, 1], [], []>} : vector<64x80xbf16>, vector<80x32xbf16>, vector<64x32xf32> -> vector<64x32xf32>
    %c0_3 = arith.constant 0 : index
    %c0_4 = arith.constant 0 : index
    %3 = vector.load %arg3[%c0_3, %c0_4] : memref<1x32xf32, #tpu.memory_space<vmem>>, vector<1x32xf32>
    %4 = vector.broadcast %3 : vector<1x32xf32> to vector<64x32xf32>
    %5 = arith.addf %2, %4 : vector<64x32xf32>
    %6 = arith.truncf %5 : vector<64x32xf32> to vector<64x32xbf16>
    %c0_5 = arith.constant 0 : index
    %c0_6 = arith.constant 0 : index
    %7 = vector.load %arg4[%c0_5, %c0_6] : memref<64x32xbf16, #tpu.memory_space<vmem>>, vector<64x32xbf16>
    tpu.vector_store %arg4[%c0_5, %c0_6], %6 {strides = array<i32>} : memref<64x32xbf16, #tpu.memory_space<vmem>>, vector<64x32xbf16>,
    %cst_7 = arith.constant dense<0.000000e+00> : vector<32xf32>
    %8 = vector.multi_reduction <add>, %5, %cst_7 [0] : vector<64x32xf32> to vector<32xf32>
    %9 = vector.shape_cast %8 : vector<32xf32> to vector<1x32xf32>
    %10 = arith.mulf %5, %5 : vector<64x32xf32>
    %cst_8 = arith.constant dense<0.000000e+00> : vector<32xf32>
    %11 = vector.multi_reduction <add>, %10, %cst_8 [0] : vector<64x32xf32> to vector<32xf32>
    %12 = vector.shape_cast %11 : vector<32xf32> to vector<1x32xf32>
    %13 = tpu.concatenate %9, %12 in 0 : vector<1x32xf32>, vector<1x32xf32> -> vector<2x32xf32>
    %c0_9 = arith.constant 0 : index
    %c0_10 = arith.constant 0 : index
    %c0_11 = arith.constant 0 : index
    %14 = vector.load %arg5[%c0_9, %c0_10, %c0_11] : memref<1x2x32xf32, #tpu.memory_space<vmem>>, vector<1x2x32xf32>
    %15 = vector.shape_cast %14 : vector<1x2x32xf32> to vector<2x32xf32>
    %16 = vector.shape_cast %13 : vector<2x32xf32> to vector<1x2x32xf32>
    tpu.vector_store %arg5[%c0_9, %c0_10, %c0_11], %16 {strides = array<i32>} : memref<1x2x32xf32, #tpu.memory_space<vmem>>, vector<1x2x32xf32>,
    return
  }
  func.func @transform_0(%arg0: i32) -> (i32, i32) {
    %c0_i32 = arith.constant 0 : i32
    %c0_i32_0 = arith.constant 0 : i32
    return %arg0, %c0_i32 : i32, i32
  }
  func.func @transform_1(%arg0: i32) -> (i32, i32) {
    %c0_i32 = arith.constant 0 : i32
    %c0_i32_0 = arith.constant 0 : i32
    %c0_i32_1 = arith.constant 0 : i32
    return %c0_i32, %c0_i32_0 : i32, i32
  }
  func.func @transform_2(%arg0: i32) -> (i32, i32) {
    %c0_i32 = arith.constant 0 : i32
    %c0_i32_0 = arith.constant 0 : i32
    %c0_i32_1 = arith.constant 0 : i32
    return %c0_i32, %c0_i32_0 : i32, i32
  }
  func.func @transform_3(%arg0: i32) -> (i32, i32) {
    %c0_i32 = arith.constant 0 : i32
    %c0_i32_0 = arith.constant 0 : i32
    return %arg0, %c0_i32 : i32, i32
  }
  func.func @transform_4(%arg0: i32) -> (i32, i32, i32) {
    %c0_i32 = arith.constant 0 : i32
    %c0_i32_0 = arith.constant 0 : i32
    %c0_i32_1 = arith.constant 0 : i32
    return %arg0, %c0_i32, %c0_i32_0 : i32, i32, i32
  }
}

module attributes {stable_mosaic.version = 11 : i64} {
  func.func @kernel(%arg0: i32, %arg1: memref<1x32x32xbf16, #tpu.memory_space<vmem>>, %arg2: memref<2x32xf32, #tpu.memory_space<vmem>>, %arg3: memref<1x32xf32, #tpu.memory_space<vmem>>, %arg4: memref<1x32xf32, #tpu.memory_space<vmem>>, %arg5: memref<32x4xbf16, #tpu.memory_space<vmem>>, %arg6: memref<4x32xbf16, #tpu.memory_space<vmem>>, %arg7: memref<1x32x32xbf16, #tpu.memory_space<vmem>>) attributes {dimension_semantics = [#tpu.dimension_semantics<parallel>], iteration_bounds = array<i64: 2>, scalar_prefetch = 0 : i64, scratch_operands = 0 : i64, tpu.core_type = #tpu.core_type<tc>, window_params = [{transform_indices = @transform_0, window_bounds = array<i64: 1, 32, 32>}, {pipeline_mode = #tpu.pipeline_mode<synchronous>, transform_indices = @transform_1, window_bounds = array<i64: 2, 32>}, {pipeline_mode = #tpu.pipeline_mode<synchronous>, transform_indices = @transform_2, window_bounds = array<i64: 1, 32>}, {pipeline_mode = #tpu.pipeline_mode<synchronous>, transform_indices = @transform_3, window_bounds = array<i64: 1, 32>}, {pipeline_mode = #tpu.pipeline_mode<synchronous>, transform_indices = @transform_4, window_bounds = array<i64: 32, 4>}, {pipeline_mode = #tpu.pipeline_mode<synchronous>, transform_indices = @transform_5, window_bounds = array<i64: 4, 32>}, {transform_indices = @transform_6, window_bounds = array<i64: 1, 32, 32>}]} {
    %c0 = arith.constant 0 : index
    %c0_0 = arith.constant 0 : index
    %0 = vector.load %arg2[%c0, %c0_0] : memref<2x32xf32, #tpu.memory_space<vmem>>, vector<2x32xf32>
    %c0_1 = arith.constant 0 : index
    %c0_2 = arith.constant 0 : index
    %1 = vector.load %arg3[%c0_1, %c0_2] : memref<1x32xf32, #tpu.memory_space<vmem>>, vector<1x32xf32>
    %c0_3 = arith.constant 0 : index
    %c0_4 = arith.constant 0 : index
    %2 = vector.load %arg4[%c0_3, %c0_4] : memref<1x32xf32, #tpu.memory_space<vmem>>, vector<1x32xf32>
    %3 = vector.extract_strided_slice %0 {offsets = [0, 0], sizes = [1, 32], strides = [1, 1]} : vector<2x32xf32> to vector<1x32xf32>
    %cst = arith.constant 1.562500e-02 : f32
    %4 = vector.broadcast %cst : f32 to vector<1x32xf32>
    %5 = arith.mulf %3, %4 : vector<1x32xf32>
    %6 = vector.extract_strided_slice %0 {offsets = [1, 0], sizes = [1, 32], strides = [1, 1]} : vector<2x32xf32> to vector<1x32xf32>
    %cst_5 = arith.constant 1.562500e-02 : f32
    %7 = vector.broadcast %cst_5 : f32 to vector<1x32xf32>
    %8 = arith.mulf %6, %7 : vector<1x32xf32>
    %9 = arith.mulf %5, %5 : vector<1x32xf32>
    %10 = arith.subf %8, %9 : vector<1x32xf32>
    %cst_6 = arith.constant 0.000000e+00 : f32
    %11 = vector.broadcast %cst_6 : f32 to vector<1x32xf32>
    %12 = arith.maximumf %10, %11 : vector<1x32xf32>
    %cst_7 = arith.constant 9.99999974E-6 : f32
    %13 = vector.broadcast %cst_7 : f32 to vector<1x32xf32>
    %14 = arith.addf %12, %13 : vector<1x32xf32>
    %15 = math.rsqrt %14 : vector<1x32xf32>
    %16 = arith.mulf %1, %15 : vector<1x32xf32>
    %17 = arith.mulf %5, %16 : vector<1x32xf32>
    %18 = arith.subf %2, %17 : vector<1x32xf32>
    %c0_8 = arith.constant 0 : index
    %c0_9 = arith.constant 0 : index
    %c0_10 = arith.constant 0 : index
    %19 = vector.load %arg1[%c0_8, %c0_9, %c0_10] : memref<1x32x32xbf16, #tpu.memory_space<vmem>>, vector<1x32x32xbf16>
    %20 = vector.shape_cast %19 : vector<1x32x32xbf16> to vector<32x32xbf16>
    %21 = arith.extf %20 : vector<32x32xbf16> to vector<32x32xf32>
    %22 = vector.broadcast %16 : vector<1x32xf32> to vector<32x32xf32>
    %23 = arith.mulf %21, %22 : vector<32x32xf32>
    %24 = vector.broadcast %18 : vector<1x32xf32> to vector<32x32xf32>
    %25 = arith.addf %23, %24 : vector<32x32xf32>
    %cst_11 = arith.constant 0.000000e+00 : f32
    %26 = vector.broadcast %cst_11 : f32 to vector<32x32xf32>
    %27 = arith.maximumf %25, %26 : vector<32x32xf32>
    %cst_12 = arith.constant dense<0.000000e+00> : vector<32xf32>
    %28 = vector.multi_reduction <add>, %27, %cst_12 [0] : vector<32x32xf32> to vector<32xf32>
    %29 = vector.shape_cast %28 : vector<32xf32> to vector<1x32xf32>
    %cst_13 = arith.constant 3.200000e+01 : f32
    %30 = vector.broadcast %cst_13 : f32 to vector<1x32xf32>
    %31 = arith.divf %29, %30 : vector<1x32xf32>
    %32 = arith.truncf %31 : vector<1x32xf32> to vector<1x32xbf16>
    %c0_14 = arith.constant 0 : index
    %c0_15 = arith.constant 0 : index
    %33 = vector.load %arg5[%c0_14, %c0_15] : memref<32x4xbf16, #tpu.memory_space<vmem>>, vector<32x4xbf16>
    %cst_16 = arith.constant dense<0.000000e+00> : vector<1x4xf32>
    %34 = tpu.matmul %32, %33, %cst_16 {dimension_numbers = #tpu.dot_dimension_numbers<[1], [0], [0], [1], [0, 0, 1, 1], [], []>} : vector<1x32xbf16>, vector<32x4xbf16>, vector<1x4xf32> -> vector<1x4xf32>
    %cst_17 = arith.constant 0.000000e+00 : f32
    %35 = vector.broadcast %cst_17 : f32 to vector<1x4xf32>
    %36 = arith.maximumf %34, %35 : vector<1x4xf32>
    %37 = arith.truncf %36 : vector<1x4xf32> to vector<1x4xbf16>
    %c0_18 = arith.constant 0 : index
    %c0_19 = arith.constant 0 : index
    %38 = vector.load %arg6[%c0_18, %c0_19] : memref<4x32xbf16, #tpu.memory_space<vmem>>, vector<4x32xbf16>
    %cst_20 = arith.constant dense<0.000000e+00> : vector<1x32xf32>
    %39 = tpu.matmul %37, %38, %cst_20 {dimension_numbers = #tpu.dot_dimension_numbers<[1], [0], [0], [1], [0, 0, 1, 1], [], []>} : vector<1x4xbf16>, vector<4x32xbf16>, vector<1x32xf32> -> vector<1x32xf32>
    %cst_21 = arith.constant 0.000000e+00 : f32
    %40 = vector.broadcast %cst_21 : f32 to vector<1x32xf32>
    %41 = arith.subf %40, %39 : vector<1x32xf32>
    %42 = math.exp %41 : vector<1x32xf32>
    %cst_22 = arith.constant 1.000000e+00 : f32
    %43 = vector.broadcast %cst_22 : f32 to vector<1x32xf32>
    %44 = arith.addf %43, %42 : vector<1x32xf32>
    %cst_23 = arith.constant 1.000000e+00 : f32
    %45 = vector.broadcast %cst_23 : f32 to vector<1x32xf32>
    %46 = arith.divf %45, %44 : vector<1x32xf32>
    %47 = vector.broadcast %46 : vector<1x32xf32> to vector<32x32xf32>
    %48 = arith.mulf %27, %47 : vector<32x32xf32>
    %49 = arith.truncf %48 : vector<32x32xf32> to vector<32x32xbf16>
    %c0_24 = arith.constant 0 : index
    %c0_25 = arith.constant 0 : index
    %c0_26 = arith.constant 0 : index
    %50 = vector.load %arg7[%c0_24, %c0_25, %c0_26] : memref<1x32x32xbf16, #tpu.memory_space<vmem>>, vector<1x32x32xbf16>
    %51 = vector.shape_cast %50 : vector<1x32x32xbf16> to vector<32x32xbf16>
    %52 = vector.shape_cast %49 : vector<32x32xbf16> to vector<1x32x32xbf16>
    tpu.vector_store %arg7[%c0_24, %c0_25, %c0_26], %52 {strides = array<i32>} : memref<1x32x32xbf16, #tpu.memory_space<vmem>>, vector<1x32x32xbf16>,
    return
  }
  func.func @transform_0(%arg0: i32) -> (i32, i32, i32) {
    %c0_i32 = arith.constant 0 : i32
    %c0_i32_0 = arith.constant 0 : i32
    %c0_i32_1 = arith.constant 0 : i32
    return %arg0, %c0_i32, %c0_i32_0 : i32, i32, i32
  }
  func.func @transform_1(%arg0: i32) -> (i32, i32) {
    %c0_i32 = arith.constant 0 : i32
    %c0_i32_0 = arith.constant 0 : i32
    %c0_i32_1 = arith.constant 0 : i32
    return %c0_i32, %c0_i32_0 : i32, i32
  }
  func.func @transform_2(%arg0: i32) -> (i32, i32) {
    %c0_i32 = arith.constant 0 : i32
    %c0_i32_0 = arith.constant 0 : i32
    %c0_i32_1 = arith.constant 0 : i32
    return %c0_i32, %c0_i32_0 : i32, i32
  }
  func.func @transform_3(%arg0: i32) -> (i32, i32) {
    %c0_i32 = arith.constant 0 : i32
    %c0_i32_0 = arith.constant 0 : i32
    %c0_i32_1 = arith.constant 0 : i32
    return %c0_i32, %c0_i32_0 : i32, i32
  }
  func.func @transform_4(%arg0: i32) -> (i32, i32) {
    %c0_i32 = arith.constant 0 : i32
    %c0_i32_0 = arith.constant 0 : i32
    %c0_i32_1 = arith.constant 0 : i32
    return %c0_i32, %c0_i32_0 : i32, i32
  }
  func.func @transform_5(%arg0: i32) -> (i32, i32) {
    %c0_i32 = arith.constant 0 : i32
    %c0_i32_0 = arith.constant 0 : i32
    %c0_i32_1 = arith.constant 0 : i32
    return %c0_i32, %c0_i32_0 : i32, i32
  }
  func.func @transform_6(%arg0: i32) -> (i32, i32, i32) {
    %c0_i32 = arith.constant 0 : i32
    %c0_i32_0 = arith.constant 0 : i32
    %c0_i32_1 = arith.constant 0 : i32
    return %arg0, %c0_i32, %c0_i32_0 : i32, i32, i32
  }
}

module attributes {stable_mosaic.version = 11 : i64} {
  func.func @kernel(%arg0: i32, %arg1: memref<64x32xbf16, #tpu.memory_space<vmem>>, %arg2: memref<32x32xbf16, #tpu.memory_space<vmem>>, %arg3: memref<1x32xf32, #tpu.memory_space<vmem>>, %arg4: memref<64x32xbf16, #tpu.memory_space<vmem>>, %arg5: memref<1x2x32xf32, #tpu.memory_space<vmem>>) attributes {dimension_semantics = [#tpu.dimension_semantics<parallel>], iteration_bounds = array<i64: 1>, scalar_prefetch = 0 : i64, scratch_operands = 0 : i64, tpu.core_type = #tpu.core_type<tc>, window_params = [{transform_indices = @transform_0, window_bounds = array<i64: 64, 32>}, {pipeline_mode = #tpu.pipeline_mode<synchronous>, transform_indices = @transform_1, window_bounds = array<i64: 32, 32>}, {pipeline_mode = #tpu.pipeline_mode<synchronous>, transform_indices = @transform_2, window_bounds = array<i64: 1, 32>}, {transform_indices = @transform_3, window_bounds = array<i64: 64, 32>}, {transform_indices = @transform_4, window_bounds = array<i64: 1, 2, 32>}]} {
    %c0 = arith.constant 0 : index
    %c0_0 = arith.constant 0 : index
    %0 = vector.load %arg1[%c0, %c0_0] : memref<64x32xbf16, #tpu.memory_space<vmem>>, vector<64x32xbf16>
    %c0_1 = arith.constant 0 : index
    %c0_2 = arith.constant 0 : index
    %1 = vector.load %arg2[%c0_1, %c0_2] : memref<32x32xbf16, #tpu.memory_space<vmem>>, vector<32x32xbf16>
    %cst = arith.constant dense<0.000000e+00> : vector<64x32xf32>
    %2 = tpu.matmul %0, %1, %cst {dimension_numbers = #tpu.dot_dimension_numbers<[1], [0], [0], [1], [0, 0, 1, 1], [], []>} : vector<64x32xbf16>, vector<32x32xbf16>, vector<64x32xf32> -> vector<64x32xf32>
    %c0_3 = arith.constant 0 : index
    %c0_4 = arith.constant 0 : index
    %3 = vector.load %arg3[%c0_3, %c0_4] : memref<1x32xf32, #tpu.memory_space<vmem>>, vector<1x32xf32>
    %4 = vector.broadcast %3 : vector<1x32xf32> to vector<64x32xf32>
    %5 = arith.addf %2, %4 : vector<64x32xf32>
    %6 = arith.truncf %5 : vector<64x32xf32> to vector<64x32xbf16>
    %c0_5 = arith.constant 0 : index
    %c0_6 = arith.constant 0 : index
    %7 = vector.load %arg4[%c0_5, %c0_6] : memref<64x32xbf16, #tpu.memory_space<vmem>>, vector<64x32xbf16>
    tpu.vector_store %arg4[%c0_5, %c0_6], %6 {strides = array<i32>} : memref<64x32xbf16, #tpu.memory_space<vmem>>, vector<64x32xbf16>,
    %cst_7 = arith.constant dense<0.000000e+00> : vector<32xf32>
    %8 = vector.multi_reduction <add>, %5, %cst_7 [0] : vector<64x32xf32> to vector<32xf32>
    %9 = vector.shape_cast %8 : vector<32xf32> to vector<1x32xf32>
    %10 = arith.mulf %5, %5 : vector<64x32xf32>
    %cst_8 = arith.constant dense<0.000000e+00> : vector<32xf32>
    %11 = vector.multi_reduction <add>, %10, %cst_8 [0] : vector<64x32xf32> to vector<32xf32>
    %12 = vector.shape_cast %11 : vector<32xf32> to vector<1x32xf32>
    %13 = tpu.concatenate %9, %12 in 0 : vector<1x32xf32>, vector<1x32xf32> -> vector<2x32xf32>
    %c0_9 = arith.constant 0 : index
    %c0_10 = arith.constant 0 : index
    %c0_11 = arith.constant 0 : index
    %14 = vector.load %arg5[%c0_9, %c0_10, %c0_11] : memref<1x2x32xf32, #tpu.memory_space<vmem>>, vector<1x2x32xf32>
    %15 = vector.shape_cast %14 : vector<1x2x32xf32> to vector<2x32xf32>
    %16 = vector.shape_cast %13 : vector<2x32xf32> to vector<1x2x32xf32>
    tpu.vector_store %arg5[%c0_9, %c0_10, %c0_11], %16 {strides = array<i32>} : memref<1x2x32xf32, #tpu.memory_space<vmem>>, vector<1x2x32xf32>,
    return
  }
  func.func @transform_0(%arg0: i32) -> (i32, i32) {
    %c0_i32 = arith.constant 0 : i32
    %c0_i32_0 = arith.constant 0 : i32
    return %arg0, %c0_i32 : i32, i32
  }
  func.func @transform_1(%arg0: i32) -> (i32, i32) {
    %c0_i32 = arith.constant 0 : i32
    %c0_i32_0 = arith.constant 0 : i32
    %c0_i32_1 = arith.constant 0 : i32
    return %c0_i32, %c0_i32_0 : i32, i32
  }
  func.func @transform_2(%arg0: i32) -> (i32, i32) {
    %c0_i32 = arith.constant 0 : i32
    %c0_i32_0 = arith.constant 0 : i32
    %c0_i32_1 = arith.constant 0 : i32
    return %c0_i32, %c0_i32_0 : i32, i32
  }
  func.func @transform_3(%arg0: i32) -> (i32, i32) {
    %c0_i32 = arith.constant 0 : i32
    %c0_i32_0 = arith.constant 0 : i32
    return %arg0, %c0_i32 : i32, i32
  }
  func.func @transform_4(%arg0: i32) -> (i32, i32, i32) {
    %c0_i32 = arith.constant 0 : i32
    %c0_i32_0 = arith.constant 0 : i32
    %c0_i32_1 = arith.constant 0 : i32
    return %arg0, %c0_i32, %c0_i32_0 : i32, i32, i32
  }
}

module attributes {stable_mosaic.version = 11 : i64} {
  func.func @kernel(%arg0: memref<2x32x32xbf16, #tpu.memory_space<vmem>>, %arg1: memref<2x32xf32, #tpu.memory_space<vmem>>, %arg2: memref<1x32xf32, #tpu.memory_space<vmem>>, %arg3: memref<1x32xf32, #tpu.memory_space<vmem>>, %arg4: memref<7x12x4xbf16, #tpu.memory_space<vmem>>, %arg5: memref<7x1x4xf32, #tpu.memory_space<vmem>>, %arg6: memref<7x1x4xf32, #tpu.memory_space<vmem>>, %arg7: memref<7x1x4xf32, #tpu.memory_space<vmem>>, %arg8: memref<2x32x32xbf16, #tpu.memory_space<vmem>>) attributes {dimension_semantics = [], scalar_prefetch = 0 : i64, scratch_operands = 0 : i64, tpu.core_type = #tpu.core_type<tc>} {
    %c0 = arith.constant 0 : index
    %c0_0 = arith.constant 0 : index
    %0 = vector.load %arg1[%c0, %c0_0] : memref<2x32xf32, #tpu.memory_space<vmem>>, vector<2x32xf32>
    %c0_1 = arith.constant 0 : index
    %c0_2 = arith.constant 0 : index
    %1 = vector.load %arg2[%c0_1, %c0_2] : memref<1x32xf32, #tpu.memory_space<vmem>>, vector<1x32xf32>
    %c0_3 = arith.constant 0 : index
    %c0_4 = arith.constant 0 : index
    %2 = vector.load %arg3[%c0_3, %c0_4] : memref<1x32xf32, #tpu.memory_space<vmem>>, vector<1x32xf32>
    %3 = vector.extract_strided_slice %0 {offsets = [0, 0], sizes = [1, 32], strides = [1, 1]} : vector<2x32xf32> to vector<1x32xf32>
    %cst = arith.constant 1.562500e-02 : f32
    %4 = vector.broadcast %cst : f32 to vector<1x32xf32>
    %5 = arith.mulf %3, %4 : vector<1x32xf32>
    %6 = vector.extract_strided_slice %0 {offsets = [1, 0], sizes = [1, 32], strides = [1, 1]} : vector<2x32xf32> to vector<1x32xf32>
    %cst_5 = arith.constant 1.562500e-02 : f32
    %7 = vector.broadcast %cst_5 : f32 to vector<1x32xf32>
    %8 = arith.mulf %6, %7 : vector<1x32xf32>
    %9 = arith.mulf %5, %5 : vector<1x32xf32>
    %10 = arith.subf %8, %9 : vector<1x32xf32>
    %cst_6 = arith.constant 0.000000e+00 : f32
    %11 = vector.broadcast %cst_6 : f32 to vector<1x32xf32>
    %12 = arith.maximumf %10, %11 : vector<1x32xf32>
    %cst_7 = arith.constant 9.99999974E-6 : f32
    %13 = vector.broadcast %cst_7 : f32 to vector<1x32xf32>
    %14 = arith.addf %12, %13 : vector<1x32xf32>
    %15 = math.rsqrt %14 : vector<1x32xf32>
    %16 = arith.mulf %1, %15 : vector<1x32xf32>
    %17 = arith.mulf %5, %16 : vector<1x32xf32>
    %18 = arith.subf %2, %17 : vector<1x32xf32>
    %c0_8 = arith.constant 0 : index
    %c0_9 = arith.constant 0 : index
    %c0_10 = arith.constant 0 : index
    %19 = vector.load %arg0[%c0_8, %c0_9, %c0_10] : memref<2x32x32xbf16, #tpu.memory_space<vmem>>, vector<2x32x32xbf16>
    %20 = arith.extf %19 : vector<2x32x32xbf16> to vector<2x32x32xf32>
    %21 = vector.shape_cast %16 : vector<1x32xf32> to vector<1x1x32xf32>
    %22 = vector.broadcast %21 : vector<1x1x32xf32> to vector<2x32x32xf32>
    %23 = arith.mulf %20, %22 : vector<2x32x32xf32>
    %24 = vector.shape_cast %18 : vector<1x32xf32> to vector<1x1x32xf32>
    %25 = vector.broadcast %24 : vector<1x1x32xf32> to vector<2x32x32xf32>
    %26 = arith.addf %23, %25 : vector<2x32x32xf32>
    %cst_11 = arith.constant 0.000000e+00 : f32
    %27 = vector.broadcast %cst_11 : f32 to vector<2x32x32xf32>
    %28 = arith.maximumf %26, %27 : vector<2x32x32xf32>
    %29 = arith.truncf %28 : vector<2x32x32xf32> to vector<2x32x32xbf16>
    %30 = vector.extract_strided_slice %29 {offsets = [0, 0, 0], sizes = [2, 32, 4], strides = [1, 1, 1]} : vector<2x32x32xbf16> to vector<2x32x4xbf16>
    %31 = arith.extf %30 : vector<2x32x4xbf16> to vector<2x32x4xf32>
    %32 = arith.truncf %31 : vector<2x32x4xf32> to vector<2x32x4xbf16>
    %cst_12 = arith.constant 0.000000e+00 : bf16
    %33 = vector.broadcast %cst_12 : bf16 to vector<2x2x4xbf16>
    %34 = tpu.concatenate %33, %32, %33 in 1 : vector<2x2x4xbf16>, vector<2x32x4xbf16>, vector<2x2x4xbf16> -> vector<2x36x4xbf16>
    %35 = vector.extract_strided_slice %34 {offsets = [0, 0, 0], sizes = [2, 32, 4], strides = [1, 1, 1]} : vector<2x36x4xbf16> to vector<2x32x4xbf16>
    %36 = vector.extract_strided_slice %34 {offsets = [0, 2, 0], sizes = [2, 32, 4], strides = [1, 1, 1]} : vector<2x36x4xbf16> to vector<2x32x4xbf16>
    %37 = vector.extract_strided_slice %34 {offsets = [0, 4, 0], sizes = [2, 32, 4], strides = [1, 1, 1]} : vector<2x36x4xbf16> to vector<2x32x4xbf16>
    %38 = tpu.concatenate %35, %36, %37 in 2 : vector<2x32x4xbf16>, vector<2x32x4xbf16>, vector<2x32x4xbf16> -> vector<2x32x12xbf16>
    %39 = vector.shape_cast %38 : vector<2x32x12xbf16> to vector<64x12xbf16>
    %c0_13 = arith.constant 0 : index
    %c0_14 = arith.constant 0 : index
    %c0_15 = arith.constant 0 : index
    %40 = vector.load %arg4[%c0_13, %c0_14, %c0_15] : memref<7x12x4xbf16, #tpu.memory_space<vmem>>, vector<1x12x4xbf16>
    %41 = vector.shape_cast %40 : vector<1x12x4xbf16> to vector<12x4xbf16>
    %cst_16 = arith.constant dense<0.000000e+00> : vector<64x4xf32>
    %42 = tpu.matmul %39, %41, %cst_16 {dimension_numbers = #tpu.dot_dimension_numbers<[1], [0], [0], [1], [0, 0, 1, 1], [], []>} : vector<64x12xbf16>, vector<12x4xbf16>, vector<64x4xf32> -> vector<64x4xf32>
    %c0_17 = arith.constant 0 : index
    %c0_18 = arith.constant 0 : index
    %c0_19 = arith.constant 0 : index
    %43 = vector.load %arg5[%c0_17, %c0_18, %c0_19] : memref<7x1x4xf32, #tpu.memory_space<vmem>>, vector<1x1x4xf32>
    %44 = vector.shape_cast %43 : vector<1x1x4xf32> to vector<1x4xf32>
    %45 = vector.broadcast %44 : vector<1x4xf32> to vector<64x4xf32>
    %46 = arith.addf %42, %45 : vector<64x4xf32>
    %cst_20 = arith.constant dense<0.000000e+00> : vector<4xf32>
    %47 = vector.multi_reduction <add>, %46, %cst_20 [0] : vector<64x4xf32> to vector<4xf32>
    %48 = vector.shape_cast %47 : vector<4xf32> to vector<1x4xf32>
    %cst_21 = arith.constant 6.400000e+01 : f32
    %49 = vector.broadcast %cst_21 : f32 to vector<1x4xf32>
    %50 = arith.divf %48, %49 : vector<1x4xf32>
    %51 = arith.mulf %46, %46 : vector<64x4xf32>
    %cst_22 = arith.constant dense<0.000000e+00> : vector<4xf32>
    %52 = vector.multi_reduction <add>, %51, %cst_22 [0] : vector<64x4xf32> to vector<4xf32>
    %53 = vector.shape_cast %52 : vector<4xf32> to vector<1x4xf32>
    %cst_23 = arith.constant 6.400000e+01 : f32
    %54 = vector.broadcast %cst_23 : f32 to vector<1x4xf32>
    %55 = arith.divf %53, %54 : vector<1x4xf32>
    %56 = arith.mulf %50, %50 : vector<1x4xf32>
    %57 = arith.subf %55, %56 : vector<1x4xf32>
    %cst_24 = arith.constant 0.000000e+00 : f32
    %58 = vector.broadcast %cst_24 : f32 to vector<1x4xf32>
    %59 = arith.maximumf %57, %58 : vector<1x4xf32>
    %60 = vector.broadcast %50 : vector<1x4xf32> to vector<64x4xf32>
    %61 = arith.subf %46, %60 : vector<64x4xf32>
    %cst_25 = arith.constant 9.99999974E-6 : f32
    %62 = vector.broadcast %cst_25 : f32 to vector<1x4xf32>
    %63 = arith.addf %59, %62 : vector<1x4xf32>
    %64 = math.rsqrt %63 : vector<1x4xf32>
    %65 = vector.broadcast %64 : vector<1x4xf32> to vector<64x4xf32>
    %66 = arith.mulf %61, %65 : vector<64x4xf32>
    %c0_26 = arith.constant 0 : index
    %c0_27 = arith.constant 0 : index
    %c0_28 = arith.constant 0 : index
    %67 = vector.load %arg6[%c0_26, %c0_27, %c0_28] : memref<7x1x4xf32, #tpu.memory_space<vmem>>, vector<1x1x4xf32>
    %68 = vector.shape_cast %67 : vector<1x1x4xf32> to vector<1x4xf32>
    %69 = vector.broadcast %68 : vector<1x4xf32> to vector<64x4xf32>
    %70 = arith.mulf %66, %69 : vector<64x4xf32>
    %c0_29 = arith.constant 0 : index
    %c0_30 = arith.constant 0 : index
    %c0_31 = arith.constant 0 : index
    %71 = vector.load %arg7[%c0_29, %c0_30, %c0_31] : memref<7x1x4xf32, #tpu.memory_space<vmem>>, vector<1x1x4xf32>
    %72 = vector.shape_cast %71 : vector<1x1x4xf32> to vector<1x4xf32>
    %73 = vector.broadcast %72 : vector<1x4xf32> to vector<64x4xf32>
    %74 = arith.addf %70, %73 : vector<64x4xf32>
    %cst_32 = arith.constant 0.000000e+00 : f32
    %75 = vector.broadcast %cst_32 : f32 to vector<64x4xf32>
    %76 = arith.maximumf %74, %75 : vector<64x4xf32>
    %77 = vector.shape_cast %76 : vector<64x4xf32> to vector<2x32x4xf32>
    %78 = arith.truncf %77 : vector<2x32x4xf32> to vector<2x32x4xbf16>
    %79 = vector.extract_strided_slice %29 {offsets = [0, 0, 4], sizes = [2, 32, 4], strides = [1, 1, 1]} : vector<2x32x32xbf16> to vector<2x32x4xbf16>
    %80 = arith.extf %79 : vector<2x32x4xbf16> to vector<2x32x4xf32>
    %81 = arith.addf %77, %80 : vector<2x32x4xf32>
    %82 = arith.truncf %81 : vector<2x32x4xf32> to vector<2x32x4xbf16>
    %cst_33 = arith.constant 0.000000e+00 : bf16
    %83 = vector.broadcast %cst_33 : bf16 to vector<2x2x4xbf16>
    %84 = tpu.concatenate %83, %82, %83 in 1 : vector<2x2x4xbf16>, vector<2x32x4xbf16>, vector<2x2x4xbf16> -> vector<2x36x4xbf16>
    %85 = vector.extract_strided_slice %84 {offsets = [0, 0, 0], sizes = [2, 32, 4], strides = [1, 1, 1]} : vector<2x36x4xbf16> to vector<2x32x4xbf16>
    %86 = vector.extract_strided_slice %84 {offsets = [0, 2, 0], sizes = [2, 32, 4], strides = [1, 1, 1]} : vector<2x36x4xbf16> to vector<2x32x4xbf16>
    %87 = vector.extract_strided_slice %84 {offsets = [0, 4, 0], sizes = [2, 32, 4], strides = [1, 1, 1]} : vector<2x36x4xbf16> to vector<2x32x4xbf16>
    %88 = tpu.concatenate %85, %86, %87 in 2 : vector<2x32x4xbf16>, vector<2x32x4xbf16>, vector<2x32x4xbf16> -> vector<2x32x12xbf16>
    %89 = vector.shape_cast %88 : vector<2x32x12xbf16> to vector<64x12xbf16>
    %c1 = arith.constant 1 : index
    %c0_34 = arith.constant 0 : index
    %c0_35 = arith.constant 0 : index
    %90 = vector.load %arg4[%c1, %c0_34, %c0_35] : memref<7x12x4xbf16, #tpu.memory_space<vmem>>, vector<1x12x4xbf16>
    %91 = vector.shape_cast %90 : vector<1x12x4xbf16> to vector<12x4xbf16>
    %cst_36 = arith.constant dense<0.000000e+00> : vector<64x4xf32>
    %92 = tpu.matmul %89, %91, %cst_36 {dimension_numbers = #tpu.dot_dimension_numbers<[1], [0], [0], [1], [0, 0, 1, 1], [], []>} : vector<64x12xbf16>, vector<12x4xbf16>, vector<64x4xf32> -> vector<64x4xf32>
    %c1_37 = arith.constant 1 : index
    %c0_38 = arith.constant 0 : index
    %c0_39 = arith.constant 0 : index
    %93 = vector.load %arg5[%c1_37, %c0_38, %c0_39] : memref<7x1x4xf32, #tpu.memory_space<vmem>>, vector<1x1x4xf32>
    %94 = vector.shape_cast %93 : vector<1x1x4xf32> to vector<1x4xf32>
    %95 = vector.broadcast %94 : vector<1x4xf32> to vector<64x4xf32>
    %96 = arith.addf %92, %95 : vector<64x4xf32>
    %cst_40 = arith.constant dense<0.000000e+00> : vector<4xf32>
    %97 = vector.multi_reduction <add>, %96, %cst_40 [0] : vector<64x4xf32> to vector<4xf32>
    %98 = vector.shape_cast %97 : vector<4xf32> to vector<1x4xf32>
    %cst_41 = arith.constant 6.400000e+01 : f32
    %99 = vector.broadcast %cst_41 : f32 to vector<1x4xf32>
    %100 = arith.divf %98, %99 : vector<1x4xf32>
    %101 = arith.mulf %96, %96 : vector<64x4xf32>
    %cst_42 = arith.constant dense<0.000000e+00> : vector<4xf32>
    %102 = vector.multi_reduction <add>, %101, %cst_42 [0] : vector<64x4xf32> to vector<4xf32>
    %103 = vector.shape_cast %102 : vector<4xf32> to vector<1x4xf32>
    %cst_43 = arith.constant 6.400000e+01 : f32
    %104 = vector.broadcast %cst_43 : f32 to vector<1x4xf32>
    %105 = arith.divf %103, %104 : vector<1x4xf32>
    %106 = arith.mulf %100, %100 : vector<1x4xf32>
    %107 = arith.subf %105, %106 : vector<1x4xf32>
    %cst_44 = arith.constant 0.000000e+00 : f32
    %108 = vector.broadcast %cst_44 : f32 to vector<1x4xf32>
    %109 = arith.maximumf %107, %108 : vector<1x4xf32>
    %110 = vector.broadcast %100 : vector<1x4xf32> to vector<64x4xf32>
    %111 = arith.subf %96, %110 : vector<64x4xf32>
    %cst_45 = arith.constant 9.99999974E-6 : f32
    %112 = vector.broadcast %cst_45 : f32 to vector<1x4xf32>
    %113 = arith.addf %109, %112 : vector<1x4xf32>
    %114 = math.rsqrt %113 : vector<1x4xf32>
    %115 = vector.broadcast %114 : vector<1x4xf32> to vector<64x4xf32>
    %116 = arith.mulf %111, %115 : vector<64x4xf32>
    %c1_46 = arith.constant 1 : index
    %c0_47 = arith.constant 0 : index
    %c0_48 = arith.constant 0 : index
    %117 = vector.load %arg6[%c1_46, %c0_47, %c0_48] : memref<7x1x4xf32, #tpu.memory_space<vmem>>, vector<1x1x4xf32>
    %118 = vector.shape_cast %117 : vector<1x1x4xf32> to vector<1x4xf32>
    %119 = vector.broadcast %118 : vector<1x4xf32> to vector<64x4xf32>
    %120 = arith.mulf %116, %119 : vector<64x4xf32>
    %c1_49 = arith.constant 1 : index
    %c0_50 = arith.constant 0 : index
    %c0_51 = arith.constant 0 : index
    %121 = vector.load %arg7[%c1_49, %c0_50, %c0_51] : memref<7x1x4xf32, #tpu.memory_space<vmem>>, vector<1x1x4xf32>
    %122 = vector.shape_cast %121 : vector<1x1x4xf32> to vector<1x4xf32>
    %123 = vector.broadcast %122 : vector<1x4xf32> to vector<64x4xf32>
    %124 = arith.addf %120, %123 : vector<64x4xf32>
    %cst_52 = arith.constant 0.000000e+00 : f32
    %125 = vector.broadcast %cst_52 : f32 to vector<64x4xf32>
    %126 = arith.maximumf %124, %125 : vector<64x4xf32>
    %127 = vector.shape_cast %126 : vector<64x4xf32> to vector<2x32x4xf32>
    %128 = arith.truncf %127 : vector<2x32x4xf32> to vector<2x32x4xbf16>
    %129 = vector.extract_strided_slice %29 {offsets = [0, 0, 8], sizes = [2, 32, 4], strides = [1, 1, 1]} : vector<2x32x32xbf16> to vector<2x32x4xbf16>
    %130 = arith.extf %129 : vector<2x32x4xbf16> to vector<2x32x4xf32>
    %131 = arith.addf %127, %130 : vector<2x32x4xf32>
    %132 = arith.truncf %131 : vector<2x32x4xf32> to vector<2x32x4xbf16>
    %cst_53 = arith.constant 0.000000e+00 : bf16
    %133 = vector.broadcast %cst_53 : bf16 to vector<2x2x4xbf16>
    %134 = tpu.concatenate %133, %132, %133 in 1 : vector<2x2x4xbf16>, vector<2x32x4xbf16>, vector<2x2x4xbf16> -> vector<2x36x4xbf16>
    %135 = vector.extract_strided_slice %134 {offsets = [0, 0, 0], sizes = [2, 32, 4], strides = [1, 1, 1]} : vector<2x36x4xbf16> to vector<2x32x4xbf16>
    %136 = vector.extract_strided_slice %134 {offsets = [0, 2, 0], sizes = [2, 32, 4], strides = [1, 1, 1]} : vector<2x36x4xbf16> to vector<2x32x4xbf16>
    %137 = vector.extract_strided_slice %134 {offsets = [0, 4, 0], sizes = [2, 32, 4], strides = [1, 1, 1]} : vector<2x36x4xbf16> to vector<2x32x4xbf16>
    %138 = tpu.concatenate %135, %136, %137 in 2 : vector<2x32x4xbf16>, vector<2x32x4xbf16>, vector<2x32x4xbf16> -> vector<2x32x12xbf16>
    %139 = vector.shape_cast %138 : vector<2x32x12xbf16> to vector<64x12xbf16>
    %c2 = arith.constant 2 : index
    %c0_54 = arith.constant 0 : index
    %c0_55 = arith.constant 0 : index
    %140 = vector.load %arg4[%c2, %c0_54, %c0_55] : memref<7x12x4xbf16, #tpu.memory_space<vmem>>, vector<1x12x4xbf16>
    %141 = vector.shape_cast %140 : vector<1x12x4xbf16> to vector<12x4xbf16>
    %cst_56 = arith.constant dense<0.000000e+00> : vector<64x4xf32>
    %142 = tpu.matmul %139, %141, %cst_56 {dimension_numbers = #tpu.dot_dimension_numbers<[1], [0], [0], [1], [0, 0, 1, 1], [], []>} : vector<64x12xbf16>, vector<12x4xbf16>, vector<64x4xf32> -> vector<64x4xf32>
    %c2_57 = arith.constant 2 : index
    %c0_58 = arith.constant 0 : index
    %c0_59 = arith.constant 0 : index
    %143 = vector.load %arg5[%c2_57, %c0_58, %c0_59] : memref<7x1x4xf32, #tpu.memory_space<vmem>>, vector<1x1x4xf32>
    %144 = vector.shape_cast %143 : vector<1x1x4xf32> to vector<1x4xf32>
    %145 = vector.broadcast %144 : vector<1x4xf32> to vector<64x4xf32>
    %146 = arith.addf %142, %145 : vector<64x4xf32>
    %cst_60 = arith.constant dense<0.000000e+00> : vector<4xf32>
    %147 = vector.multi_reduction <add>, %146, %cst_60 [0] : vector<64x4xf32> to vector<4xf32>
    %148 = vector.shape_cast %147 : vector<4xf32> to vector<1x4xf32>
    %cst_61 = arith.constant 6.400000e+01 : f32
    %149 = vector.broadcast %cst_61 : f32 to vector<1x4xf32>
    %150 = arith.divf %148, %149 : vector<1x4xf32>
    %151 = arith.mulf %146, %146 : vector<64x4xf32>
    %cst_62 = arith.constant dense<0.000000e+00> : vector<4xf32>
    %152 = vector.multi_reduction <add>, %151, %cst_62 [0] : vector<64x4xf32> to vector<4xf32>
    %153 = vector.shape_cast %152 : vector<4xf32> to vector<1x4xf32>
    %cst_63 = arith.constant 6.400000e+01 : f32
    %154 = vector.broadcast %cst_63 : f32 to vector<1x4xf32>
    %155 = arith.divf %153, %154 : vector<1x4xf32>
    %156 = arith.mulf %150, %150 : vector<1x4xf32>
    %157 = arith.subf %155, %156 : vector<1x4xf32>
    %cst_64 = arith.constant 0.000000e+00 : f32
    %158 = vector.broadcast %cst_64 : f32 to vector<1x4xf32>
    %159 = arith.maximumf %157, %158 : vector<1x4xf32>
    %160 = vector.broadcast %150 : vector<1x4xf32> to vector<64x4xf32>
    %161 = arith.subf %146, %160 : vector<64x4xf32>
    %cst_65 = arith.constant 9.99999974E-6 : f32
    %162 = vector.broadcast %cst_65 : f32 to vector<1x4xf32>
    %163 = arith.addf %159, %162 : vector<1x4xf32>
    %164 = math.rsqrt %163 : vector<1x4xf32>
    %165 = vector.broadcast %164 : vector<1x4xf32> to vector<64x4xf32>
    %166 = arith.mulf %161, %165 : vector<64x4xf32>
    %c2_66 = arith.constant 2 : index
    %c0_67 = arith.constant 0 : index
    %c0_68 = arith.constant 0 : index
    %167 = vector.load %arg6[%c2_66, %c0_67, %c0_68] : memref<7x1x4xf32, #tpu.memory_space<vmem>>, vector<1x1x4xf32>
    %168 = vector.shape_cast %167 : vector<1x1x4xf32> to vector<1x4xf32>
    %169 = vector.broadcast %168 : vector<1x4xf32> to vector<64x4xf32>
    %170 = arith.mulf %166, %169 : vector<64x4xf32>
    %c2_69 = arith.constant 2 : index
    %c0_70 = arith.constant 0 : index
    %c0_71 = arith.constant 0 : index
    %171 = vector.load %arg7[%c2_69, %c0_70, %c0_71] : memref<7x1x4xf32, #tpu.memory_space<vmem>>, vector<1x1x4xf32>
    %172 = vector.shape_cast %171 : vector<1x1x4xf32> to vector<1x4xf32>
    %173 = vector.broadcast %172 : vector<1x4xf32> to vector<64x4xf32>
    %174 = arith.addf %170, %173 : vector<64x4xf32>
    %cst_72 = arith.constant 0.000000e+00 : f32
    %175 = vector.broadcast %cst_72 : f32 to vector<64x4xf32>
    %176 = arith.maximumf %174, %175 : vector<64x4xf32>
    %177 = vector.shape_cast %176 : vector<64x4xf32> to vector<2x32x4xf32>
    %178 = arith.truncf %177 : vector<2x32x4xf32> to vector<2x32x4xbf16>
    %179 = vector.extract_strided_slice %29 {offsets = [0, 0, 12], sizes = [2, 32, 4], strides = [1, 1, 1]} : vector<2x32x32xbf16> to vector<2x32x4xbf16>
    %180 = arith.extf %179 : vector<2x32x4xbf16> to vector<2x32x4xf32>
    %181 = arith.addf %177, %180 : vector<2x32x4xf32>
    %182 = arith.truncf %181 : vector<2x32x4xf32> to vector<2x32x4xbf16>
    %cst_73 = arith.constant 0.000000e+00 : bf16
    %183 = vector.broadcast %cst_73 : bf16 to vector<2x2x4xbf16>
    %184 = tpu.concatenate %183, %182, %183 in 1 : vector<2x2x4xbf16>, vector<2x32x4xbf16>, vector<2x2x4xbf16> -> vector<2x36x4xbf16>
    %185 = vector.extract_strided_slice %184 {offsets = [0, 0, 0], sizes = [2, 32, 4], strides = [1, 1, 1]} : vector<2x36x4xbf16> to vector<2x32x4xbf16>
    %186 = vector.extract_strided_slice %184 {offsets = [0, 2, 0], sizes = [2, 32, 4], strides = [1, 1, 1]} : vector<2x36x4xbf16> to vector<2x32x4xbf16>
    %187 = vector.extract_strided_slice %184 {offsets = [0, 4, 0], sizes = [2, 32, 4], strides = [1, 1, 1]} : vector<2x36x4xbf16> to vector<2x32x4xbf16>
    %188 = tpu.concatenate %185, %186, %187 in 2 : vector<2x32x4xbf16>, vector<2x32x4xbf16>, vector<2x32x4xbf16> -> vector<2x32x12xbf16>
    %189 = vector.shape_cast %188 : vector<2x32x12xbf16> to vector<64x12xbf16>
    %c3 = arith.constant 3 : index
    %c0_74 = arith.constant 0 : index
    %c0_75 = arith.constant 0 : index
    %190 = vector.load %arg4[%c3, %c0_74, %c0_75] : memref<7x12x4xbf16, #tpu.memory_space<vmem>>, vector<1x12x4xbf16>
    %191 = vector.shape_cast %190 : vector<1x12x4xbf16> to vector<12x4xbf16>
    %cst_76 = arith.constant dense<0.000000e+00> : vector<64x4xf32>
    %192 = tpu.matmul %189, %191, %cst_76 {dimension_numbers = #tpu.dot_dimension_numbers<[1], [0], [0], [1], [0, 0, 1, 1], [], []>} : vector<64x12xbf16>, vector<12x4xbf16>, vector<64x4xf32> -> vector<64x4xf32>
    %c3_77 = arith.constant 3 : index
    %c0_78 = arith.constant 0 : index
    %c0_79 = arith.constant 0 : index
    %193 = vector.load %arg5[%c3_77, %c0_78, %c0_79] : memref<7x1x4xf32, #tpu.memory_space<vmem>>, vector<1x1x4xf32>
    %194 = vector.shape_cast %193 : vector<1x1x4xf32> to vector<1x4xf32>
    %195 = vector.broadcast %194 : vector<1x4xf32> to vector<64x4xf32>
    %196 = arith.addf %192, %195 : vector<64x4xf32>
    %cst_80 = arith.constant dense<0.000000e+00> : vector<4xf32>
    %197 = vector.multi_reduction <add>, %196, %cst_80 [0] : vector<64x4xf32> to vector<4xf32>
    %198 = vector.shape_cast %197 : vector<4xf32> to vector<1x4xf32>
    %cst_81 = arith.constant 6.400000e+01 : f32
    %199 = vector.broadcast %cst_81 : f32 to vector<1x4xf32>
    %200 = arith.divf %198, %199 : vector<1x4xf32>
    %201 = arith.mulf %196, %196 : vector<64x4xf32>
    %cst_82 = arith.constant dense<0.000000e+00> : vector<4xf32>
    %202 = vector.multi_reduction <add>, %201, %cst_82 [0] : vector<64x4xf32> to vector<4xf32>
    %203 = vector.shape_cast %202 : vector<4xf32> to vector<1x4xf32>
    %cst_83 = arith.constant 6.400000e+01 : f32
    %204 = vector.broadcast %cst_83 : f32 to vector<1x4xf32>
    %205 = arith.divf %203, %204 : vector<1x4xf32>
    %206 = arith.mulf %200, %200 : vector<1x4xf32>
    %207 = arith.subf %205, %206 : vector<1x4xf32>
    %cst_84 = arith.constant 0.000000e+00 : f32
    %208 = vector.broadcast %cst_84 : f32 to vector<1x4xf32>
    %209 = arith.maximumf %207, %208 : vector<1x4xf32>
    %210 = vector.broadcast %200 : vector<1x4xf32> to vector<64x4xf32>
    %211 = arith.subf %196, %210 : vector<64x4xf32>
    %cst_85 = arith.constant 9.99999974E-6 : f32
    %212 = vector.broadcast %cst_85 : f32 to vector<1x4xf32>
    %213 = arith.addf %209, %212 : vector<1x4xf32>
    %214 = math.rsqrt %213 : vector<1x4xf32>
    %215 = vector.broadcast %214 : vector<1x4xf32> to vector<64x4xf32>
    %216 = arith.mulf %211, %215 : vector<64x4xf32>
    %c3_86 = arith.constant 3 : index
    %c0_87 = arith.constant 0 : index
    %c0_88 = arith.constant 0 : index
    %217 = vector.load %arg6[%c3_86, %c0_87, %c0_88] : memref<7x1x4xf32, #tpu.memory_space<vmem>>, vector<1x1x4xf32>
    %218 = vector.shape_cast %217 : vector<1x1x4xf32> to vector<1x4xf32>
    %219 = vector.broadcast %218 : vector<1x4xf32> to vector<64x4xf32>
    %220 = arith.mulf %216, %219 : vector<64x4xf32>
    %c3_89 = arith.constant 3 : index
    %c0_90 = arith.constant 0 : index
    %c0_91 = arith.constant 0 : index
    %221 = vector.load %arg7[%c3_89, %c0_90, %c0_91] : memref<7x1x4xf32, #tpu.memory_space<vmem>>, vector<1x1x4xf32>
    %222 = vector.shape_cast %221 : vector<1x1x4xf32> to vector<1x4xf32>
    %223 = vector.broadcast %222 : vector<1x4xf32> to vector<64x4xf32>
    %224 = arith.addf %220, %223 : vector<64x4xf32>
    %cst_92 = arith.constant 0.000000e+00 : f32
    %225 = vector.broadcast %cst_92 : f32 to vector<64x4xf32>
    %226 = arith.maximumf %224, %225 : vector<64x4xf32>
    %227 = vector.shape_cast %226 : vector<64x4xf32> to vector<2x32x4xf32>
    %228 = arith.truncf %227 : vector<2x32x4xf32> to vector<2x32x4xbf16>
    %229 = vector.extract_strided_slice %29 {offsets = [0, 0, 16], sizes = [2, 32, 4], strides = [1, 1, 1]} : vector<2x32x32xbf16> to vector<2x32x4xbf16>
    %230 = arith.extf %229 : vector<2x32x4xbf16> to vector<2x32x4xf32>
    %231 = arith.addf %227, %230 : vector<2x32x4xf32>
    %232 = arith.truncf %231 : vector<2x32x4xf32> to vector<2x32x4xbf16>
    %cst_93 = arith.constant 0.000000e+00 : bf16
    %233 = vector.broadcast %cst_93 : bf16 to vector<2x2x4xbf16>
    %234 = tpu.concatenate %233, %232, %233 in 1 : vector<2x2x4xbf16>, vector<2x32x4xbf16>, vector<2x2x4xbf16> -> vector<2x36x4xbf16>
    %235 = vector.extract_strided_slice %234 {offsets = [0, 0, 0], sizes = [2, 32, 4], strides = [1, 1, 1]} : vector<2x36x4xbf16> to vector<2x32x4xbf16>
    %236 = vector.extract_strided_slice %234 {offsets = [0, 2, 0], sizes = [2, 32, 4], strides = [1, 1, 1]} : vector<2x36x4xbf16> to vector<2x32x4xbf16>
    %237 = vector.extract_strided_slice %234 {offsets = [0, 4, 0], sizes = [2, 32, 4], strides = [1, 1, 1]} : vector<2x36x4xbf16> to vector<2x32x4xbf16>
    %238 = tpu.concatenate %235, %236, %237 in 2 : vector<2x32x4xbf16>, vector<2x32x4xbf16>, vector<2x32x4xbf16> -> vector<2x32x12xbf16>
    %239 = vector.shape_cast %238 : vector<2x32x12xbf16> to vector<64x12xbf16>
    %c4 = arith.constant 4 : index
    %c0_94 = arith.constant 0 : index
    %c0_95 = arith.constant 0 : index
    %240 = vector.load %arg4[%c4, %c0_94, %c0_95] : memref<7x12x4xbf16, #tpu.memory_space<vmem>>, vector<1x12x4xbf16>
    %241 = vector.shape_cast %240 : vector<1x12x4xbf16> to vector<12x4xbf16>
    %cst_96 = arith.constant dense<0.000000e+00> : vector<64x4xf32>
    %242 = tpu.matmul %239, %241, %cst_96 {dimension_numbers = #tpu.dot_dimension_numbers<[1], [0], [0], [1], [0, 0, 1, 1], [], []>} : vector<64x12xbf16>, vector<12x4xbf16>, vector<64x4xf32> -> vector<64x4xf32>
    %c4_97 = arith.constant 4 : index
    %c0_98 = arith.constant 0 : index
    %c0_99 = arith.constant 0 : index
    %243 = vector.load %arg5[%c4_97, %c0_98, %c0_99] : memref<7x1x4xf32, #tpu.memory_space<vmem>>, vector<1x1x4xf32>
    %244 = vector.shape_cast %243 : vector<1x1x4xf32> to vector<1x4xf32>
    %245 = vector.broadcast %244 : vector<1x4xf32> to vector<64x4xf32>
    %246 = arith.addf %242, %245 : vector<64x4xf32>
    %cst_100 = arith.constant dense<0.000000e+00> : vector<4xf32>
    %247 = vector.multi_reduction <add>, %246, %cst_100 [0] : vector<64x4xf32> to vector<4xf32>
    %248 = vector.shape_cast %247 : vector<4xf32> to vector<1x4xf32>
    %cst_101 = arith.constant 6.400000e+01 : f32
    %249 = vector.broadcast %cst_101 : f32 to vector<1x4xf32>
    %250 = arith.divf %248, %249 : vector<1x4xf32>
    %251 = arith.mulf %246, %246 : vector<64x4xf32>
    %cst_102 = arith.constant dense<0.000000e+00> : vector<4xf32>
    %252 = vector.multi_reduction <add>, %251, %cst_102 [0] : vector<64x4xf32> to vector<4xf32>
    %253 = vector.shape_cast %252 : vector<4xf32> to vector<1x4xf32>
    %cst_103 = arith.constant 6.400000e+01 : f32
    %254 = vector.broadcast %cst_103 : f32 to vector<1x4xf32>
    %255 = arith.divf %253, %254 : vector<1x4xf32>
    %256 = arith.mulf %250, %250 : vector<1x4xf32>
    %257 = arith.subf %255, %256 : vector<1x4xf32>
    %cst_104 = arith.constant 0.000000e+00 : f32
    %258 = vector.broadcast %cst_104 : f32 to vector<1x4xf32>
    %259 = arith.maximumf %257, %258 : vector<1x4xf32>
    %260 = vector.broadcast %250 : vector<1x4xf32> to vector<64x4xf32>
    %261 = arith.subf %246, %260 : vector<64x4xf32>
    %cst_105 = arith.constant 9.99999974E-6 : f32
    %262 = vector.broadcast %cst_105 : f32 to vector<1x4xf32>
    %263 = arith.addf %259, %262 : vector<1x4xf32>
    %264 = math.rsqrt %263 : vector<1x4xf32>
    %265 = vector.broadcast %264 : vector<1x4xf32> to vector<64x4xf32>
    %266 = arith.mulf %261, %265 : vector<64x4xf32>
    %c4_106 = arith.constant 4 : index
    %c0_107 = arith.constant 0 : index
    %c0_108 = arith.constant 0 : index
    %267 = vector.load %arg6[%c4_106, %c0_107, %c0_108] : memref<7x1x4xf32, #tpu.memory_space<vmem>>, vector<1x1x4xf32>
    %268 = vector.shape_cast %267 : vector<1x1x4xf32> to vector<1x4xf32>
    %269 = vector.broadcast %268 : vector<1x4xf32> to vector<64x4xf32>
    %270 = arith.mulf %266, %269 : vector<64x4xf32>
    %c4_109 = arith.constant 4 : index
    %c0_110 = arith.constant 0 : index
    %c0_111 = arith.constant 0 : index
    %271 = vector.load %arg7[%c4_109, %c0_110, %c0_111] : memref<7x1x4xf32, #tpu.memory_space<vmem>>, vector<1x1x4xf32>
    %272 = vector.shape_cast %271 : vector<1x1x4xf32> to vector<1x4xf32>
    %273 = vector.broadcast %272 : vector<1x4xf32> to vector<64x4xf32>
    %274 = arith.addf %270, %273 : vector<64x4xf32>
    %cst_112 = arith.constant 0.000000e+00 : f32
    %275 = vector.broadcast %cst_112 : f32 to vector<64x4xf32>
    %276 = arith.maximumf %274, %275 : vector<64x4xf32>
    %277 = vector.shape_cast %276 : vector<64x4xf32> to vector<2x32x4xf32>
    %278 = arith.truncf %277 : vector<2x32x4xf32> to vector<2x32x4xbf16>
    %279 = vector.extract_strided_slice %29 {offsets = [0, 0, 20], sizes = [2, 32, 4], strides = [1, 1, 1]} : vector<2x32x32xbf16> to vector<2x32x4xbf16>
    %280 = arith.extf %279 : vector<2x32x4xbf16> to vector<2x32x4xf32>
    %281 = arith.addf %277, %280 : vector<2x32x4xf32>
    %282 = arith.truncf %281 : vector<2x32x4xf32> to vector<2x32x4xbf16>
    %cst_113 = arith.constant 0.000000e+00 : bf16
    %283 = vector.broadcast %cst_113 : bf16 to vector<2x2x4xbf16>
    %284 = tpu.concatenate %283, %282, %283 in 1 : vector<2x2x4xbf16>, vector<2x32x4xbf16>, vector<2x2x4xbf16> -> vector<2x36x4xbf16>
    %285 = vector.extract_strided_slice %284 {offsets = [0, 0, 0], sizes = [2, 32, 4], strides = [1, 1, 1]} : vector<2x36x4xbf16> to vector<2x32x4xbf16>
    %286 = vector.extract_strided_slice %284 {offsets = [0, 2, 0], sizes = [2, 32, 4], strides = [1, 1, 1]} : vector<2x36x4xbf16> to vector<2x32x4xbf16>
    %287 = vector.extract_strided_slice %284 {offsets = [0, 4, 0], sizes = [2, 32, 4], strides = [1, 1, 1]} : vector<2x36x4xbf16> to vector<2x32x4xbf16>
    %288 = tpu.concatenate %285, %286, %287 in 2 : vector<2x32x4xbf16>, vector<2x32x4xbf16>, vector<2x32x4xbf16> -> vector<2x32x12xbf16>
    %289 = vector.shape_cast %288 : vector<2x32x12xbf16> to vector<64x12xbf16>
    %c5 = arith.constant 5 : index
    %c0_114 = arith.constant 0 : index
    %c0_115 = arith.constant 0 : index
    %290 = vector.load %arg4[%c5, %c0_114, %c0_115] : memref<7x12x4xbf16, #tpu.memory_space<vmem>>, vector<1x12x4xbf16>
    %291 = vector.shape_cast %290 : vector<1x12x4xbf16> to vector<12x4xbf16>
    %cst_116 = arith.constant dense<0.000000e+00> : vector<64x4xf32>
    %292 = tpu.matmul %289, %291, %cst_116 {dimension_numbers = #tpu.dot_dimension_numbers<[1], [0], [0], [1], [0, 0, 1, 1], [], []>} : vector<64x12xbf16>, vector<12x4xbf16>, vector<64x4xf32> -> vector<64x4xf32>
    %c5_117 = arith.constant 5 : index
    %c0_118 = arith.constant 0 : index
    %c0_119 = arith.constant 0 : index
    %293 = vector.load %arg5[%c5_117, %c0_118, %c0_119] : memref<7x1x4xf32, #tpu.memory_space<vmem>>, vector<1x1x4xf32>
    %294 = vector.shape_cast %293 : vector<1x1x4xf32> to vector<1x4xf32>
    %295 = vector.broadcast %294 : vector<1x4xf32> to vector<64x4xf32>
    %296 = arith.addf %292, %295 : vector<64x4xf32>
    %cst_120 = arith.constant dense<0.000000e+00> : vector<4xf32>
    %297 = vector.multi_reduction <add>, %296, %cst_120 [0] : vector<64x4xf32> to vector<4xf32>
    %298 = vector.shape_cast %297 : vector<4xf32> to vector<1x4xf32>
    %cst_121 = arith.constant 6.400000e+01 : f32
    %299 = vector.broadcast %cst_121 : f32 to vector<1x4xf32>
    %300 = arith.divf %298, %299 : vector<1x4xf32>
    %301 = arith.mulf %296, %296 : vector<64x4xf32>
    %cst_122 = arith.constant dense<0.000000e+00> : vector<4xf32>
    %302 = vector.multi_reduction <add>, %301, %cst_122 [0] : vector<64x4xf32> to vector<4xf32>
    %303 = vector.shape_cast %302 : vector<4xf32> to vector<1x4xf32>
    %cst_123 = arith.constant 6.400000e+01 : f32
    %304 = vector.broadcast %cst_123 : f32 to vector<1x4xf32>
    %305 = arith.divf %303, %304 : vector<1x4xf32>
    %306 = arith.mulf %300, %300 : vector<1x4xf32>
    %307 = arith.subf %305, %306 : vector<1x4xf32>
    %cst_124 = arith.constant 0.000000e+00 : f32
    %308 = vector.broadcast %cst_124 : f32 to vector<1x4xf32>
    %309 = arith.maximumf %307, %308 : vector<1x4xf32>
    %310 = vector.broadcast %300 : vector<1x4xf32> to vector<64x4xf32>
    %311 = arith.subf %296, %310 : vector<64x4xf32>
    %cst_125 = arith.constant 9.99999974E-6 : f32
    %312 = vector.broadcast %cst_125 : f32 to vector<1x4xf32>
    %313 = arith.addf %309, %312 : vector<1x4xf32>
    %314 = math.rsqrt %313 : vector<1x4xf32>
    %315 = vector.broadcast %314 : vector<1x4xf32> to vector<64x4xf32>
    %316 = arith.mulf %311, %315 : vector<64x4xf32>
    %c5_126 = arith.constant 5 : index
    %c0_127 = arith.constant 0 : index
    %c0_128 = arith.constant 0 : index
    %317 = vector.load %arg6[%c5_126, %c0_127, %c0_128] : memref<7x1x4xf32, #tpu.memory_space<vmem>>, vector<1x1x4xf32>
    %318 = vector.shape_cast %317 : vector<1x1x4xf32> to vector<1x4xf32>
    %319 = vector.broadcast %318 : vector<1x4xf32> to vector<64x4xf32>
    %320 = arith.mulf %316, %319 : vector<64x4xf32>
    %c5_129 = arith.constant 5 : index
    %c0_130 = arith.constant 0 : index
    %c0_131 = arith.constant 0 : index
    %321 = vector.load %arg7[%c5_129, %c0_130, %c0_131] : memref<7x1x4xf32, #tpu.memory_space<vmem>>, vector<1x1x4xf32>
    %322 = vector.shape_cast %321 : vector<1x1x4xf32> to vector<1x4xf32>
    %323 = vector.broadcast %322 : vector<1x4xf32> to vector<64x4xf32>
    %324 = arith.addf %320, %323 : vector<64x4xf32>
    %cst_132 = arith.constant 0.000000e+00 : f32
    %325 = vector.broadcast %cst_132 : f32 to vector<64x4xf32>
    %326 = arith.maximumf %324, %325 : vector<64x4xf32>
    %327 = vector.shape_cast %326 : vector<64x4xf32> to vector<2x32x4xf32>
    %328 = arith.truncf %327 : vector<2x32x4xf32> to vector<2x32x4xbf16>
    %329 = vector.extract_strided_slice %29 {offsets = [0, 0, 24], sizes = [2, 32, 4], strides = [1, 1, 1]} : vector<2x32x32xbf16> to vector<2x32x4xbf16>
    %330 = arith.extf %329 : vector<2x32x4xbf16> to vector<2x32x4xf32>
    %331 = arith.addf %327, %330 : vector<2x32x4xf32>
    %332 = arith.truncf %331 : vector<2x32x4xf32> to vector<2x32x4xbf16>
    %cst_133 = arith.constant 0.000000e+00 : bf16
    %333 = vector.broadcast %cst_133 : bf16 to vector<2x2x4xbf16>
    %334 = tpu.concatenate %333, %332, %333 in 1 : vector<2x2x4xbf16>, vector<2x32x4xbf16>, vector<2x2x4xbf16> -> vector<2x36x4xbf16>
    %335 = vector.extract_strided_slice %334 {offsets = [0, 0, 0], sizes = [2, 32, 4], strides = [1, 1, 1]} : vector<2x36x4xbf16> to vector<2x32x4xbf16>
    %336 = vector.extract_strided_slice %334 {offsets = [0, 2, 0], sizes = [2, 32, 4], strides = [1, 1, 1]} : vector<2x36x4xbf16> to vector<2x32x4xbf16>
    %337 = vector.extract_strided_slice %334 {offsets = [0, 4, 0], sizes = [2, 32, 4], strides = [1, 1, 1]} : vector<2x36x4xbf16> to vector<2x32x4xbf16>
    %338 = tpu.concatenate %335, %336, %337 in 2 : vector<2x32x4xbf16>, vector<2x32x4xbf16>, vector<2x32x4xbf16> -> vector<2x32x12xbf16>
    %339 = vector.shape_cast %338 : vector<2x32x12xbf16> to vector<64x12xbf16>
    %c6 = arith.constant 6 : index
    %c0_134 = arith.constant 0 : index
    %c0_135 = arith.constant 0 : index
    %340 = vector.load %arg4[%c6, %c0_134, %c0_135] : memref<7x12x4xbf16, #tpu.memory_space<vmem>>, vector<1x12x4xbf16>
    %341 = vector.shape_cast %340 : vector<1x12x4xbf16> to vector<12x4xbf16>
    %cst_136 = arith.constant dense<0.000000e+00> : vector<64x4xf32>
    %342 = tpu.matmul %339, %341, %cst_136 {dimension_numbers = #tpu.dot_dimension_numbers<[1], [0], [0], [1], [0, 0, 1, 1], [], []>} : vector<64x12xbf16>, vector<12x4xbf16>, vector<64x4xf32> -> vector<64x4xf32>
    %c6_137 = arith.constant 6 : index
    %c0_138 = arith.constant 0 : index
    %c0_139 = arith.constant 0 : index
    %343 = vector.load %arg5[%c6_137, %c0_138, %c0_139] : memref<7x1x4xf32, #tpu.memory_space<vmem>>, vector<1x1x4xf32>
    %344 = vector.shape_cast %343 : vector<1x1x4xf32> to vector<1x4xf32>
    %345 = vector.broadcast %344 : vector<1x4xf32> to vector<64x4xf32>
    %346 = arith.addf %342, %345 : vector<64x4xf32>
    %cst_140 = arith.constant dense<0.000000e+00> : vector<4xf32>
    %347 = vector.multi_reduction <add>, %346, %cst_140 [0] : vector<64x4xf32> to vector<4xf32>
    %348 = vector.shape_cast %347 : vector<4xf32> to vector<1x4xf32>
    %cst_141 = arith.constant 6.400000e+01 : f32
    %349 = vector.broadcast %cst_141 : f32 to vector<1x4xf32>
    %350 = arith.divf %348, %349 : vector<1x4xf32>
    %351 = arith.mulf %346, %346 : vector<64x4xf32>
    %cst_142 = arith.constant dense<0.000000e+00> : vector<4xf32>
    %352 = vector.multi_reduction <add>, %351, %cst_142 [0] : vector<64x4xf32> to vector<4xf32>
    %353 = vector.shape_cast %352 : vector<4xf32> to vector<1x4xf32>
    %cst_143 = arith.constant 6.400000e+01 : f32
    %354 = vector.broadcast %cst_143 : f32 to vector<1x4xf32>
    %355 = arith.divf %353, %354 : vector<1x4xf32>
    %356 = arith.mulf %350, %350 : vector<1x4xf32>
    %357 = arith.subf %355, %356 : vector<1x4xf32>
    %cst_144 = arith.constant 0.000000e+00 : f32
    %358 = vector.broadcast %cst_144 : f32 to vector<1x4xf32>
    %359 = arith.maximumf %357, %358 : vector<1x4xf32>
    %360 = vector.broadcast %350 : vector<1x4xf32> to vector<64x4xf32>
    %361 = arith.subf %346, %360 : vector<64x4xf32>
    %cst_145 = arith.constant 9.99999974E-6 : f32
    %362 = vector.broadcast %cst_145 : f32 to vector<1x4xf32>
    %363 = arith.addf %359, %362 : vector<1x4xf32>
    %364 = math.rsqrt %363 : vector<1x4xf32>
    %365 = vector.broadcast %364 : vector<1x4xf32> to vector<64x4xf32>
    %366 = arith.mulf %361, %365 : vector<64x4xf32>
    %c6_146 = arith.constant 6 : index
    %c0_147 = arith.constant 0 : index
    %c0_148 = arith.constant 0 : index
    %367 = vector.load %arg6[%c6_146, %c0_147, %c0_148] : memref<7x1x4xf32, #tpu.memory_space<vmem>>, vector<1x1x4xf32>
    %368 = vector.shape_cast %367 : vector<1x1x4xf32> to vector<1x4xf32>
    %369 = vector.broadcast %368 : vector<1x4xf32> to vector<64x4xf32>
    %370 = arith.mulf %366, %369 : vector<64x4xf32>
    %c6_149 = arith.constant 6 : index
    %c0_150 = arith.constant 0 : index
    %c0_151 = arith.constant 0 : index
    %371 = vector.load %arg7[%c6_149, %c0_150, %c0_151] : memref<7x1x4xf32, #tpu.memory_space<vmem>>, vector<1x1x4xf32>
    %372 = vector.shape_cast %371 : vector<1x1x4xf32> to vector<1x4xf32>
    %373 = vector.broadcast %372 : vector<1x4xf32> to vector<64x4xf32>
    %374 = arith.addf %370, %373 : vector<64x4xf32>
    %cst_152 = arith.constant 0.000000e+00 : f32
    %375 = vector.broadcast %cst_152 : f32 to vector<64x4xf32>
    %376 = arith.maximumf %374, %375 : vector<64x4xf32>
    %377 = vector.shape_cast %376 : vector<64x4xf32> to vector<2x32x4xf32>
    %378 = arith.truncf %377 : vector<2x32x4xf32> to vector<2x32x4xbf16>
    %379 = vector.extract_strided_slice %29 {offsets = [0, 0, 28], sizes = [2, 32, 4], strides = [1, 1, 1]} : vector<2x32x32xbf16> to vector<2x32x4xbf16>
    %380 = tpu.concatenate %78, %128, %178, %228, %278, %328, %378, %379 in 2 : vector<2x32x4xbf16>, vector<2x32x4xbf16>, vector<2x32x4xbf16>, vector<2x32x4xbf16>, vector<2x32x4xbf16>, vector<2x32x4xbf16>, vector<2x32x4xbf16>, vector<2x32x4xbf16> -> vector<2x32x32xbf16>
    %c0_153 = arith.constant 0 : index
    %c0_154 = arith.constant 0 : index
    %c0_155 = arith.constant 0 : index
    %381 = vector.load %arg8[%c0_153, %c0_154, %c0_155] : memref<2x32x32xbf16, #tpu.memory_space<vmem>>, vector<2x32x32xbf16>
    tpu.vector_store %arg8[%c0_153, %c0_154, %c0_155], %380 {strides = array<i32>} : memref<2x32x32xbf16, #tpu.memory_space<vmem>>, vector<2x32x32xbf16>,
    return
  }
}

module attributes {stable_mosaic.version = 11 : i64} {
  func.func @kernel(%arg0: i32, %arg1: memref<1x32x32xbf16, #tpu.memory_space<vmem>>, %arg2: memref<2x32xf32, #tpu.memory_space<vmem>>, %arg3: memref<1x32xf32, #tpu.memory_space<vmem>>, %arg4: memref<1x32xf32, #tpu.memory_space<vmem>>, %arg5: memref<32x4xbf16, #tpu.memory_space<vmem>>, %arg6: memref<4x32xbf16, #tpu.memory_space<vmem>>, %arg7: memref<1x32x32xbf16, #tpu.memory_space<vmem>>, %arg8: memref<1x32x32xbf16, #tpu.memory_space<vmem>>) attributes {dimension_semantics = [#tpu.dimension_semantics<parallel>], iteration_bounds = array<i64: 2>, scalar_prefetch = 0 : i64, scratch_operands = 0 : i64, tpu.core_type = #tpu.core_type<tc>, window_params = [{transform_indices = @transform_0, window_bounds = array<i64: 1, 32, 32>}, {pipeline_mode = #tpu.pipeline_mode<synchronous>, transform_indices = @transform_1, window_bounds = array<i64: 2, 32>}, {pipeline_mode = #tpu.pipeline_mode<synchronous>, transform_indices = @transform_2, window_bounds = array<i64: 1, 32>}, {pipeline_mode = #tpu.pipeline_mode<synchronous>, transform_indices = @transform_3, window_bounds = array<i64: 1, 32>}, {pipeline_mode = #tpu.pipeline_mode<synchronous>, transform_indices = @transform_4, window_bounds = array<i64: 32, 4>}, {pipeline_mode = #tpu.pipeline_mode<synchronous>, transform_indices = @transform_5, window_bounds = array<i64: 4, 32>}, {transform_indices = @transform_6, window_bounds = array<i64: 1, 32, 32>}, {transform_indices = @transform_7, window_bounds = array<i64: 1, 32, 32>}]} {
    %c0 = arith.constant 0 : index
    %c0_0 = arith.constant 0 : index
    %0 = vector.load %arg2[%c0, %c0_0] : memref<2x32xf32, #tpu.memory_space<vmem>>, vector<2x32xf32>
    %c0_1 = arith.constant 0 : index
    %c0_2 = arith.constant 0 : index
    %1 = vector.load %arg3[%c0_1, %c0_2] : memref<1x32xf32, #tpu.memory_space<vmem>>, vector<1x32xf32>
    %c0_3 = arith.constant 0 : index
    %c0_4 = arith.constant 0 : index
    %2 = vector.load %arg4[%c0_3, %c0_4] : memref<1x32xf32, #tpu.memory_space<vmem>>, vector<1x32xf32>
    %3 = vector.extract_strided_slice %0 {offsets = [0, 0], sizes = [1, 32], strides = [1, 1]} : vector<2x32xf32> to vector<1x32xf32>
    %cst = arith.constant 1.562500e-02 : f32
    %4 = vector.broadcast %cst : f32 to vector<1x32xf32>
    %5 = arith.mulf %3, %4 : vector<1x32xf32>
    %6 = vector.extract_strided_slice %0 {offsets = [1, 0], sizes = [1, 32], strides = [1, 1]} : vector<2x32xf32> to vector<1x32xf32>
    %cst_5 = arith.constant 1.562500e-02 : f32
    %7 = vector.broadcast %cst_5 : f32 to vector<1x32xf32>
    %8 = arith.mulf %6, %7 : vector<1x32xf32>
    %9 = arith.mulf %5, %5 : vector<1x32xf32>
    %10 = arith.subf %8, %9 : vector<1x32xf32>
    %cst_6 = arith.constant 0.000000e+00 : f32
    %11 = vector.broadcast %cst_6 : f32 to vector<1x32xf32>
    %12 = arith.maximumf %10, %11 : vector<1x32xf32>
    %cst_7 = arith.constant 9.99999974E-6 : f32
    %13 = vector.broadcast %cst_7 : f32 to vector<1x32xf32>
    %14 = arith.addf %12, %13 : vector<1x32xf32>
    %15 = math.rsqrt %14 : vector<1x32xf32>
    %16 = arith.mulf %1, %15 : vector<1x32xf32>
    %17 = arith.mulf %5, %16 : vector<1x32xf32>
    %18 = arith.subf %2, %17 : vector<1x32xf32>
    %c0_8 = arith.constant 0 : index
    %c0_9 = arith.constant 0 : index
    %c0_10 = arith.constant 0 : index
    %19 = vector.load %arg1[%c0_8, %c0_9, %c0_10] : memref<1x32x32xbf16, #tpu.memory_space<vmem>>, vector<1x32x32xbf16>
    %20 = vector.shape_cast %19 : vector<1x32x32xbf16> to vector<32x32xbf16>
    %21 = arith.extf %20 : vector<32x32xbf16> to vector<32x32xf32>
    %22 = vector.broadcast %16 : vector<1x32xf32> to vector<32x32xf32>
    %23 = arith.mulf %21, %22 : vector<32x32xf32>
    %24 = vector.broadcast %18 : vector<1x32xf32> to vector<32x32xf32>
    %25 = arith.addf %23, %24 : vector<32x32xf32>
    %cst_11 = arith.constant dense<0.000000e+00> : vector<32xf32>
    %26 = vector.multi_reduction <add>, %25, %cst_11 [0] : vector<32x32xf32> to vector<32xf32>
    %27 = vector.shape_cast %26 : vector<32xf32> to vector<1x32xf32>
    %cst_12 = arith.constant 3.200000e+01 : f32
    %28 = vector.broadcast %cst_12 : f32 to vector<1x32xf32>
    %29 = arith.divf %27, %28 : vector<1x32xf32>
    %30 = arith.truncf %29 : vector<1x32xf32> to vector<1x32xbf16>
    %c0_13 = arith.constant 0 : index
    %c0_14 = arith.constant 0 : index
    %31 = vector.load %arg5[%c0_13, %c0_14] : memref<32x4xbf16, #tpu.memory_space<vmem>>, vector<32x4xbf16>
    %cst_15 = arith.constant dense<0.000000e+00> : vector<1x4xf32>
    %32 = tpu.matmul %30, %31, %cst_15 {dimension_numbers = #tpu.dot_dimension_numbers<[1], [0], [0], [1], [0, 0, 1, 1], [], []>} : vector<1x32xbf16>, vector<32x4xbf16>, vector<1x4xf32> -> vector<1x4xf32>
    %cst_16 = arith.constant 0.000000e+00 : f32
    %33 = vector.broadcast %cst_16 : f32 to vector<1x4xf32>
    %34 = arith.maximumf %32, %33 : vector<1x4xf32>
    %35 = arith.truncf %34 : vector<1x4xf32> to vector<1x4xbf16>
    %c0_17 = arith.constant 0 : index
    %c0_18 = arith.constant 0 : index
    %36 = vector.load %arg6[%c0_17, %c0_18] : memref<4x32xbf16, #tpu.memory_space<vmem>>, vector<4x32xbf16>
    %cst_19 = arith.constant dense<0.000000e+00> : vector<1x32xf32>
    %37 = tpu.matmul %35, %36, %cst_19 {dimension_numbers = #tpu.dot_dimension_numbers<[1], [0], [0], [1], [0, 0, 1, 1], [], []>} : vector<1x4xbf16>, vector<4x32xbf16>, vector<1x32xf32> -> vector<1x32xf32>
    %cst_20 = arith.constant 0.000000e+00 : f32
    %38 = vector.broadcast %cst_20 : f32 to vector<1x32xf32>
    %39 = arith.subf %38, %37 : vector<1x32xf32>
    %40 = math.exp %39 : vector<1x32xf32>
    %cst_21 = arith.constant 1.000000e+00 : f32
    %41 = vector.broadcast %cst_21 : f32 to vector<1x32xf32>
    %42 = arith.addf %41, %40 : vector<1x32xf32>
    %cst_22 = arith.constant 1.000000e+00 : f32
    %43 = vector.broadcast %cst_22 : f32 to vector<1x32xf32>
    %44 = arith.divf %43, %42 : vector<1x32xf32>
    %45 = vector.broadcast %44 : vector<1x32xf32> to vector<32x32xf32>
    %46 = arith.mulf %25, %45 : vector<32x32xf32>
    %c0_23 = arith.constant 0 : index
    %c0_24 = arith.constant 0 : index
    %c0_25 = arith.constant 0 : index
    %47 = vector.load %arg7[%c0_23, %c0_24, %c0_25] : memref<1x32x32xbf16, #tpu.memory_space<vmem>>, vector<1x32x32xbf16>
    %48 = vector.shape_cast %47 : vector<1x32x32xbf16> to vector<32x32xbf16>
    %49 = arith.extf %48 : vector<32x32xbf16> to vector<32x32xf32>
    %50 = arith.addf %46, %49 : vector<32x32xf32>
    %cst_26 = arith.constant 0.000000e+00 : f32
    %51 = vector.broadcast %cst_26 : f32 to vector<32x32xf32>
    %52 = arith.maximumf %50, %51 : vector<32x32xf32>
    %53 = arith.truncf %52 : vector<32x32xf32> to vector<32x32xbf16>
    %c0_27 = arith.constant 0 : index
    %c0_28 = arith.constant 0 : index
    %c0_29 = arith.constant 0 : index
    %54 = vector.load %arg8[%c0_27, %c0_28, %c0_29] : memref<1x32x32xbf16, #tpu.memory_space<vmem>>, vector<1x32x32xbf16>
    %55 = vector.shape_cast %54 : vector<1x32x32xbf16> to vector<32x32xbf16>
    %56 = vector.shape_cast %53 : vector<32x32xbf16> to vector<1x32x32xbf16>
    tpu.vector_store %arg8[%c0_27, %c0_28, %c0_29], %56 {strides = array<i32>} : memref<1x32x32xbf16, #tpu.memory_space<vmem>>, vector<1x32x32xbf16>,
    return
  }
  func.func @transform_0(%arg0: i32) -> (i32, i32, i32) {
    %c0_i32 = arith.constant 0 : i32
    %c0_i32_0 = arith.constant 0 : i32
    %c0_i32_1 = arith.constant 0 : i32
    return %arg0, %c0_i32, %c0_i32_0 : i32, i32, i32
  }
  func.func @transform_1(%arg0: i32) -> (i32, i32) {
    %c0_i32 = arith.constant 0 : i32
    %c0_i32_0 = arith.constant 0 : i32
    %c0_i32_1 = arith.constant 0 : i32
    return %c0_i32, %c0_i32_0 : i32, i32
  }
  func.func @transform_2(%arg0: i32) -> (i32, i32) {
    %c0_i32 = arith.constant 0 : i32
    %c0_i32_0 = arith.constant 0 : i32
    %c0_i32_1 = arith.constant 0 : i32
    return %c0_i32, %c0_i32_0 : i32, i32
  }
  func.func @transform_3(%arg0: i32) -> (i32, i32) {
    %c0_i32 = arith.constant 0 : i32
    %c0_i32_0 = arith.constant 0 : i32
    %c0_i32_1 = arith.constant 0 : i32
    return %c0_i32, %c0_i32_0 : i32, i32
  }
  func.func @transform_4(%arg0: i32) -> (i32, i32) {
    %c0_i32 = arith.constant 0 : i32
    %c0_i32_0 = arith.constant 0 : i32
    %c0_i32_1 = arith.constant 0 : i32
    return %c0_i32, %c0_i32_0 : i32, i32
  }
  func.func @transform_5(%arg0: i32) -> (i32, i32) {
    %c0_i32 = arith.constant 0 : i32
    %c0_i32_0 = arith.constant 0 : i32
    %c0_i32_1 = arith.constant 0 : i32
    return %c0_i32, %c0_i32_0 : i32, i32
  }
  func.func @transform_6(%arg0: i32) -> (i32, i32, i32) {
    %c0_i32 = arith.constant 0 : i32
    %c0_i32_0 = arith.constant 0 : i32
    %c0_i32_1 = arith.constant 0 : i32
    return %arg0, %c0_i32, %c0_i32_0 : i32, i32, i32
  }
  func.func @transform_7(%arg0: i32) -> (i32, i32, i32) {
    %c0_i32 = arith.constant 0 : i32
    %c0_i32_0 = arith.constant 0 : i32
    %c0_i32_1 = arith.constant 0 : i32
    return %arg0, %c0_i32, %c0_i32_0 : i32, i32, i32
  }
}

module attributes {stable_mosaic.version = 11 : i64} {
  func.func @kernel(%arg0: i32, %arg1: memref<64x32xbf16, #tpu.memory_space<vmem>>, %arg2: memref<32x16xbf16, #tpu.memory_space<vmem>>, %arg3: memref<1x16xf32, #tpu.memory_space<vmem>>, %arg4: memref<64x16xbf16, #tpu.memory_space<vmem>>, %arg5: memref<1x2x16xf32, #tpu.memory_space<vmem>>) attributes {dimension_semantics = [#tpu.dimension_semantics<parallel>], iteration_bounds = array<i64: 1>, scalar_prefetch = 0 : i64, scratch_operands = 0 : i64, tpu.core_type = #tpu.core_type<tc>, window_params = [{transform_indices = @transform_0, window_bounds = array<i64: 64, 32>}, {pipeline_mode = #tpu.pipeline_mode<synchronous>, transform_indices = @transform_1, window_bounds = array<i64: 32, 16>}, {pipeline_mode = #tpu.pipeline_mode<synchronous>, transform_indices = @transform_2, window_bounds = array<i64: 1, 16>}, {transform_indices = @transform_3, window_bounds = array<i64: 64, 16>}, {transform_indices = @transform_4, window_bounds = array<i64: 1, 2, 16>}]} {
    %c0 = arith.constant 0 : index
    %c0_0 = arith.constant 0 : index
    %0 = vector.load %arg1[%c0, %c0_0] : memref<64x32xbf16, #tpu.memory_space<vmem>>, vector<64x32xbf16>
    %c0_1 = arith.constant 0 : index
    %c0_2 = arith.constant 0 : index
    %1 = vector.load %arg2[%c0_1, %c0_2] : memref<32x16xbf16, #tpu.memory_space<vmem>>, vector<32x16xbf16>
    %cst = arith.constant dense<0.000000e+00> : vector<64x16xf32>
    %2 = tpu.matmul %0, %1, %cst {dimension_numbers = #tpu.dot_dimension_numbers<[1], [0], [0], [1], [0, 0, 1, 1], [], []>} : vector<64x32xbf16>, vector<32x16xbf16>, vector<64x16xf32> -> vector<64x16xf32>
    %c0_3 = arith.constant 0 : index
    %c0_4 = arith.constant 0 : index
    %3 = vector.load %arg3[%c0_3, %c0_4] : memref<1x16xf32, #tpu.memory_space<vmem>>, vector<1x16xf32>
    %4 = vector.broadcast %3 : vector<1x16xf32> to vector<64x16xf32>
    %5 = arith.addf %2, %4 : vector<64x16xf32>
    %cst_5 = arith.constant 0.000000e+00 : f32
    %6 = vector.broadcast %cst_5 : f32 to vector<64x16xf32>
    %7 = arith.maximumf %5, %6 : vector<64x16xf32>
    %8 = arith.truncf %7 : vector<64x16xf32> to vector<64x16xbf16>
    %c0_6 = arith.constant 0 : index
    %c0_7 = arith.constant 0 : index
    %9 = vector.load %arg4[%c0_6, %c0_7] : memref<64x16xbf16, #tpu.memory_space<vmem>>, vector<64x16xbf16>
    tpu.vector_store %arg4[%c0_6, %c0_7], %8 {strides = array<i32>} : memref<64x16xbf16, #tpu.memory_space<vmem>>, vector<64x16xbf16>,
    %cst_8 = arith.constant dense<0.000000e+00> : vector<16xf32>
    %10 = vector.multi_reduction <add>, %7, %cst_8 [0] : vector<64x16xf32> to vector<16xf32>
    %11 = vector.shape_cast %10 : vector<16xf32> to vector<1x16xf32>
    %12 = arith.mulf %7, %7 : vector<64x16xf32>
    %cst_9 = arith.constant dense<0.000000e+00> : vector<16xf32>
    %13 = vector.multi_reduction <add>, %12, %cst_9 [0] : vector<64x16xf32> to vector<16xf32>
    %14 = vector.shape_cast %13 : vector<16xf32> to vector<1x16xf32>
    %15 = tpu.concatenate %11, %14 in 0 : vector<1x16xf32>, vector<1x16xf32> -> vector<2x16xf32>
    %c0_10 = arith.constant 0 : index
    %c0_11 = arith.constant 0 : index
    %c0_12 = arith.constant 0 : index
    %16 = vector.load %arg5[%c0_10, %c0_11, %c0_12] : memref<1x2x16xf32, #tpu.memory_space<vmem>>, vector<1x2x16xf32>
    %17 = vector.shape_cast %16 : vector<1x2x16xf32> to vector<2x16xf32>
    %18 = vector.shape_cast %15 : vector<2x16xf32> to vector<1x2x16xf32>
    tpu.vector_store %arg5[%c0_10, %c0_11, %c0_12], %18 {strides = array<i32>} : memref<1x2x16xf32, #tpu.memory_space<vmem>>, vector<1x2x16xf32>,
    return
  }
  func.func @transform_0(%arg0: i32) -> (i32, i32) {
    %c0_i32 = arith.constant 0 : i32
    %c0_i32_0 = arith.constant 0 : i32
    return %arg0, %c0_i32 : i32, i32
  }
  func.func @transform_1(%arg0: i32) -> (i32, i32) {
    %c0_i32 = arith.constant 0 : i32
    %c0_i32_0 = arith.constant 0 : i32
    %c0_i32_1 = arith.constant 0 : i32
    return %c0_i32, %c0_i32_0 : i32, i32
  }
  func.func @transform_2(%arg0: i32) -> (i32, i32) {
    %c0_i32 = arith.constant 0 : i32
    %c0_i32_0 = arith.constant 0 : i32
    %c0_i32_1 = arith.constant 0 : i32
    return %c0_i32, %c0_i32_0 : i32, i32
  }
  func.func @transform_3(%arg0: i32) -> (i32, i32) {
    %c0_i32 = arith.constant 0 : i32
    %c0_i32_0 = arith.constant 0 : i32
    return %arg0, %c0_i32 : i32, i32
  }
  func.func @transform_4(%arg0: i32) -> (i32, i32, i32) {
    %c0_i32 = arith.constant 0 : i32
    %c0_i32_0 = arith.constant 0 : i32
    %c0_i32_1 = arith.constant 0 : i32
    return %arg0, %c0_i32, %c0_i32_0 : i32, i32, i32
  }
}

module attributes {stable_mosaic.version = 11 : i64} {
  func.func @kernel(%arg0: i32, %arg1: memref<1x32x32xbf16, #tpu.memory_space<vmem>>, %arg2: memref<1x32x16xbf16, #tpu.memory_space<vmem>>, %arg3: memref<2x16xf32, #tpu.memory_space<vmem>>, %arg4: memref<1x16xf32, #tpu.memory_space<vmem>>, %arg5: memref<1x16xf32, #tpu.memory_space<vmem>>, %arg6: memref<16x32xbf16, #tpu.memory_space<vmem>>, %arg7: memref<1x32xf32, #tpu.memory_space<vmem>>, %arg8: memref<1x1x64xf32, #tpu.memory_space<vmem>>) attributes {dimension_semantics = [#tpu.dimension_semantics<parallel>], iteration_bounds = array<i64: 2>, scalar_prefetch = 0 : i64, scratch_operands = 0 : i64, tpu.core_type = #tpu.core_type<tc>, window_params = [{transform_indices = @transform_0, window_bounds = array<i64: 1, 32, 32>}, {transform_indices = @transform_1, window_bounds = array<i64: 1, 32, 16>}, {pipeline_mode = #tpu.pipeline_mode<synchronous>, transform_indices = @transform_2, window_bounds = array<i64: 2, 16>}, {pipeline_mode = #tpu.pipeline_mode<synchronous>, transform_indices = @transform_3, window_bounds = array<i64: 1, 16>}, {pipeline_mode = #tpu.pipeline_mode<synchronous>, transform_indices = @transform_4, window_bounds = array<i64: 1, 16>}, {pipeline_mode = #tpu.pipeline_mode<synchronous>, transform_indices = @transform_5, window_bounds = array<i64: 16, 32>}, {pipeline_mode = #tpu.pipeline_mode<synchronous>, transform_indices = @transform_6, window_bounds = array<i64: 1, 32>}, {transform_indices = @transform_7, window_bounds = array<i64: 1, 1, 64>}]} {
    %c0 = arith.constant 0 : index
    %c0_0 = arith.constant 0 : index
    %c0_1 = arith.constant 0 : index
    %0 = vector.load %arg1[%c0, %c0_0, %c0_1] : memref<1x32x32xbf16, #tpu.memory_space<vmem>>, vector<1x32x32xbf16>
    %1 = vector.shape_cast %0 : vector<1x32x32xbf16> to vector<32x32xbf16>
    %2 = arith.extf %1 : vector<32x32xbf16> to vector<32x32xf32>
    %c0_2 = arith.constant 0 : index
    %c0_3 = arith.constant 0 : index
    %3 = vector.load %arg3[%c0_2, %c0_3] : memref<2x16xf32, #tpu.memory_space<vmem>>, vector<2x16xf32>
    %c0_4 = arith.constant 0 : index
    %c0_5 = arith.constant 0 : index
    %4 = vector.load %arg4[%c0_4, %c0_5] : memref<1x16xf32, #tpu.memory_space<vmem>>, vector<1x16xf32>
    %c0_6 = arith.constant 0 : index
    %c0_7 = arith.constant 0 : index
    %5 = vector.load %arg5[%c0_6, %c0_7] : memref<1x16xf32, #tpu.memory_space<vmem>>, vector<1x16xf32>
    %6 = vector.extract_strided_slice %3 {offsets = [0, 0], sizes = [1, 16], strides = [1, 1]} : vector<2x16xf32> to vector<1x16xf32>
    %cst = arith.constant 1.562500e-02 : f32
    %7 = vector.broadcast %cst : f32 to vector<1x16xf32>
    %8 = arith.mulf %6, %7 : vector<1x16xf32>
    %9 = vector.extract_strided_slice %3 {offsets = [1, 0], sizes = [1, 16], strides = [1, 1]} : vector<2x16xf32> to vector<1x16xf32>
    %cst_8 = arith.constant 1.562500e-02 : f32
    %10 = vector.broadcast %cst_8 : f32 to vector<1x16xf32>
    %11 = arith.mulf %9, %10 : vector<1x16xf32>
    %12 = arith.mulf %8, %8 : vector<1x16xf32>
    %13 = arith.subf %11, %12 : vector<1x16xf32>
    %cst_9 = arith.constant 0.000000e+00 : f32
    %14 = vector.broadcast %cst_9 : f32 to vector<1x16xf32>
    %15 = arith.maximumf %13, %14 : vector<1x16xf32>
    %cst_10 = arith.constant 9.99999974E-6 : f32
    %16 = vector.broadcast %cst_10 : f32 to vector<1x16xf32>
    %17 = arith.addf %15, %16 : vector<1x16xf32>
    %18 = math.rsqrt %17 : vector<1x16xf32>
    %19 = arith.mulf %4, %18 : vector<1x16xf32>
    %20 = arith.mulf %8, %19 : vector<1x16xf32>
    %21 = arith.subf %5, %20 : vector<1x16xf32>
    %c0_11 = arith.constant 0 : index
    %c0_12 = arith.constant 0 : index
    %c0_13 = arith.constant 0 : index
    %22 = vector.load %arg2[%c0_11, %c0_12, %c0_13] : memref<1x32x16xbf16, #tpu.memory_space<vmem>>, vector<1x32x16xbf16>
    %23 = vector.shape_cast %22 : vector<1x32x16xbf16> to vector<32x16xbf16>
    %24 = arith.extf %23 : vector<32x16xbf16> to vector<32x16xf32>
    %25 = vector.broadcast %19 : vector<1x16xf32> to vector<32x16xf32>
    %26 = arith.mulf %24, %25 : vector<32x16xf32>
    %27 = vector.broadcast %21 : vector<1x16xf32> to vector<32x16xf32>
    %28 = arith.addf %26, %27 : vector<32x16xf32>
    %29 = arith.truncf %28 : vector<32x16xf32> to vector<32x16xbf16>
    %c0_14 = arith.constant 0 : index
    %c0_15 = arith.constant 0 : index
    %30 = vector.load %arg6[%c0_14, %c0_15] : memref<16x32xbf16, #tpu.memory_space<vmem>>, vector<16x32xbf16>
    %cst_16 = arith.constant dense<0.000000e+00> : vector<32x32xf32>
    %31 = tpu.matmul %29, %30, %cst_16 {dimension_numbers = #tpu.dot_dimension_numbers<[1], [0], [0], [1], [0, 0, 1, 1], [], []>} : vector<32x16xbf16>, vector<16x32xbf16>, vector<32x32xf32> -> vector<32x32xf32>
    %c0_17 = arith.constant 0 : index
    %c0_18 = arith.constant 0 : index
    %32 = vector.load %arg7[%c0_17, %c0_18] : memref<1x32xf32, #tpu.memory_space<vmem>>, vector<1x32xf32>
    %33 = vector.broadcast %32 : vector<1x32xf32> to vector<32x32xf32>
    %34 = arith.addf %31, %33 : vector<32x32xf32>
    %cst_19 = arith.constant dense<0xFF800000> : vector<32xf32>
    %35 = vector.multi_reduction <maximumf>, %34, %cst_19 [0] : vector<32x32xf32> to vector<32xf32>
    %36 = vector.shape_cast %35 : vector<32xf32> to vector<1x32xf32>
    %37 = vector.broadcast %36 : vector<1x32xf32> to vector<32x32xf32>
    %38 = arith.subf %34, %37 : vector<32x32xf32>
    %39 = math.exp %38 : vector<32x32xf32>
    %cst_20 = arith.constant dense<0.000000e+00> : vector<32xf32>
    %40 = vector.multi_reduction <add>, %39, %cst_20 [0] : vector<32x32xf32> to vector<32xf32>
    %41 = vector.shape_cast %40 : vector<32xf32> to vector<1x32xf32>
    %42 = tpu.reciprocal %41 : vector<1x32xf32> -> vector<1x32xf32>
    %43 = vector.broadcast %42 : vector<1x32xf32> to vector<32x32xf32>
    %44 = arith.mulf %39, %43 : vector<32x32xf32>
    %45 = arith.mulf %2, %44 : vector<32x32xf32>
    %cst_21 = arith.constant dense<0.000000e+00> : vector<32xf32>
    %46 = vector.multi_reduction <add>, %45, %cst_21 [0] : vector<32x32xf32> to vector<32xf32>
    %47 = vector.shape_cast %46 : vector<32xf32> to vector<1x32xf32>
    %48 = vector.broadcast %47 : vector<1x32xf32> to vector<32x32xf32>
    %49 = arith.subf %2, %48 : vector<32x32xf32>
    %50 = arith.mulf %49, %49 : vector<32x32xf32>
    %51 = arith.mulf %44, %50 : vector<32x32xf32>
    %cst_22 = arith.constant dense<0.000000e+00> : vector<32xf32>
    %52 = vector.multi_reduction <add>, %51, %cst_22 [0] : vector<32x32xf32> to vector<32xf32>
    %53 = vector.shape_cast %52 : vector<32xf32> to vector<1x32xf32>
    %cst_23 = arith.constant 9.99999993E-9 : f32
    %54 = vector.broadcast %cst_23 : f32 to vector<1x32xf32>
    %55 = arith.addf %53, %54 : vector<1x32xf32>
    %56 = math.sqrt %55 : vector<1x32xf32>
    %57 = tpu.concatenate %47, %56 in 1 : vector<1x32xf32>, vector<1x32xf32> -> vector<1x64xf32>
    %c0_24 = arith.constant 0 : index
    %c0_25 = arith.constant 0 : index
    %c0_26 = arith.constant 0 : index
    %58 = vector.load %arg8[%c0_24, %c0_25, %c0_26] : memref<1x1x64xf32, #tpu.memory_space<vmem>>, vector<1x1x64xf32>
    %59 = vector.shape_cast %58 : vector<1x1x64xf32> to vector<1x64xf32>
    %60 = vector.shape_cast %57 : vector<1x64xf32> to vector<1x1x64xf32>
    tpu.vector_store %arg8[%c0_24, %c0_25, %c0_26], %60 {strides = array<i32>} : memref<1x1x64xf32, #tpu.memory_space<vmem>>, vector<1x1x64xf32>,
    return
  }
  func.func @transform_0(%arg0: i32) -> (i32, i32, i32) {
    %c0_i32 = arith.constant 0 : i32
    %c0_i32_0 = arith.constant 0 : i32
    %c0_i32_1 = arith.constant 0 : i32
    return %arg0, %c0_i32, %c0_i32_0 : i32, i32, i32
  }
  func.func @transform_1(%arg0: i32) -> (i32, i32, i32) {
    %c0_i32 = arith.constant 0 : i32
    %c0_i32_0 = arith.constant 0 : i32
    %c0_i32_1 = arith.constant 0 : i32
    return %arg0, %c0_i32, %c0_i32_0 : i32, i32, i32
  }
  func.func @transform_2(%arg0: i32) -> (i32, i32) {
    %c0_i32 = arith.constant 0 : i32
    %c0_i32_0 = arith.constant 0 : i32
    %c0_i32_1 = arith.constant 0 : i32
    return %c0_i32, %c0_i32_0 : i32, i32
  }
  func.func @transform_3(%arg0: i32) -> (i32, i32) {
    %c0_i32 = arith.constant 0 : i32
    %c0_i32_0 = arith.constant 0 : i32
    %c0_i32_1 = arith.constant 0 : i32
    return %c0_i32, %c0_i32_0 : i32, i32
  }
  func.func @transform_4(%arg0: i32) -> (i32, i32) {
    %c0_i32 = arith.constant 0 : i32
    %c0_i32_0 = arith.constant 0 : i32
    %c0_i32_1 = arith.constant 0 : i32
    return %c0_i32, %c0_i32_0 : i32, i32
  }
  func.func @transform_5(%arg0: i32) -> (i32, i32) {
    %c0_i32 = arith.constant 0 : i32
    %c0_i32_0 = arith.constant 0 : i32
    %c0_i32_1 = arith.constant 0 : i32
    return %c0_i32, %c0_i32_0 : i32, i32
  }
  func.func @transform_6(%arg0: i32) -> (i32, i32) {
    %c0_i32 = arith.constant 0 : i32
    %c0_i32_0 = arith.constant 0 : i32
    %c0_i32_1 = arith.constant 0 : i32
    return %c0_i32, %c0_i32_0 : i32, i32
  }
  func.func @transform_7(%arg0: i32) -> (i32, i32, i32) {
    %c0_i32 = arith.constant 0 : i32
    %c0_i32_0 = arith.constant 0 : i32
    %c0_i32_1 = arith.constant 0 : i32
    return %arg0, %c0_i32, %c0_i32_0 : i32, i32, i32
  }
}

module attributes {stable_mosaic.version = 11 : i64} {
  func.func @kernel(%arg0: memref<2x64xf32, #tpu.memory_space<vmem>>, %arg1: memref<64x16xbf16, #tpu.memory_space<vmem>>, %arg2: memref<1x16xf32, #tpu.memory_space<vmem>>, %arg3: memref<1x16xf32, #tpu.memory_space<vmem>>, %arg4: memref<1x16xf32, #tpu.memory_space<vmem>>, %arg5: memref<2x16xf32, #tpu.memory_space<vmem>>) attributes {dimension_semantics = [], scalar_prefetch = 0 : i64, scratch_operands = 0 : i64, tpu.core_type = #tpu.core_type<tc>} {
    %c0 = arith.constant 0 : index
    %c0_0 = arith.constant 0 : index
    %0 = vector.load %arg0[%c0, %c0_0] : memref<2x64xf32, #tpu.memory_space<vmem>>, vector<2x64xf32>
    %1 = arith.truncf %0 : vector<2x64xf32> to vector<2x64xbf16>
    %c0_1 = arith.constant 0 : index
    %c0_2 = arith.constant 0 : index
    %2 = vector.load %arg1[%c0_1, %c0_2] : memref<64x16xbf16, #tpu.memory_space<vmem>>, vector<64x16xbf16>
    %cst = arith.constant dense<0.000000e+00> : vector<2x16xf32>
    %3 = tpu.matmul %1, %2, %cst {dimension_numbers = #tpu.dot_dimension_numbers<[1], [0], [0], [1], [0, 0, 1, 1], [], []>} : vector<2x64xbf16>, vector<64x16xbf16>, vector<2x16xf32> -> vector<2x16xf32>
    %c0_3 = arith.constant 0 : index
    %c0_4 = arith.constant 0 : index
    %4 = vector.load %arg2[%c0_3, %c0_4] : memref<1x16xf32, #tpu.memory_space<vmem>>, vector<1x16xf32>
    %5 = vector.broadcast %4 : vector<1x16xf32> to vector<2x16xf32>
    %6 = arith.addf %3, %5 : vector<2x16xf32>
    %cst_5 = arith.constant dense<0.000000e+00> : vector<16xf32>
    %7 = vector.multi_reduction <add>, %6, %cst_5 [0] : vector<2x16xf32> to vector<16xf32>
    %8 = vector.shape_cast %7 : vector<16xf32> to vector<1x16xf32>
    %cst_6 = arith.constant 2.000000e+00 : f32
    %9 = vector.broadcast %cst_6 : f32 to vector<1x16xf32>
    %10 = arith.divf %8, %9 : vector<1x16xf32>
    %11 = arith.mulf %6, %6 : vector<2x16xf32>
    %cst_7 = arith.constant dense<0.000000e+00> : vector<16xf32>
    %12 = vector.multi_reduction <add>, %11, %cst_7 [0] : vector<2x16xf32> to vector<16xf32>
    %13 = vector.shape_cast %12 : vector<16xf32> to vector<1x16xf32>
    %cst_8 = arith.constant 2.000000e+00 : f32
    %14 = vector.broadcast %cst_8 : f32 to vector<1x16xf32>
    %15 = arith.divf %13, %14 : vector<1x16xf32>
    %16 = arith.mulf %10, %10 : vector<1x16xf32>
    %17 = arith.subf %15, %16 : vector<1x16xf32>
    %cst_9 = arith.constant 0.000000e+00 : f32
    %18 = vector.broadcast %cst_9 : f32 to vector<1x16xf32>
    %19 = arith.maximumf %17, %18 : vector<1x16xf32>
    %20 = vector.broadcast %10 : vector<1x16xf32> to vector<2x16xf32>
    %21 = arith.subf %6, %20 : vector<2x16xf32>
    %cst_10 = arith.constant 9.99999974E-6 : f32
    %22 = vector.broadcast %cst_10 : f32 to vector<1x16xf32>
    %23 = arith.addf %19, %22 : vector<1x16xf32>
    %24 = math.rsqrt %23 : vector<1x16xf32>
    %25 = vector.broadcast %24 : vector<1x16xf32> to vector<2x16xf32>
    %26 = arith.mulf %21, %25 : vector<2x16xf32>
    %c0_11 = arith.constant 0 : index
    %c0_12 = arith.constant 0 : index
    %27 = vector.load %arg3[%c0_11, %c0_12] : memref<1x16xf32, #tpu.memory_space<vmem>>, vector<1x16xf32>
    %28 = vector.broadcast %27 : vector<1x16xf32> to vector<2x16xf32>
    %29 = arith.mulf %26, %28 : vector<2x16xf32>
    %c0_13 = arith.constant 0 : index
    %c0_14 = arith.constant 0 : index
    %30 = vector.load %arg4[%c0_13, %c0_14] : memref<1x16xf32, #tpu.memory_space<vmem>>, vector<1x16xf32>
    %31 = vector.broadcast %30 : vector<1x16xf32> to vector<2x16xf32>
    %32 = arith.addf %29, %31 : vector<2x16xf32>
    %c0_15 = arith.constant 0 : index
    %c0_16 = arith.constant 0 : index
    %33 = vector.load %arg5[%c0_15, %c0_16] : memref<2x16xf32, #tpu.memory_space<vmem>>, vector<2x16xf32>
    tpu.vector_store %arg5[%c0_15, %c0_16], %32 {strides = array<i32>} : memref<2x16xf32, #tpu.memory_space<vmem>>, vector<2x16xf32>,
    return
  }
}

</mosaic_0001>

<bundles_post_ra>
// kernel: ecapa_tdnn_forward.11
= control target key start
LH: loop header
LB: loop body
LE: loop exit
PB: predicated region body
PF: predicated region fallthrough
CT: control target
= control target key end

     0   :  { %vm68_vm0 = vcmask 261120   ;;  %vm178_vm1 = vcmask 257024   ;;  %vm237_vm2 = vcmask 1040384   ;;  %vm239_vm3 = vcmask 254976   ;;  %s405_s1 = inlined_call_operand.vmem [shape: bf16[32,32], index: 1, kind: input, shape index: {}]   ;;  %s406_s0 = inlined_call_operand.vmem [shape: bf16[64,32], index: 0, kind: input, shape index: {}]   ;;  %s407_s2 = inlined_call_operand.vmem [shape: f32[1,32], index: 2, kind: input, shape index: {}]   ;;  %s408_s3 = inlined_call_operand.vmem [shape: bf16[64,32], index: 3, kind: output, shape index: {0}]   ;;  %s409_s4 = inlined_call_operand.vmem [shape: f32[1,2,32], index: 4, kind: output, shape index: {1}]  }
   0x1   :  { %v298_v0 = vld [vmem:[%s405_s1 + $0x8] sm:$0xff]   ;;  %v299_v1 = vld [vmem:[%s405_s1] sm:$0xff]   ;;  %v302_v3 = vld [vmem:[%s406_s0 + $0x10] sm:$0xff]  }
   0x2   :  { %282 = vmatprep.subr.bf16.mxu0 %v298_v0  ;;  %294 = vmatprep.subr.bf16.mxu1 %v298_v0  ;;  %v300_v2 = vld [vmem:[%s406_s0] sm:$0xff]   ;;  %v301_v4 = vld [vmem:[%s406_s0 + $0x8] sm:$0xff]   ;;  %v303_v5 = vld [vmem:[%s406_s0 + $0x18] sm:$0xff]  }
   0x3   :  { %283 = vmatpush3.bf16.msra.mxu0 %v298_v0  ;;  %296 = vmatpush3.bf16.msra.mxu1 %v298_v0  ;;  %v249_v6 = vld [vmem:[%s407_s2] ss:$0 sm:$0xff] }
   0x4   :  { %284 = vmatprep.subr.bf16.mxu0 %v299_v1  ;;  %295 = vmatprep.subr.bf16.mxu1 %v299_v1 }
   0x5   :  { %286 = vmatprep.mubr.msk.bf16.mxu0 %vm68_vm0, %v300_v2  ;;  %290 = vmatprep.mubr.msk.bf16.mxu1 %vm68_vm0, %v302_v3 }
   0x7   :  { %285 = vmatpush3.bf16.msra.mxu0 %v299_v1  ;;  %297 = vmatpush3.bf16.msra.mxu1 %v299_v1 }
   0xa   :  { %287 = vmatmul.mubr.msk.bf16.vlgmr.msra.gmra.mxu0 %vm68_vm0, %v301_v4  ;;  %291 = vmatmul.mubr.msk.bf16.vlgmr.msra.gmra.mxu1 %vm68_vm0, %v303_v5 }
  0xca   :  { %v288_v7 = vpop.f32.mrf.mxu0  ;;  %v292_v8 = vpop.f32.mrf.mxu1 }
  0xcb   :  { %v124_v9 = vadd.f32 %v288_v7, %v249_v6  ;;  %v140_v10 = vadd.f32 %v292_v8, %v249_v6 }
  0xcc   :  { %v115_v11 = vpop.f32.mrf.mxu0  ;;  %v131_v12 = vpop.f32.mrf.mxu1 }
  0xcd   :  { %v270_v13 = vpack.c.bf16 %v124_v9, %v124_v9  ;;  %v116_v14 = vadd.f32 %v249_v6, %v115_v11  ;;  %v274_v15 = vpack.c.bf16 %v140_v10, %v140_v10  ;;  %v132_v17 = vadd.f32 %v249_v6, %v131_v12 }
  0xce   :  { %v289_v16 = vpop.f32.mrf.mxu0  ;;  %v293_v18 = vpop.f32.mrf.mxu1  ;;  %v210_v27 = vmul.f32 %v124_v9, %v124_v9  ;;  %v190_v34 = vsel %vm68_vm0, %v124_v9, 0.0  ;;  %v214_v53 = vmul.f32 %v140_v10, %v140_v10  ;;  %v198_v58 = vsel %vm68_vm0, %v140_v10, 0.0 }
  0xcf   :  { %181 = vst.msk [vmem:[%s408_s3 + $0x8] sm:$0xf] %vm178_vm1, %v270_v13  ;;  %v268_v19 = vpack.c.bf16 %v116_v14, %v116_v14  ;;  %185 = vst.msk [vmem:[%s408_s3 + $0x18] sm:$0xf] %vm178_vm1, %v274_v15  ;;  %v127_v20 = vadd.f32 %v289_v16, %v249_v6  ;;  %v272_v21 = vpack.c.bf16 %v132_v17, %v132_v17  ;;  %v187_v30 = vsel %vm68_vm0, %v116_v14, 0.0 }
  0xd0   :  { %v118_v22 = vpop.f32.mrf.mxu0  ;;  %v134_v23 = vpop.f32.mrf.mxu1  ;;  %v208_v24 = vmul.f32 %v116_v14, %v116_v14  ;;  %v143_v26 = vadd.f32 %v293_v18, %v249_v6  ;;  %v219_v43 = vsel %vm68_vm0, %v210_v27, 0.0  ;;  %v212_v45 = vmul.f32 %v132_v17, %v132_v17 }
  0xd1   :  { %179 = vst.msk [vmem:[%s408_s3] sm:$0xf] %vm178_vm1, %v268_v19  ;;  %v119_v25 = vadd.f32 %v249_v6, %v118_v22  ;;  %v271_v28 = vpack.c.bf16 %v127_v20, %v127_v20  ;;  %183 = vst.msk [vmem:[%s408_s3 + $0x10] sm:$0xf] %vm178_vm1, %v272_v21  ;;  %v135_v29 = vadd.f32 %v249_v6, %v134_v23  ;;  %v192_v44 = vsel %vm68_vm0, %v127_v20, 0.0 }
  0xd2   :  { %v275_v36 = vpack.c.bf16 %v143_v26, %v143_v26  ;;  %v216_v37 = vsel %vm68_vm0, %v208_v24, 0.0  ;;  %v211_v38 = vmul.f32 %v127_v20, %v127_v20  ;;  %v194_v49 = vsel %vm68_vm0, %v132_v17, 0.0 }
  0xd3   :  { %v269_v31 = vpack.c.bf16 %v119_v25, %v119_v25  ;;  %v188_v32 = vsel %vm68_vm0, %v119_v25, 0.0  ;;  %v209_v33 = vmul.f32 %v119_v25, %v119_v25  ;;  %182 = vst.msk [vmem:[%s408_s3 + $0xc] sm:$0xf] %vm178_vm1, %v271_v28  ;;  %v273_v40 = vpack.c.bf16 %v135_v29, %v135_v29 }
  0xd4   :  { %v189_v35 = vadd.f32 %v188_v32, %v187_v30  ;;  %186 = vst.msk [vmem:[%s408_s3 + $0x1c] sm:$0xf] %vm178_vm1, %v275_v36  ;;  %v221_v48 = vsel %vm68_vm0, %v211_v38, 0.0  ;;  %v213_v50 = vmul.f32 %v135_v29, %v135_v29  ;;  %v223_v54 = vsel %vm68_vm0, %v212_v45, 0.0 }
  0xd5   :  { %180 = vst.msk [vmem:[%s408_s3 + $0x4] sm:$0xf] %vm178_vm1, %v269_v31  ;;  %v217_v39 = vsel %vm68_vm0, %v209_v33, 0.0  ;;  %184 = vst.msk [vmem:[%s408_s3 + $0x14] sm:$0xf] %vm178_vm1, %v273_v40  ;;  %v196_v55 = vsel %vm68_vm0, %v135_v29, 0.0  ;;  %v215_v59 = vmul.f32 %v143_v26, %v143_v26 }
  0xd6   :  { %v191_v41 = vadd.f32 %v190_v34, %v189_v35  ;;  %v218_v42 = vadd.f32 %v217_v39, %v216_v37  ;;  %v225_v60 = vsel %vm68_vm0, %v213_v50, 0.0  ;;  %v227_v63 = vsel %vm68_vm0, %v214_v53, 0.0 }
  0xd7   :  { %v200_v0 = vsel %vm68_vm0, %v143_v26, 0.0  ;;  %v229_v3 = vsel %vm68_vm0, %v215_v59, 0.0 }
  0xd8   :  { %v220_v46 = vadd.f32 %v219_v43, %v218_v42  ;;  %v193_v47 = vadd.f32 %v192_v44, %v191_v41 }
  0xda   :  { %v195_v51 = vadd.f32 %v194_v49, %v193_v47  ;;  %v222_v52 = vadd.f32 %v221_v48, %v220_v46 }
  0xdc   :  { %v197_v56 = vadd.f32 %v196_v55, %v195_v51  ;;  %v224_v57 = vadd.f32 %v223_v54, %v222_v52 }
  0xde   :  { %v199_v61 = vadd.f32 %v198_v58, %v197_v56  ;;  %v226_v62 = vadd.f32 %v225_v60, %v224_v57 }
  0xe0   :  { %v201_v1 = vadd.f32 %v200_v0, %v199_v61  ;;  %v228_v2 = vadd.f32 %v227_v63, %v226_v62 }
  0xe2   :  { %v202_v4 = vrot.slane %v201_v1, 4  ;;  %v230_v5 = vadd.f32 %v229_v3, %v228_v2 }
  0xe4   :  { %v203_v6 = vadd.f32 %v202_v4, %v201_v1  ;;  %v231_v7 = vrot.slane %v230_v5, 4 }
  0xe6   :  { %v204_v8 = vrot.slane %v203_v6, 2  ;;  %v232_v9 = vadd.f32 %v231_v7, %v230_v5 }
  0xe8   :  { %v205_v10 = vadd.f32 %v204_v8, %v203_v6  ;;  %v233_v11 = vrot.slane %v232_v9, 2 }
  0xea   :  { %v206_v12 = vrot.slane %v205_v10, 1  ;;  %v234_v13 = vadd.f32 %v233_v11, %v232_v9 }
  0xec   :  { %v235_v14 = vrot.slane %v234_v13, 1  ;;  %v207_v15 = vadd.f32 %v206_v12, %v205_v10 }
  0xee   :  { %v236_v16 = vadd.f32 %v235_v14, %v234_v13 }
  0xf0   :  { %v238_v17 = vsel %vm237_vm2, %v207_v15, %v236_v16 }
  0xf1   :  { %240 = vst.msk [vmem:[%s409_s4] sm:$0x3] %vm239_vm3, %v238_v17 }

// kernel: ecapa_tdnn_forward.10
= control target key start
LH: loop header
LB: loop body
LE: loop exit
PB: predicated region body
PF: predicated region fallthrough
CT: control target
= control target key end

     0   :  { %s652_s21 = smov 0   ;;  %s708_s0 = inlined_call_operand.vmem [shape: bf16[2,32,32], index: 0, kind: input, shape index: {}]   ;;  %s709_s1 = inlined_call_operand.vmem [shape: f32[2,32], index: 1, kind: input, shape index: {}]   ;;  %s710_s2 = inlined_call_operand.vmem [shape: f32[1,32], index: 2, kind: input, shape index: {}]   ;;  %s711_s3 = inlined_call_operand.vmem [shape: f32[1,32], index: 3, kind: input, shape index: {}]   ;;  %s712_s4 = inlined_call_operand.vmem [shape: bf16[32,4], index: 4, kind: input, shape index: {}]   ;;  %s713_s5 = inlined_call_operand.vmem [shape: bf16[4,32], index: 5, kind: input, shape index: {}]   ;;  %s714_s6 = inlined_call_operand.vmem [shape: bf16[2,32,32], index: 6, kind: output, shape index: {}]  }
   0x1 LB: > { %s534_s22 = sadd.s32 4294967295, %s612_s21   ;;  %p538_p0 = scmp.ge.s32.totalorder %s612_s21, 1  ;;  %s612_s21 = sphi %s652_s21, %s16_s21  }
   0x2   : > { %p212_p1 = scmp.lt.s32.totalorder %s612_s21, 3 }
   0x4   : > { %p213_p2 = pnand %p538_p0, %p212_p1 }
   0x5   : > { %p242_p3 = scmp.lt.s32.totalorder (!%p213_p2), %s534_s22, 1 }
   0x6   : > { %216 = sbr.rel (%p213_p2) target bundleno = 512 (0x200), region = 44 }
   0xb   : > { %v598_v0 = vld [vmem:[%s712_s4 + $0x8] sm:$0xff]   ;;  %v614_v1 = vmov 0.0   ;;  %v599_v2 = vld [vmem:[%s712_s4] sm:$0xff]   ;;  %vm615_vm0 = vmmov 0   ;;  %v616_v10 = vmov 1966171168   ;;  %v269_v12 = vlaneseq }
   0xc   : > { %573 = vmatprep.subr.bf16.mxu0 %v614_v1  ;;  %581 = vmatprep.subr.bf16.mxu1 %v614_v1  ;;  %v253_v3 = vld [vmem:[%s709_s1] sm:$0x3]  ;;  %v267_v11 = vunpack.c.l.s4 %v616_v10  ;;  %s716_s22 = smov (!%p242_p3, %s534_s22), 1  ;;  %vm317_vm1 = vcmask 261120   ;;  %vm400_vm2 = vcmask 1041408   ;;  %vm396_vm3 = vcmask 31744  }
   0xd   : > { %574 = vmatpush3.bf16.msra.mxu0 %v598_v0  ;;  %577 = vmatprep.mubr.msk.bf16.mxu0 %vm615_vm0, %v614_v1  ;;  %v256_v4 = vmul.f32 0.015625, %v253_v3  ;;  %v270_v14 = vshrl.u32 %v269_v12, 7  ;;  %s553_s29 = sshll.u32 %s716_s22, 4  ;;  %v254_v19 = vld [vmem:[%s710_s2] sm:$0x1]  ;;  %vm474_vm4 = vcmask 257024  }
   0xe   : > { %575 = vmatprep.subr.bf16.mxu0 %v614_v1  ;;  %583 = vmatprep.mubr.msk.bf16.mxu1 %vm615_vm0, %v614_v1  ;;  %v268_v13 = vunpack.c.0.s8 %v267_v11  ;;  %s246_s8 = scalar_lea.vmem %s708_s0, %s553_s29  ;;  %v255_v28 = vld [vmem:[%s711_s3] sm:$0x1]  ;;  %s251_s17 = scalar_lea.vmem %s714_s6, %s553_s29 }
   0xf   : > { %v257_v5 = vmul.f32 %v256_v4, %v256_v4  ;;  %v560_v20 = vld [vmem:[%s246_s8] sm:$0xff]   ;;  %v567_v21 = vld [vmem:[%s246_s8 + $0x8] sm:$0xff]   ;;  %v684_v23 = vsub.s32 0, %v270_v14 }
  0x10   : > { %v271_v15 = vsub.s32 %v268_v13, %v270_v14  ;;  %v561_v25 = vunpack.c.l.bf16 %v560_v20  ;;  %v562_v26 = vunpack.c.h.bf16 %v560_v20  ;;  %v565_v27 = vunpack.c.l.bf16 %v567_v21  ;;  %v395_v61 = vld [vmem:[%s713_s5] sm:$0x3] }
  0x11   : > { %576 = vmatpush3.bf16.msra.mxu0 %v599_v2  ;;  %v259_v6 = vrot.slane %v257_v5, 7  ;;  %v566_v29 = vunpack.c.h.bf16 %v567_v21  ;;  %v402_v62 = vsel %vm400_vm2, %v395_v61, 0 }
  0x12   : > { %582 = vmatpush3.bf16.msra.mxu1 %v402_v62 }
  0x13   : > { %v261_v7 = vsub.f32 %v256_v4, %v259_v6 }
  0x15   : > { %v262_v8 = vmax.f32 %v261_v7, 0.0 }
  0x17   : > { %v263_v9 = vadd.f32 1e-05, %v262_v8 }
  0x19   : > { %600 = vrsqrt.f32 %v263_v9 }
  0x26   : > { %v601_v16 = vpop.eup %600 }
  0x27   : > { %v272_v17 = vrot.slane %v601_v16, %v271_v15 }
  0x29   : > { %v273_v18 = vcombine.high %v272_v17, %v272_v17 }
  0x2b   : > { %v280_v22 = vrot.slane %v273_v18, %v271_v15 }
  0x2d   : > { %v282_v24 = vmul.f32 %v280_v22, %v254_v19 }
  0x2f   : > { %v283_v30 = vmul.f32 %v282_v24, %v256_v4  ;;  %v297_v31 = vrot.slane %v282_v24, %v684_v23 }
  0x31   : > { %v284_v32 = vsub.f32 %v255_v28, %v283_v30  ;;  %v299_v33 = vmul.f32 %v561_v25, %v297_v31  ;;  %v300_v34 = vmul.f32 %v562_v26, %v297_v31  ;;  %v301_v35 = vmul.f32 %v565_v27, %v297_v31 }
  0x32   : > { %v302_v36 = vmul.f32 %v566_v29, %v297_v31 }
  0x33   : > { %v307_v37 = vrot.slane %v284_v32, %v684_v23 }
  0x35   : > { %v309_v38 = vadd.f32 %v307_v37, %v299_v33  ;;  %v310_v39 = vadd.f32 %v307_v37, %v300_v34  ;;  %v311_v40 = vadd.f32 %v307_v37, %v301_v35  ;;  %v312_v41 = vadd.f32 %v307_v37, %v302_v36 }
  0x37   : > { %v313_v42 = vmax.f32 %v309_v38, 0.0  ;;  %v314_v43 = vmax.f32 %v310_v39, 0.0  ;;  %v315_v44 = vmax.f32 %v311_v40, 0.0  ;;  %v316_v45 = vmax.f32 %v312_v41, 0.0 }
  0x39   : > { %v318_v46 = vsel %vm317_vm1, %v313_v42, 0.0  ;;  %v319_v47 = vsel %vm317_vm1, %v314_v43, 0.0  ;;  %v321_v48 = vsel %vm317_vm1, %v315_v44, 0.0  ;;  %v323_v50 = vsel %vm317_vm1, %v316_v45, 0.0 }
  0x3a   : > { %v320_v49 = vadd.f32 %v319_v47, %v318_v46 }
  0x3c   : > { %v322_v51 = vadd.f32 %v321_v48, %v320_v49 }
  0x3e   : > { %v324_v52 = vadd.f32 %v323_v50, %v322_v51 }
  0x40   : > { %v325_v53 = vrot.slane %v324_v52, 4 }
  0x42   : > { %v326_v54 = vadd.f32 %v325_v53, %v324_v52 }
  0x44   : > { %v327_v55 = vrot.slane %v326_v54, 2 }
  0x46   : > { %v328_v56 = vadd.f32 %v327_v55, %v326_v54 }
  0x48   : > { %v329_v57 = vrot.slane %v328_v56, 1 }
  0x4a   : > { %v330_v58 = vadd.f32 %v329_v57, %v328_v56 }
  0x4c   : > { %v332_v59 = vmul.f32 0.03125, %v330_v58 }
  0x4e   : > { %v333_v60 = vpack.c.bf16 %v332_v59, %v332_v59 }
  0x50   : > { %578 = vmatmul.mubr.msk.bf16.vlgmr.msra.gmra.mxu0 %vm317_vm1, %v333_v60 }
 0x110   : > { %v387_v63 = vpop.f32.mrf.mxu0 }
 0x111   : > { %v393_v0 = vmax.f32 %v387_v63, 0.0 }
 0x112   : > { %v579_v1 = vpop.f32.mrf.mxu0 }
 0x113   : > { %v394_v2 = vpack.c.bf16 %v393_v0, %v393_v0 }
 0x114   : > { %v390_v3 = vpop.f32.mrf.mxu0 }
 0x115   : > { %584 = vmatmul.mubr.msk.bf16.vlgmr.msra.gmra.mxu1 %vm396_vm3, %v394_v2 }
 0x116   : > { %v580_v4 = vpop.f32.mrf.mxu0 }
 0x1d5   : > { %v438_v5 = vpop.f32.mrf.mxu1 }
 0x1d6   : > { %v444_v6 = vsub.f32 0.0, %v438_v5 }
 0x1d7   : > { %v585_v7 = vpop.f32.mrf.mxu1 }
 0x1d8   : > { %v445_v8 = vmul.f32 1.442695, %v444_v6 }
 0x1d9   : > { %v441_v9 = vpop.f32.mrf.mxu1 }
 0x1da   : > { %602 = vpow2.f32 %v445_v8 }
 0x1db   : > { %v586_v10 = vpop.f32.mrf.mxu1 }
 0x1e7   : > { %v603_v11 = vpop.eup %602 }
 0x1e8   : > { %v447_v12 = vadd.f32 1.0, %v603_v11 }
 0x1ea   : > { %604 = vrcp.f32 %v447_v12 }
 0x1f7   : > { %v605_v13 = vpop.eup %604 }
 0x1f8   : > { %v453_v14 = vrot.slane %v605_v13, %v684_v23 }
 0x1fa   : > { %v454_v15 = vmul.f32 %v453_v14, %v313_v42  ;;  %v455_v16 = vmul.f32 %v453_v14, %v314_v43  ;;  %v456_v17 = vmul.f32 %v453_v14, %v315_v44  ;;  %v457_v18 = vmul.f32 %v453_v14, %v316_v45 }
 0x1fc   : > { %v555_v19 = vpack.c.bf16 %v454_v15, %v454_v15  ;;  %v556_v20 = vpack.c.bf16 %v455_v16, %v455_v16  ;;  %v557_v21 = vpack.c.bf16 %v456_v17, %v456_v17  ;;  %v558_v22 = vpack.c.bf16 %v457_v18, %v457_v18 }
 0x1fe   : > { %475 = vst.msk [vmem:[%s251_s17] sm:$0xf] %vm474_vm4, %v555_v19  ;;  %476 = vst.msk [vmem:[%s251_s17 + $0x4] sm:$0xf] %vm474_vm4, %v556_v20 }
 0x1ff   : > { %477 = vst.msk [vmem:[%s251_s17 + $0x8] sm:$0xf] %vm474_vm4, %v557_v21  ;;  %478 = vst.msk [vmem:[%s251_s17 + $0xc] sm:$0xf] %vm474_vm4, %v558_v22 }
 0x200 PF: > { %s16_s21 = sadd.s32 1, %s612_s21  }
 0x201   : > { %p13_p4 = scmp.ge.s32.totalorder %s16_s21, 4  }
 0x203   :  { %15 = sbr.rel (!%p13_p4) target bundleno = 1 (0x1), region = 74 }

// kernel: ecapa_tdnn_forward.9
= control target key start
LH: loop header
LB: loop body
LE: loop exit
PB: predicated region body
PF: predicated region fallthrough
CT: control target
= control target key end

     0   :  { %vm92_vm0 = vcmask 654336   ;;  %vm202_vm1 = vcmask 257024   ;;  %vm211_vm2 = vcmask 261120   ;;  %vm262_vm3 = vcmask 1040384   ;;  %s460_s1 = inlined_call_operand.vmem [shape: bf16[80,32], index: 1, kind: input, shape index: {}]   ;;  %s461_s0 = inlined_call_operand.vmem [shape: bf16[64,80], index: 0, kind: input, shape index: {}]   ;;  %s462_s2 = inlined_call_operand.vmem [shape: f32[1,32], index: 2, kind: input, shape index: {}]   ;;  %s463_s3 = inlined_call_operand.vmem [shape: bf16[64,32], index: 3, kind: output, shape index: {0}]   ;;  %s464_s4 = inlined_call_operand.vmem [shape: f32[1,2,32], index: 4, kind: output, shape index: {1}]  }
   0x1   :  { %v341_v0 = vld [vmem:[%s460_s1 + $0x20] sm:$0xff]   ;;  %v342_v1 = vld [vmem:[%s460_s1 + $0x18] sm:$0xff]   ;;  %v343_v2 = vld [vmem:[%s460_s1 + $0x10] sm:$0xff]   ;;  %vm264_vm4 = vcmask 254976  }
   0x2   :  { %313 = vmatprep.subr.bf16.mxu0 %v341_v0  ;;  %331 = vmatprep.subr.bf16.mxu1 %v341_v0  ;;  %v346_v3 = vld [vmem:[%s461_s0] sm:$0xff]   ;;  %v348_v4 = vld [vmem:[%s461_s0 + $0x10] sm:$0xff]   ;;  %v344_v5 = vld [vmem:[%s460_s1 + $0x8] sm:$0xff]  }
   0x3   :  { %314 = vmatpush3.bf16.msra.mxu0 %v341_v0  ;;  %336 = vmatpush3.bf16.msra.mxu1 %v341_v0  ;;  %v345_v6 = vld [vmem:[%s460_s1] sm:$0xff]   ;;  %v347_v7 = vld [vmem:[%s461_s0 + $0x8] sm:$0xff]   ;;  %v349_v8 = vld [vmem:[%s461_s0 + $0x18] sm:$0xff]  }
   0x4   :  { %315 = vmatprep.subr.bf16.mxu0 %v342_v1  ;;  %332 = vmatprep.subr.bf16.mxu1 %v342_v1  ;;  %v274_v9 = vld [vmem:[%s462_s2] ss:$0 sm:$0xff] }
   0x5   :  { %323 = vmatprep.mubr.msk.bf16.mxu0 %vm92_vm0, %v346_v3  ;;  %327 = vmatprep.mubr.msk.bf16.mxu1 %vm92_vm0, %v348_v4 }
   0x7   :  { %316 = vmatpush3.bf16.msra.mxu0 %v342_v1  ;;  %337 = vmatpush3.bf16.msra.mxu1 %v342_v1 }
   0x8   :  { %317 = vmatprep.subr.bf16.mxu0 %v343_v2  ;;  %333 = vmatprep.subr.bf16.mxu1 %v343_v2 }
   0xb   :  { %318 = vmatpush3.bf16.msra.mxu0 %v343_v2  ;;  %338 = vmatpush3.bf16.msra.mxu1 %v343_v2 }
   0xc   :  { %319 = vmatprep.subr.bf16.mxu0 %v344_v5  ;;  %334 = vmatprep.subr.bf16.mxu1 %v344_v5 }
   0xf   :  { %320 = vmatpush3.bf16.msra.mxu0 %v344_v5  ;;  %339 = vmatpush3.bf16.msra.mxu1 %v344_v5 }
  0x10   :  { %321 = vmatprep.subr.bf16.mxu0 %v345_v6  ;;  %335 = vmatprep.subr.bf16.mxu1 %v345_v6 }
  0x13   :  { %322 = vmatpush3.bf16.msra.mxu0 %v345_v6  ;;  %340 = vmatpush3.bf16.msra.mxu1 %v345_v6 }
  0x16   :  { %324 = vmatmul.mubr.msk.bf16.vlgmr.msra.gmra.mxu0 %vm92_vm0, %v347_v7  ;;  %328 = vmatmul.mubr.msk.bf16.vlgmr.msra.gmra.mxu1 %vm92_vm0, %v349_v8 }
  0xd6   :  { %v325_v10 = vpop.f32.mrf.mxu0  ;;  %v329_v11 = vpop.f32.mrf.mxu1 }
  0xd7   :  { %v148_v12 = vadd.f32 %v325_v10, %v274_v9  ;;  %v164_v13 = vadd.f32 %v329_v11, %v274_v9 }
  0xd8   :  { %v139_v14 = vpop.f32.mrf.mxu0  ;;  %v155_v15 = vpop.f32.mrf.mxu1 }
  0xd9   :  { %v298_v16 = vpack.c.bf16 %v148_v12, %v148_v12  ;;  %v140_v17 = vadd.f32 %v274_v9, %v139_v14  ;;  %v302_v18 = vpack.c.bf16 %v164_v13, %v164_v13  ;;  %v156_v20 = vadd.f32 %v274_v9, %v155_v15 }
  0xda   :  { %v326_v19 = vpop.f32.mrf.mxu0  ;;  %v330_v21 = vpop.f32.mrf.mxu1  ;;  %v235_v30 = vmul.f32 %v148_v12, %v148_v12  ;;  %v215_v37 = vsel %vm211_vm2, %v148_v12, 0.0  ;;  %v239_v56 = vmul.f32 %v164_v13, %v164_v13  ;;  %v223_v61 = vsel %vm211_vm2, %v164_v13, 0.0 }
  0xdb   :  { %205 = vst.msk [vmem:[%s463_s3 + $0x8] sm:$0xf] %vm202_vm1, %v298_v16  ;;  %v296_v22 = vpack.c.bf16 %v140_v17, %v140_v17  ;;  %209 = vst.msk [vmem:[%s463_s3 + $0x18] sm:$0xf] %vm202_vm1, %v302_v18  ;;  %v151_v23 = vadd.f32 %v326_v19, %v274_v9  ;;  %v300_v24 = vpack.c.bf16 %v156_v20, %v156_v20  ;;  %v212_v33 = vsel %vm211_vm2, %v140_v17, 0.0 }
  0xdc   :  { %v142_v25 = vpop.f32.mrf.mxu0  ;;  %v158_v26 = vpop.f32.mrf.mxu1  ;;  %v233_v27 = vmul.f32 %v140_v17, %v140_v17  ;;  %v167_v29 = vadd.f32 %v330_v21, %v274_v9  ;;  %v244_v46 = vsel %vm211_vm2, %v235_v30, 0.0  ;;  %v237_v48 = vmul.f32 %v156_v20, %v156_v20 }
  0xdd   :  { %203 = vst.msk [vmem:[%s463_s3] sm:$0xf] %vm202_vm1, %v296_v22  ;;  %v143_v28 = vadd.f32 %v274_v9, %v142_v25  ;;  %v299_v31 = vpack.c.bf16 %v151_v23, %v151_v23  ;;  %207 = vst.msk [vmem:[%s463_s3 + $0x10] sm:$0xf] %vm202_vm1, %v300_v24  ;;  %v159_v32 = vadd.f32 %v274_v9, %v158_v26  ;;  %v217_v47 = vsel %vm211_vm2, %v151_v23, 0.0 }
  0xde   :  { %v303_v39 = vpack.c.bf16 %v167_v29, %v167_v29  ;;  %v241_v40 = vsel %vm211_vm2, %v233_v27, 0.0  ;;  %v236_v41 = vmul.f32 %v151_v23, %v151_v23  ;;  %v219_v52 = vsel %vm211_vm2, %v156_v20, 0.0 }
  0xdf   :  { %v297_v34 = vpack.c.bf16 %v143_v28, %v143_v28  ;;  %v213_v35 = vsel %vm211_vm2, %v143_v28, 0.0  ;;  %v234_v36 = vmul.f32 %v143_v28, %v143_v28  ;;  %206 = vst.msk [vmem:[%s463_s3 + $0xc] sm:$0xf] %vm202_vm1, %v299_v31  ;;  %v301_v43 = vpack.c.bf16 %v159_v32, %v159_v32 }
  0xe0   :  { %v214_v38 = vadd.f32 %v213_v35, %v212_v33  ;;  %210 = vst.msk [vmem:[%s463_s3 + $0x1c] sm:$0xf] %vm202_vm1, %v303_v39  ;;  %v246_v51 = vsel %vm211_vm2, %v236_v41, 0.0  ;;  %v238_v53 = vmul.f32 %v159_v32, %v159_v32  ;;  %v248_v57 = vsel %vm211_vm2, %v237_v48, 0.0 }
  0xe1   :  { %204 = vst.msk [vmem:[%s463_s3 + $0x4] sm:$0xf] %vm202_vm1, %v297_v34  ;;  %v242_v42 = vsel %vm211_vm2, %v234_v36, 0.0  ;;  %208 = vst.msk [vmem:[%s463_s3 + $0x14] sm:$0xf] %vm202_vm1, %v301_v43  ;;  %v221_v58 = vsel %vm211_vm2, %v159_v32, 0.0  ;;  %v240_v62 = vmul.f32 %v167_v29, %v167_v29 }
  0xe2   :  { %v216_v44 = vadd.f32 %v215_v37, %v214_v38  ;;  %v243_v45 = vadd.f32 %v242_v42, %v241_v40  ;;  %v250_v63 = vsel %vm211_vm2, %v238_v53, 0.0  ;;  %v252_v2 = vsel %vm211_vm2, %v239_v56, 0.0 }
  0xe3   :  { %v225_v3 = vsel %vm211_vm2, %v167_v29, 0.0  ;;  %v254_v6 = vsel %vm211_vm2, %v240_v62, 0.0 }
  0xe4   :  { %v245_v49 = vadd.f32 %v244_v46, %v243_v45  ;;  %v218_v50 = vadd.f32 %v217_v47, %v216_v44 }
  0xe6   :  { %v220_v54 = vadd.f32 %v219_v52, %v218_v50  ;;  %v247_v55 = vadd.f32 %v246_v51, %v245_v49 }
  0xe8   :  { %v222_v59 = vadd.f32 %v221_v58, %v220_v54  ;;  %v249_v60 = vadd.f32 %v248_v57, %v247_v55 }
  0xea   :  { %v224_v0 = vadd.f32 %v223_v61, %v222_v59  ;;  %v251_v1 = vadd.f32 %v250_v63, %v249_v60 }
  0xec   :  { %v226_v4 = vadd.f32 %v225_v3, %v224_v0  ;;  %v253_v5 = vadd.f32 %v252_v2, %v251_v1 }
  0xee   :  { %v227_v7 = vrot.slane %v226_v4, 4  ;;  %v255_v8 = vadd.f32 %v254_v6, %v253_v5 }
  0xf0   :  { %v228_v9 = vadd.f32 %v227_v7, %v226_v4  ;;  %v256_v10 = vrot.slane %v255_v8, 4 }
  0xf2   :  { %v229_v11 = vrot.slane %v228_v9, 2  ;;  %v257_v12 = vadd.f32 %v256_v10, %v255_v8 }
  0xf4   :  { %v230_v13 = vadd.f32 %v229_v11, %v228_v9  ;;  %v258_v14 = vrot.slane %v257_v12, 2 }
  0xf6   :  { %v231_v15 = vrot.slane %v230_v13, 1  ;;  %v259_v16 = vadd.f32 %v258_v14, %v257_v12 }
  0xf8   :  { %v260_v17 = vrot.slane %v259_v16, 1  ;;  %v232_v18 = vadd.f32 %v231_v15, %v230_v13 }
  0xfa   :  { %v261_v19 = vadd.f32 %v260_v17, %v259_v16 }
  0xfc   :  { %v263_v20 = vsel %vm262_vm3, %v232_v18, %v261_v19 }
  0xfd   :  { %265 = vst.msk [vmem:[%s464_s4] sm:$0x3] %vm264_vm4, %v263_v20 }

// kernel: ecapa_tdnn_forward.14
= control target key start
LH: loop header
LB: loop body
LE: loop exit
PB: predicated region body
PF: predicated region fallthrough
CT: control target
= control target key end

     0   :  { %s740_s24 = smov 0   ;;  %s797_s0 = inlined_call_operand.vmem [shape: bf16[2,32,32], index: 0, kind: input, shape index: {}]   ;;  %s798_s1 = inlined_call_operand.vmem [shape: f32[2,32], index: 1, kind: input, shape index: {}]   ;;  %s799_s2 = inlined_call_operand.vmem [shape: f32[1,32], index: 2, kind: input, shape index: {}]   ;;  %s800_s3 = inlined_call_operand.vmem [shape: f32[1,32], index: 3, kind: input, shape index: {}]   ;;  %s801_s4 = inlined_call_operand.vmem [shape: bf16[32,4], index: 4, kind: input, shape index: {}]   ;;  %s802_s5 = inlined_call_operand.vmem [shape: bf16[4,32], index: 5, kind: input, shape index: {}]   ;;  %s803_s6 = inlined_call_operand.vmem [shape: bf16[2,32,32], index: 6, kind: input, shape index: {}]   ;;  %s804_s7 = inlined_call_operand.vmem [shape: bf16[2,32,32], index: 7, kind: output, shape index: {}]  }
   0x1 LB: > { %s605_s25 = sadd.s32 4294967295, %s695_s24   ;;  %p609_p0 = scmp.ge.s32.totalorder %s695_s24, 1  ;;  %s695_s24 = sphi %s740_s24, %s17_s24  }
   0x2   : > { %p247_p1 = scmp.lt.s32.totalorder %s695_s24, 3 }
   0x4   : > { %p248_p2 = pnand %p609_p0, %p247_p1 }
   0x5   : > { %p284_p3 = scmp.lt.s32.totalorder (!%p248_p2), %s605_s25, 1 }
   0x6   : > { %251 = sbr.rel (%p248_p2) target bundleno = 514 (0x202), region = 48 }
   0xb   : > { %v681_v0 = vld [vmem:[%s801_s4 + $0x8] sm:$0xff]   ;;  %v697_v1 = vmov 0.0   ;;  %v682_v2 = vld [vmem:[%s801_s4] sm:$0xff]   ;;  %vm698_vm0 = vmmov 0   ;;  %v699_v10 = vmov 1966171168   ;;  %v316_v12 = vlaneseq }
   0xc   : > { %656 = vmatprep.subr.bf16.mxu0 %v697_v1  ;;  %664 = vmatprep.subr.bf16.mxu1 %v697_v1  ;;  %v300_v3 = vld [vmem:[%s798_s1] sm:$0x3]  ;;  %v314_v11 = vunpack.c.l.s4 %v699_v10  ;;  %s806_s25 = smov (!%p284_p3, %s605_s25), 1  ;;  %vm360_vm1 = vcmask 261120   ;;  %vm443_vm2 = vcmask 1041408   ;;  %vm439_vm3 = vcmask 31744  }
   0xd   : > { %657 = vmatpush3.bf16.msra.mxu0 %v681_v0  ;;  %660 = vmatprep.mubr.msk.bf16.mxu0 %vm698_vm0, %v697_v1  ;;  %v303_v4 = vmul.f32 0.015625, %v300_v3  ;;  %v317_v14 = vshrl.u32 %v316_v12, 7  ;;  %s761_s9 = sshll.u32 %s806_s25, 4  ;;  %v301_v19 = vld [vmem:[%s799_s2] sm:$0x1]  ;;  %vm533_vm4 = vcmask 257024  }
   0xe   : > { %658 = vmatprep.subr.bf16.mxu0 %v697_v1  ;;  %666 = vmatprep.mubr.msk.bf16.mxu1 %vm698_vm0, %v697_v1  ;;  %v315_v13 = vunpack.c.0.s8 %v314_v11  ;;  %s288_s12 = scalar_lea.vmem %s797_s0, %s761_s9  ;;  %v302_v28 = vld [vmem:[%s800_s3] sm:$0x1]  ;;  %s293_s21 = scalar_lea.vmem %s803_s6, %s761_s9 }
   0xf   : > { %v304_v5 = vmul.f32 %v303_v4, %v303_v4  ;;  %v634_v20 = vld [vmem:[%s288_s12] sm:$0xff]   ;;  %v649_v21 = vld [vmem:[%s288_s12 + $0x8] sm:$0xff]   ;;  %v770_v23 = vsub.s32 0, %v317_v14  ;;  %s298_s25 = scalar_lea.vmem %s804_s7, %s761_s9 }
  0x10   : > { %v318_v15 = vsub.s32 %v315_v13, %v317_v14  ;;  %v635_v25 = vunpack.c.l.bf16 %v634_v20  ;;  %v636_v26 = vunpack.c.h.bf16 %v634_v20  ;;  %v639_v27 = vunpack.c.l.bf16 %v649_v21  ;;  %v438_v57 = vld [vmem:[%s802_s5] sm:$0x3]  ;;  %v650_v10 = vld [vmem:[%s293_s21 + $0x8] sm:$0xff]  }
  0x11   : > { %659 = vmatpush3.bf16.msra.mxu0 %v682_v2  ;;  %v306_v6 = vrot.slane %v304_v5, 7  ;;  %v640_v29 = vunpack.c.h.bf16 %v649_v21  ;;  %v445_v58 = vsel %vm443_vm2, %v438_v57, 0  ;;  %v647_v14 = vunpack.c.l.bf16 %v650_v10 }
  0x12   : > { %665 = vmatpush3.bf16.msra.mxu1 %v445_v58 }
  0x13   : > { %v308_v7 = vsub.f32 %v303_v4, %v306_v6 }
  0x15   : > { %v309_v8 = vmax.f32 %v308_v7, 0.0 }
  0x17   : > { %v310_v9 = vadd.f32 1e-05, %v309_v8 }
  0x19   : > { %683 = vrsqrt.f32 %v310_v9  ;;  %v642_v9 = vld [vmem:[%s293_s21] sm:$0xff]  }
  0x1a   : > { %v643_v12 = vunpack.c.l.bf16 %v642_v9  ;;  %v644_v13 = vunpack.c.h.bf16 %v642_v9 }
  0x26   : > { %v684_v16 = vpop.eup %683 }
  0x27   : > { %v319_v17 = vrot.slane %v684_v16, %v318_v15 }
  0x29   : > { %v320_v18 = vcombine.high %v319_v17, %v319_v17 }
  0x2b   : > { %v327_v22 = vrot.slane %v320_v18, %v318_v15  ;;  %v648_v15 = vunpack.c.h.bf16 %v650_v10 }
  0x2d   : > { %v329_v24 = vmul.f32 %v327_v22, %v301_v19 }
  0x2f   : > { %v330_v30 = vmul.f32 %v329_v24, %v303_v4  ;;  %v344_v31 = vrot.slane %v329_v24, %v770_v23 }
  0x31   : > { %v331_v32 = vsub.f32 %v302_v28, %v330_v30  ;;  %v346_v33 = vmul.f32 %v635_v25, %v344_v31  ;;  %v347_v34 = vmul.f32 %v636_v26, %v344_v31  ;;  %v348_v35 = vmul.f32 %v639_v27, %v344_v31 }
  0x32   : > { %v349_v36 = vmul.f32 %v640_v29, %v344_v31 }
  0x33   : > { %v354_v37 = vrot.slane %v331_v32, %v770_v23 }
  0x35   : > { %v356_v38 = vadd.f32 %v354_v37, %v346_v33  ;;  %v357_v39 = vadd.f32 %v354_v37, %v347_v34  ;;  %v358_v40 = vadd.f32 %v354_v37, %v348_v35  ;;  %v359_v41 = vadd.f32 %v354_v37, %v349_v36 }
  0x37   : > { %v361_v42 = vsel %vm360_vm1, %v356_v38, 0.0  ;;  %v362_v43 = vsel %vm360_vm1, %v357_v39, 0.0  ;;  %v364_v44 = vsel %vm360_vm1, %v358_v40, 0.0  ;;  %v366_v46 = vsel %vm360_vm1, %v359_v41, 0.0 }
  0x38   : > { %v363_v45 = vadd.f32 %v362_v43, %v361_v42 }
  0x3a   : > { %v365_v47 = vadd.f32 %v364_v44, %v363_v45 }
  0x3c   : > { %v367_v48 = vadd.f32 %v366_v46, %v365_v47 }
  0x3e   : > { %v368_v49 = vrot.slane %v367_v48, 4 }
  0x40   : > { %v369_v50 = vadd.f32 %v368_v49, %v367_v48 }
  0x42   : > { %v370_v51 = vrot.slane %v369_v50, 2 }
  0x44   : > { %v371_v52 = vadd.f32 %v370_v51, %v369_v50 }
  0x46   : > { %v372_v53 = vrot.slane %v371_v52, 1 }
  0x48   : > { %v373_v54 = vadd.f32 %v372_v53, %v371_v52 }
  0x4a   : > { %v375_v55 = vmul.f32 0.03125, %v373_v54 }
  0x4c   : > { %v376_v56 = vpack.c.bf16 %v375_v55, %v375_v55 }
  0x4e   : > { %661 = vmatmul.mubr.msk.bf16.vlgmr.msra.gmra.mxu0 %vm360_vm1, %v376_v56 }
 0x10e   : > { %v430_v59 = vpop.f32.mrf.mxu0 }
 0x10f   : > { %v436_v60 = vmax.f32 %v430_v59, 0.0 }
 0x110   : > { %v662_v61 = vpop.f32.mrf.mxu0 }
 0x111   : > { %v437_v62 = vpack.c.bf16 %v436_v60, %v436_v60 }
 0x112   : > { %v433_v63 = vpop.f32.mrf.mxu0 }
 0x113   : > { %667 = vmatmul.mubr.msk.bf16.vlgmr.msra.gmra.mxu1 %vm439_vm3, %v437_v62 }
 0x114   : > { %v663_v0 = vpop.f32.mrf.mxu0 }
 0x1d3   : > { %v481_v1 = vpop.f32.mrf.mxu1 }
 0x1d4   : > { %v487_v2 = vsub.f32 0.0, %v481_v1 }
 0x1d5   : > { %v668_v3 = vpop.f32.mrf.mxu1 }
 0x1d6   : > { %v488_v4 = vmul.f32 1.442695, %v487_v2 }
 0x1d7   : > { %v484_v5 = vpop.f32.mrf.mxu1 }
 0x1d8   : > { %685 = vpow2.f32 %v488_v4 }
 0x1d9   : > { %v669_v6 = vpop.f32.mrf.mxu1 }
 0x1e5   : > { %v686_v7 = vpop.eup %685 }
 0x1e6   : > { %v490_v8 = vadd.f32 1.0, %v686_v7 }
 0x1e8   : > { %687 = vrcp.f32 %v490_v8 }
 0x1f5   : > { %v688_v11 = vpop.eup %687 }
 0x1f6   : > { %v496_v16 = vrot.slane %v688_v11, %v770_v23 }
 0x1f8   : > { %v497_v17 = vmul.f32 %v496_v16, %v356_v38  ;;  %v498_v18 = vmul.f32 %v496_v16, %v357_v39  ;;  %v499_v19 = vmul.f32 %v496_v16, %v358_v40  ;;  %v500_v20 = vmul.f32 %v496_v16, %v359_v41 }
 0x1fa   : > { %v509_v21 = vadd.f32 %v643_v12, %v497_v17  ;;  %v510_v22 = vadd.f32 %v644_v13, %v498_v18  ;;  %v511_v24 = vadd.f32 %v647_v14, %v499_v19  ;;  %v512_v25 = vadd.f32 %v648_v15, %v500_v20 }
 0x1fc   : > { %v513_v26 = vmax.f32 %v509_v21, 0.0  ;;  %v514_v27 = vmax.f32 %v510_v22, 0.0  ;;  %v515_v28 = vmax.f32 %v511_v24, 0.0  ;;  %v516_v29 = vmax.f32 %v512_v25, 0.0 }
 0x1fe   : > { %v629_v30 = vpack.c.bf16 %v513_v26, %v513_v26  ;;  %v630_v31 = vpack.c.bf16 %v514_v27, %v514_v27  ;;  %v631_v23 = vpack.c.bf16 %v515_v28, %v515_v28  ;;  %v632_v32 = vpack.c.bf16 %v516_v29, %v516_v29 }
 0x200   : > { %534 = vst.msk [vmem:[%s298_s25] sm:$0xf] %vm533_vm4, %v629_v30  ;;  %535 = vst.msk [vmem:[%s298_s25 + $0x4] sm:$0xf] %vm533_vm4, %v630_v31 }
 0x201   : > { %536 = vst.msk [vmem:[%s298_s25 + $0x8] sm:$0xf] %vm533_vm4, %v631_v23  ;;  %537 = vst.msk [vmem:[%s298_s25 + $0xc] sm:$0xf] %vm533_vm4, %v632_v32 }
 0x202 PF: > { %s17_s24 = sadd.s32 1, %s695_s24  }
 0x203   : > { %p14_p4 = scmp.ge.s32.totalorder %s17_s24, 4  }
 0x205   :  { %16 = sbr.rel (!%p14_p4) target bundleno = 1 (0x1), region = 81 }

// kernel: ecapa_tdnn_forward.15
= control target key start
LH: loop header
LB: loop body
LE: loop exit
PB: predicated region body
PF: predicated region fallthrough
CT: control target
= control target key end

     0   :  { %vm68_vm0 = vcmask 261120   ;;  %vm186_vm1 = vcmask 125952   ;;  %vm195_vm2 = vcmask 130048   ;;  %vm246_vm3 = vcmask 1040384   ;;  %s410_s1 = inlined_call_operand.vmem [shape: bf16[32,16], index: 1, kind: input, shape index: {}]   ;;  %s411_s0 = inlined_call_operand.vmem [shape: bf16[64,32], index: 0, kind: input, shape index: {}]   ;;  %s412_s2 = inlined_call_operand.vmem [shape: f32[1,16], index: 2, kind: input, shape index: {}]   ;;  %s413_s3 = inlined_call_operand.vmem [shape: bf16[64,16], index: 3, kind: output, shape index: {0}]   ;;  %s414_s4 = inlined_call_operand.vmem [shape: f32[1,2,16], index: 4, kind: output, shape index: {1}]  }
   0x1   :  { %v307_v0 = vld [vmem:[%s410_s1 + $0x8] sm:$0xff]   ;;  %v308_v1 = vld [vmem:[%s410_s1] sm:$0xff]   ;;  %v311_v3 = vld [vmem:[%s411_s0 + $0x10] sm:$0xff]   ;;  %vm248_vm4 = vcmask 123904  }
   0x2   :  { %291 = vmatprep.subr.bf16.mxu0 %v307_v0  ;;  %303 = vmatprep.subr.bf16.mxu1 %v307_v0  ;;  %v309_v2 = vld [vmem:[%s411_s0] sm:$0xff]   ;;  %v310_v4 = vld [vmem:[%s411_s0 + $0x8] sm:$0xff]   ;;  %v312_v5 = vld [vmem:[%s411_s0 + $0x18] sm:$0xff]  }
   0x3   :  { %292 = vmatpush3.bf16.msra.mxu0 %v307_v0  ;;  %305 = vmatpush3.bf16.msra.mxu1 %v307_v0  ;;  %v258_v6 = vld [vmem:[%s412_s2] ss:$0 sm:$0xff] }
   0x4   :  { %293 = vmatprep.subr.bf16.mxu0 %v308_v1  ;;  %304 = vmatprep.subr.bf16.mxu1 %v308_v1 }
   0x5   :  { %295 = vmatprep.mubr.msk.bf16.mxu0 %vm68_vm0, %v309_v2  ;;  %299 = vmatprep.mubr.msk.bf16.mxu1 %vm68_vm0, %v311_v3 }
   0x7   :  { %294 = vmatpush3.bf16.msra.mxu0 %v308_v1  ;;  %306 = vmatpush3.bf16.msra.mxu1 %v308_v1 }
   0xa   :  { %296 = vmatmul.mubr.msk.bf16.vlgmr.msra.gmra.mxu0 %vm68_vm0, %v310_v4  ;;  %300 = vmatmul.mubr.msk.bf16.vlgmr.msra.gmra.mxu1 %vm68_vm0, %v312_v5 }
  0xca   :  { %v297_v7 = vpop.f32.mrf.mxu0  ;;  %v301_v8 = vpop.f32.mrf.mxu1 }
  0xcb   :  { %v124_v9 = vadd.f32 %v297_v7, %v258_v6  ;;  %v140_v10 = vadd.f32 %v301_v8, %v258_v6 }
  0xcc   :  { %v115_v11 = vpop.f32.mrf.mxu0  ;;  %v131_v12 = vpop.f32.mrf.mxu1 }
  0xcd   :  { %v148_v13 = vmax.f32 %v124_v9, 0.0  ;;  %v116_v14 = vadd.f32 %v258_v6, %v115_v11  ;;  %v152_v15 = vmax.f32 %v140_v10, 0.0  ;;  %v132_v17 = vadd.f32 %v258_v6, %v131_v12 }
  0xce   :  { %v298_v16 = vpop.f32.mrf.mxu0  ;;  %v302_v18 = vpop.f32.mrf.mxu1 }
  0xcf   :  { %v279_v19 = vpack.c.bf16 %v148_v13, %v148_v13  ;;  %v146_v20 = vmax.f32 %v116_v14, 0.0  ;;  %v283_v21 = vpack.c.bf16 %v152_v15, %v152_v15  ;;  %v127_v22 = vadd.f32 %v298_v16, %v258_v6 }
  0xd0   :  { %v118_v23 = vpop.f32.mrf.mxu0  ;;  %v134_v24 = vpop.f32.mrf.mxu1  ;;  %v150_v27 = vmax.f32 %v132_v17, 0.0  ;;  %v143_v29 = vadd.f32 %v302_v18, %v258_v6  ;;  %v219_v36 = vmul.f32 %v148_v13, %v148_v13  ;;  %v199_v42 = vsel %vm195_vm2, %v148_v13, 0.0 }
  0xd1   :  { %189 = vst.msk [vmem:[%s413_s3 + $0x8] sm:$0xf] %vm186_vm1, %v279_v19  ;;  %v277_v25 = vpack.c.bf16 %v146_v20, %v146_v20  ;;  %193 = vst.msk [vmem:[%s413_s3 + $0x18] sm:$0xf] %vm186_vm1, %v283_v21  ;;  %v149_v26 = vmax.f32 %v127_v22, 0.0  ;;  %v119_v28 = vadd.f32 %v258_v6, %v118_v23  ;;  %v135_v30 = vadd.f32 %v258_v6, %v134_v24 }
  0xd2   :  { %v281_v32 = vpack.c.bf16 %v150_v27, %v150_v27  ;;  %v217_v33 = vmul.f32 %v146_v20, %v146_v20  ;;  %v153_v35 = vmax.f32 %v143_v29, 0.0  ;;  %v196_v38 = vsel %vm195_vm2, %v146_v20, 0.0 }
  0xd3   :  { %187 = vst.msk [vmem:[%s413_s3] sm:$0xf] %vm186_vm1, %v277_v25  ;;  %v280_v31 = vpack.c.bf16 %v149_v26, %v149_v26  ;;  %v147_v34 = vmax.f32 %v119_v28, 0.0  ;;  %v151_v37 = vmax.f32 %v135_v30, 0.0  ;;  %v220_v46 = vmul.f32 %v149_v26, %v149_v26 }
  0xd4   :  { %191 = vst.msk [vmem:[%s413_s3 + $0x10] sm:$0xf] %vm186_vm1, %v281_v32  ;;  %v284_v44 = vpack.c.bf16 %v153_v35, %v153_v35  ;;  %v225_v45 = vsel %vm195_vm2, %v217_v33, 0.0  ;;  %v228_v51 = vsel %vm195_vm2, %v219_v36, 0.0  ;;  %v201_v52 = vsel %vm195_vm2, %v149_v26, 0.0 }
  0xd5   :  { %190 = vst.msk [vmem:[%s413_s3 + $0xc] sm:$0xf] %vm186_vm1, %v280_v31  ;;  %v278_v39 = vpack.c.bf16 %v147_v34, %v147_v34  ;;  %v197_v40 = vsel %vm195_vm2, %v147_v34, 0.0  ;;  %v218_v41 = vmul.f32 %v147_v34, %v147_v34  ;;  %v282_v48 = vpack.c.bf16 %v151_v37, %v151_v37 }
  0xd6   :  { %v198_v43 = vadd.f32 %v197_v40, %v196_v38  ;;  %194 = vst.msk [vmem:[%s413_s3 + $0x1c] sm:$0xf] %vm186_vm1, %v284_v44  ;;  %v221_v53 = vmul.f32 %v150_v27, %v150_v27  ;;  %v230_v56 = vsel %vm195_vm2, %v220_v46, 0.0  ;;  %v203_v57 = vsel %vm195_vm2, %v150_v27, 0.0 }
  0xd7   :  { %188 = vst.msk [vmem:[%s413_s3 + $0x4] sm:$0xf] %vm186_vm1, %v278_v39  ;;  %v226_v47 = vsel %vm195_vm2, %v218_v41, 0.0  ;;  %192 = vst.msk [vmem:[%s413_s3 + $0x14] sm:$0xf] %vm186_vm1, %v282_v48  ;;  %v222_v58 = vmul.f32 %v151_v37, %v151_v37  ;;  %v223_v61 = vmul.f32 %v152_v15, %v152_v15  ;;  %v205_v63 = vsel %vm195_vm2, %v151_v37, 0.0 }
  0xd8   :  { %v200_v49 = vadd.f32 %v199_v42, %v198_v43  ;;  %v227_v50 = vadd.f32 %v226_v47, %v225_v45  ;;  %v232_v62 = vsel %vm195_vm2, %v221_v53, 0.0  ;;  %v207_v2 = vsel %vm195_vm2, %v152_v15, 0.0 }
  0xd9   :  { %v224_v3 = vmul.f32 %v153_v35, %v153_v35  ;;  %v234_v4 = vsel %vm195_vm2, %v222_v58, 0.0  ;;  %v236_v7 = vsel %vm195_vm2, %v223_v61, 0.0  ;;  %v209_v8 = vsel %vm195_vm2, %v153_v35, 0.0 }
  0xda   :  { %v229_v54 = vadd.f32 %v228_v51, %v227_v50  ;;  %v202_v55 = vadd.f32 %v201_v52, %v200_v49 }
  0xdb   :  { %v238_v11 = vsel %vm195_vm2, %v224_v3, 0.0 }
  0xdc   :  { %v204_v59 = vadd.f32 %v203_v57, %v202_v55  ;;  %v231_v60 = vadd.f32 %v230_v56, %v229_v54 }
  0xde   :  { %v206_v0 = vadd.f32 %v205_v63, %v204_v59  ;;  %v233_v1 = vadd.f32 %v232_v62, %v231_v60 }
  0xe0   :  { %v208_v5 = vadd.f32 %v207_v2, %v206_v0  ;;  %v235_v6 = vadd.f32 %v234_v4, %v233_v1 }
  0xe2   :  { %v210_v9 = vadd.f32 %v209_v8, %v208_v5  ;;  %v237_v10 = vadd.f32 %v236_v7, %v235_v6 }
  0xe4   :  { %v211_v12 = vrot.slane %v210_v9, 4  ;;  %v239_v13 = vadd.f32 %v238_v11, %v237_v10 }
  0xe6   :  { %v212_v14 = vadd.f32 %v211_v12, %v210_v9  ;;  %v240_v16 = vrot.slane %v239_v13, 4 }
  0xe8   :  { %v213_v17 = vrot.slane %v212_v14, 2  ;;  %v241_v18 = vadd.f32 %v240_v16, %v239_v13 }
  0xea   :  { %v214_v15 = vadd.f32 %v213_v17, %v212_v14  ;;  %v242_v19 = vrot.slane %v241_v18, 2 }
  0xec   :  { %v215_v20 = vrot.slane %v214_v15, 1  ;;  %v243_v21 = vadd.f32 %v242_v19, %v241_v18 }
  0xee   :  { %v244_v22 = vrot.slane %v243_v21, 1  ;;  %v216_v23 = vadd.f32 %v215_v20, %v214_v15 }
  0xf0   :  { %v245_v24 = vadd.f32 %v244_v22, %v243_v21 }
  0xf2   :  { %v247_v25 = vsel %vm246_vm3, %v216_v23, %v245_v24 }
  0xf3   :  { %249 = vst.msk [vmem:[%s414_s4] sm:$0x3] %vm248_vm4, %v247_v25 }

// kernel: ecapa_tdnn_forward.16
= control target key start
LH: loop header
LB: loop body
LE: loop exit
PB: predicated region body
PF: predicated region fallthrough
CT: control target
= control target key end

     0   :  { %s716_s24 = smov 0   ;;  %s776_s0 = inlined_call_operand.vmem [shape: bf16[2,32,32], index: 0, kind: input, shape index: {}]   ;;  %s777_s1 = inlined_call_operand.vmem [shape: bf16[2,32,16], index: 1, kind: input, shape index: {}]   ;;  %s778_s2 = inlined_call_operand.vmem [shape: f32[2,16], index: 2, kind: input, shape index: {}]   ;;  %s779_s3 = inlined_call_operand.vmem [shape: f32[1,16], index: 3, kind: input, shape index: {}]   ;;  %s780_s4 = inlined_call_operand.vmem [shape: f32[1,16], index: 4, kind: input, shape index: {}]   ;;  %s781_s5 = inlined_call_operand.vmem [shape: bf16[16,32], index: 5, kind: input, shape index: {}]   ;;  %s782_s6 = inlined_call_operand.vmem [shape: f32[1,32], index: 6, kind: input, shape index: {}]   ;;  %s783_s7 = inlined_call_operand.vmem [shape: f32[2,1,64], index: 7, kind: output, shape index: {}]  }
   0x1 LB: > { %s597_s25 = sadd.s32 4294967295, %s672_s24   ;;  %p601_p0 = scmp.ge.s32.totalorder %s672_s24, 1  ;;  %s672_s24 = sphi %s716_s24, %s17_s24  }
   0x2   : > { %p247_p1 = scmp.lt.s32.totalorder %s672_s24, 3 }
   0x4   : > { %p248_p2 = pnand %p601_p0, %p247_p1 }
   0x5   : > { %p282_p3 = scmp.lt.s32.totalorder (!%p248_p2), %s597_s25, 1  ;;  %s675_s20 = smov (!%p248_p2), 32  }
   0x6   : > { %251 = sbr.rel (%p248_p2) target bundleno = 513 (0x201), region = 48 }
   0xb   : > { %v651_v0 = vld [vmem:[%s781_s5] sm:$0xff]   ;;  %v674_v8 = vmov 1966171168   ;;  %v320_v10 = vlaneseq  ;;  %s785_s25 = smov (!%p282_p3, %s597_s25), 1  ;;  %vm381_vm0 = vcmask 130048   ;;  %vm437_vm1 = vcmask 261120  }
   0xc   : > { %v304_v1 = vld [vmem:[%s778_s2] sm:$0x3]  ;;  %635 = vmatprep.subr.bf16.mxu0 %v651_v0  ;;  %v318_v9 = vunpack.c.l.s4 %v674_v8  ;;  %s612_s30 = sshll.u32 %s785_s25, 4  ;;  %s294_s23 = scalar_lea.vmem %s783_s7, %s785_s25  ;;  %vm536_vm4 = vcmask 516096  }
   0xd   : > { %v307_v2 = vmul.f32 0.015625, %v304_v1  ;;  %636 = vmatpush3.bf16.msra.mxu0 %v651_v0  ;;  %v321_v12 = vshrl.u32 %v320_v10, 7  ;;  %s291_s10 = scalar_lea.vmem %s777_s1, %s612_s30  ;;  %v305_v17 = vld [vmem:[%s779_s3] sm:$0x1]  ;;  %s286_s19 = scalar_lea.vmem %s776_s0, %s612_s30 }
   0xe   : > { %v319_v11 = vunpack.c.0.s8 %v318_v9  ;;  %v623_v18 = vld [vmem:[%s291_s10] sm:$0xff]   ;;  %v631_v19 = vld [vmem:[%s291_s10 + $0x8] sm:$0xff]  }
   0xf   : > { %v308_v3 = vmul.f32 %v307_v2, %v307_v2  ;;  %v347_v21 = vsub.s32 0, %v321_v12  ;;  %v624_v23 = vunpack.c.l.bf16 %v623_v18  ;;  %v625_v24 = vunpack.c.h.bf16 %v623_v18  ;;  %v306_v26 = vld [vmem:[%s780_s4] sm:$0x1] }
  0x10   : > { %v322_v13 = vsub.s32 %v319_v11, %v321_v12  ;;  %v628_v25 = vunpack.c.l.bf16 %v631_v19  ;;  %v629_v27 = vunpack.c.h.bf16 %v631_v19  ;;  %v606_v43 = vld [vmem:[%s782_s6] ss:$0 sm:$0xff] }
  0x11   : > { %v310_v4 = vrot.slane %v308_v3, 7 }
  0x13   : > { %v312_v5 = vsub.f32 %v307_v2, %v310_v4 }
  0x15   : > { %v313_v6 = vmax.f32 %v312_v5, 0.0 }
  0x17   : > { %v314_v7 = vadd.f32 1e-05, %v313_v6 }
  0x19   : > { %652 = vrsqrt.f32 %v314_v7 }
  0x26   : > { %v653_v14 = vpop.eup %652 }
  0x27   : > { %v323_v15 = vrot.slane %v653_v14, %v322_v13 }
  0x29   : > { %v324_v16 = vcombine.high %v323_v15, %v323_v15 }
  0x2b   : > { %v331_v20 = vrot.slane %v324_v16, %v322_v13 }
  0x2d   : > { %v333_v22 = vmul.f32 %v331_v20, %v305_v17 }
  0x2f   : > { %v334_v28 = vmul.f32 %v333_v22, %v307_v2  ;;  %v348_v29 = vrot.slane %v333_v22, %v347_v21 }
  0x31   : > { %v335_v30 = vsub.f32 %v306_v26, %v334_v28  ;;  %v350_v31 = vmul.f32 %v624_v23, %v348_v29  ;;  %v351_v32 = vmul.f32 %v625_v24, %v348_v29  ;;  %v352_v33 = vmul.f32 %v628_v25, %v348_v29  ;;  %v615_v25 = vld [vmem:[%s286_s19] sm:$0xff]   ;;  %v630_v26 = vld [vmem:[%s286_s19 + $0x8] sm:$0xff]  }
  0x32   : > { %v353_v34 = vmul.f32 %v629_v27, %v348_v29  ;;  %v616_v27 = vunpack.c.l.bf16 %v615_v25  ;;  %v617_v28 = vunpack.c.h.bf16 %v615_v25  ;;  %v620_v29 = vunpack.c.l.bf16 %v630_v26 }
  0x33   : > { %v358_v35 = vrot.slane %v335_v30, %v347_v21 }
  0x35   : > { %v360_v36 = vadd.f32 %v358_v35, %v350_v31  ;;  %v361_v37 = vadd.f32 %v358_v35, %v351_v32  ;;  %v362_v38 = vadd.f32 %v358_v35, %v352_v33  ;;  %v363_v39 = vadd.f32 %v358_v35, %v353_v34 }
  0x36   : > { %v621_v31 = vunpack.c.h.bf16 %v630_v26 }
  0x37   : > { %v364_v40 = vpack.c.bf16 %v361_v37, %v360_v36  ;;  %v365_v41 = vpack.c.bf16 %v363_v39, %v362_v38 }
  0x39   : > { %637 = vmatprep.mubr.msk.bf16.mxu0 %vm381_vm0, %v364_v40 }
  0x3a   : > { %638 = vmatmul.mubr.msk.bf16.vlgmr.msra.gmra.mxu0 %vm381_vm0, %v365_v41 }
  0xfa   : > { %v639_v42 = vpop.f32.mrf.mxu0 }
  0xfb   : > { %v431_v46 = vadd.f32 %v639_v42, %v606_v43 }
  0xfc   : > { %v422_v44 = vpop.f32.mrf.mxu0 }
  0xfd   : > { %v423_v47 = vadd.f32 %v606_v43, %v422_v44  ;;  %v440_v52 = vsel %vm437_vm1, %v431_v46, -inf }
  0xfe   : > { %v640_v45 = vpop.f32.mrf.mxu0 }
  0xff   : > { %v434_v48 = vadd.f32 %v640_v45, %v606_v43  ;;  %v438_v53 = vsel %vm437_vm1, %v423_v47, -inf }
 0x100   : > { %v425_v49 = vpop.f32.mrf.mxu0 }
 0x101   : > { %v441_v50 = vsel %vm437_vm1, %v434_v48, -inf  ;;  %v426_v51 = vadd.f32 %v606_v43, %v425_v49 }
 0x102   : > { %v443_v55 = vmax.f32 %v440_v52, %v441_v50 }
 0x103   : > { %v439_v54 = vsel %vm437_vm1, %v426_v51, -inf }
 0x104   : > { %v442_v56 = vmax.f32 %v438_v53, %v439_v54 }
 0x106   : > { %v444_v57 = vmax.f32 %v442_v56, %v443_v55 }
 0x108   : > { %v445_v58 = vrot.slane %v444_v57, 4 }
 0x10a   : > { %v446_v59 = vmax.f32 %v444_v57, %v445_v58 }
 0x10c   : > { %v447_v60 = vrot.slane %v446_v59, 2 }
 0x10e   : > { %v448_v61 = vmax.f32 %v446_v59, %v447_v60 }
 0x110   : > { %v449_v62 = vrot.slane %v448_v61, 1 }
 0x112   : > { %v450_v63 = vmax.f32 %v448_v61, %v449_v62 }
 0x114   : > { %v451_v0 = vsub.f32 %v423_v47, %v450_v63  ;;  %v452_v1 = vsub.f32 %v426_v51, %v450_v63  ;;  %v453_v2 = vsub.f32 %v431_v46, %v450_v63  ;;  %v454_v3 = vsub.f32 %v434_v48, %v450_v63 }
 0x116   : > { %v455_v4 = vmul.f32 1.442695, %v451_v0  ;;  %v457_v5 = vmul.f32 1.442695, %v452_v1  ;;  %v459_v6 = vmul.f32 1.442695, %v453_v2 }
 0x117   : > { %v461_v7 = vmul.f32 1.442695, %v454_v3 }
 0x118   : > { %654 = vpow2.f32 %v455_v4 }
 0x119   : > { %656 = vpow2.f32 %v457_v5 }
 0x11a   : > { %658 = vpow2.f32 %v459_v6 }
 0x11b   : > { %660 = vpow2.f32 %v461_v7 }
 0x125   : > { %v655_v8 = vpop.eup %654 }
 0x126   : > { %v657_v9 = vpop.eup %656  ;;  %v463_v10 = vsel %vm437_vm1, %v655_v8, 0.0 }
 0x127   : > { %v659_v11 = vpop.eup %658  ;;  %v464_v12 = vsel %vm437_vm1, %v657_v9, 0.0 }
 0x128   : > { %v661_v13 = vpop.eup %660  ;;  %v465_v14 = vadd.f32 %v464_v12, %v463_v10  ;;  %v466_v15 = vsel %vm437_vm1, %v659_v11, 0.0 }
 0x129   : > { %v468_v17 = vsel %vm437_vm1, %v661_v13, 0.0 }
 0x12a   : > { %v467_v16 = vadd.f32 %v466_v15, %v465_v14 }
 0x12c   : > { %v469_v18 = vadd.f32 %v468_v17, %v467_v16 }
 0x12e   : > { %v470_v19 = vrot.slane %v469_v18, 4 }
 0x130   : > { %v471_v20 = vadd.f32 %v470_v19, %v469_v18 }
 0x132   : > { %v472_v21 = vrot.slane %v471_v20, 2 }
 0x134   : > { %v473_v22 = vadd.f32 %v472_v21, %v471_v20 }
 0x136   : > { %v474_v23 = vrot.slane %v473_v22, 1 }
 0x138   : > { %v475_v24 = vadd.f32 %v474_v23, %v473_v22 }
 0x13a   : > { %662 = vrcp.f32 %v475_v24 }
 0x147   : > { %v663_v30 = vpop.eup %662 }
 0x148   : > { %v477_v32 = vmul.f32 %v663_v30, %v655_v8  ;;  %v478_v33 = vmul.f32 %v663_v30, %v657_v9  ;;  %v479_v34 = vmul.f32 %v663_v30, %v659_v11  ;;  %v480_v35 = vmul.f32 %v663_v30, %v661_v13 }
 0x14a   : > { %v481_v36 = vmul.f32 %v616_v27, %v477_v32  ;;  %v482_v37 = vmul.f32 %v617_v28, %v478_v33  ;;  %v483_v38 = vmul.f32 %v620_v29, %v479_v34  ;;  %v484_v39 = vmul.f32 %v621_v31, %v480_v35 }
 0x14c   : > { %v485_v40 = vsel %vm437_vm1, %v481_v36, 0.0  ;;  %v486_v41 = vsel %vm437_vm1, %v482_v37, 0.0  ;;  %v488_v43 = vsel %vm437_vm1, %v483_v38, 0.0  ;;  %v490_v45 = vsel %vm437_vm1, %v484_v39, 0.0 }
 0x14d   : > { %v487_v42 = vadd.f32 %v486_v41, %v485_v40 }
 0x14f   : > { %v489_v44 = vadd.f32 %v488_v43, %v487_v42 }
 0x151   : > { %v491_v46 = vadd.f32 %v490_v45, %v489_v44 }
 0x153   : > { %v492_v47 = vrot.slane %v491_v46, 4 }
 0x155   : > { %v493_v48 = vadd.f32 %v492_v47, %v491_v46 }
 0x157   : > { %v494_v49 = vrot.slane %v493_v48, 2 }
 0x159   : > { %v495_v50 = vadd.f32 %v494_v49, %v493_v48 }
 0x15b   : > { %v496_v51 = vrot.slane %v495_v50, 1 }
 0x15d   : > { %v497_v52 = vadd.f32 %v496_v51, %v495_v50 }
 0x15f   : > { %v498_v53 = vsub.f32 %v616_v27, %v497_v52  ;;  %v499_v54 = vsub.f32 %v617_v28, %v497_v52  ;;  %v500_v55 = vsub.f32 %v620_v29, %v497_v52  ;;  %v501_v56 = vsub.f32 %v621_v31, %v497_v52 }
 0x161   : > { %v502_v57 = vmul.f32 %v498_v53, %v498_v53  ;;  %v503_v58 = vmul.f32 %v499_v54, %v499_v54  ;;  %v504_v59 = vmul.f32 %v500_v55, %v500_v55  ;;  %v505_v60 = vmul.f32 %v501_v56, %v501_v56 }
 0x163   : > { %v506_v61 = vmul.f32 %v502_v57, %v477_v32  ;;  %v507_v62 = vmul.f32 %v503_v58, %v478_v33  ;;  %v508_v63 = vmul.f32 %v504_v59, %v479_v34  ;;  %v509_v0 = vmul.f32 %v505_v60, %v480_v35 }
 0x165   : > { %v510_v1 = vsel %vm437_vm1, %v506_v61, 0.0  ;;  %v511_v2 = vsel %vm437_vm1, %v507_v62, 0.0  ;;  %v513_v4 = vsel %vm437_vm1, %v508_v63, 0.0  ;;  %v515_v6 = vsel %vm437_vm1, %v509_v0, 0.0 }
 0x166   : > { %v512_v3 = vadd.f32 %v511_v2, %v510_v1 }
 0x168   : > { %v514_v5 = vadd.f32 %v513_v4, %v512_v3 }
 0x16a   : > { %v516_v7 = vadd.f32 %v515_v6, %v514_v5 }
 0x16c   : > { %v517_v8 = vrot.slane %v516_v7, 4 }
 0x16e   : > { %v518_v9 = vadd.f32 %v517_v8, %v516_v7 }
 0x170   : > { %v519_v10 = vrot.slane %v518_v9, 2 }
 0x172   : > { %v520_v11 = vadd.f32 %v519_v10, %v518_v9 }
 0x174   : > { %v521_v12 = vrot.slane %v520_v11, 1 }
 0x176   : > { %v522_v13 = vadd.f32 %v521_v12, %v520_v11 }
 0x178   : > { %v523_v14 = vadd.f32 1e-08, %v522_v13 }
 0x17a   : > { %664 = vrsqrt.f32 %v523_v14  ;;  %vm526_vm2 = vcmp.eq.f32.partialorder %v523_v14, inf  ;;  %v529_v17 = vand.u32 2147483648, %v523_v14  ;;  %vm528_vm3 = vcmp.eq.f32.partialorder %v523_v14, 0.0 }
 0x187   : > { %v665_v15 = vpop.eup %664 }
 0x188   : > { %v525_v16 = vmul.f32 %v665_v15, %v523_v14 }
 0x18a   : > { %v527_v18 = vsel %vm526_vm2, %v523_v14, %v525_v16 }
 0x18b   : > { %v530_v19 = vsel %vm528_vm3, %v529_v17, %v527_v18 }
 0x18c   : > { %532 = vrot.lane.b32.xlu0 %v530_v19, %s675_s20 }
 0x1fe   : > { %v533_v20 = vpop.permute.xlu0 %532 }
 0x1ff   : > { %v535_v21 = vsel %vm437_vm1, %v497_v52, %v533_v20 }
 0x200   : > { %537 = vst.msk [vmem:[%s294_s23] sm:$0x1] %vm536_vm4, %v535_v21 }
 0x201 PF: > { %s17_s24 = sadd.s32 1, %s672_s24  }
 0x202   : > { %p14_p4 = scmp.ge.s32.totalorder %s17_s24, 4  }
 0x204   :  { %16 = sbr.rel (!%p14_p4) target bundleno = 1 (0x1), region = 81 }

// kernel: ecapa_tdnn_forward.12
= control target key start
LH: loop header
LB: loop body
LE: loop exit
PB: predicated region body
PF: predicated region fallthrough
CT: control target
= control target key end

     0   :  { %v2960_v7 = vmov 1966171168   ;;  %v46_v9 = vlaneseq  ;;  %vm162_vm0 = vcmask 1045504   ;;  %vm122_vm1 = vcmask 1040384   ;;  %s2961_s17 = smov 8   ;;  %s2962_s18 = smov 4   ;;  %s4012_s1 = inlined_call_operand.vmem [shape: f32[2,32], index: 1, kind: input, shape index: {}]   ;;  %s4013_s0 = inlined_call_operand.vmem [shape: bf16[2,32,32], index: 0, kind: input, shape index: {}]   ;;  %s4014_s2 = inlined_call_operand.vmem [shape: f32[1,32], index: 2, kind: input, shape index: {}]   ;;  %s4015_s3 = inlined_call_operand.vmem [shape: f32[1,32], index: 3, kind: input, shape index: {}]   ;;  %s4016_s4 = inlined_call_operand.vmem [shape: bf16[7,12,4], index: 4, kind: input, shape index: {}]   ;;  %s4017_s5 = inlined_call_operand.vmem [shape: f32[7,1,4], index: 5, kind: input, shape index: {}]   ;;  %s4018_s6 = inlined_call_operand.vmem [shape: f32[7,1,4], index: 6, kind: input, shape index: {}]   ;;  %s4019_s7 = inlined_call_operand.vmem [shape: f32[7,1,4], index: 7, kind: input, shape index: {}]   ;;  %s4020_s8 = inlined_call_operand.vmem [shape: bf16[2,32,32], index: 8, kind: output, shape index: {}]  }
   0x1   :  { %v30_v0 = vld [vmem:[%s4012_s1] sm:$0x3]  ;;  %v44_v8 = vunpack.c.l.s4 %v2960_v7  ;;  %v2638_v18 = vld [vmem:[%s4013_s0 + $0x8] sm:$0xff]   ;;  %v2639_v21 = vld [vmem:[%s4013_s0 + $0x10] sm:$0xff]   ;;  %vm143_vm2 = vcmask 1046528   ;;  %s2963_s19 = smov 124  }
   0x2   :  { %v33_v1 = vmul.f32 0.015625, %v30_v0  ;;  %v47_v11 = vshrl.u32 %v46_v9, 7  ;;  %v31_v16 = vld [vmem:[%s4014_s2] sm:$0x1]  ;;  %v2640_v22 = vld [vmem:[%s4013_s0 + $0x18] sm:$0xff]   ;;  %v2628_v26 = vunpack.c.l.bf16 %v2638_v18  ;;  %v2629_v28 = vunpack.c.h.bf16 %v2638_v18  ;;  %s2964_s28 = smov 120  }
   0x3   :  { %v45_v10 = vunpack.c.0.s8 %v44_v8  ;;  %v2623_v17 = vld [vmem:[%s4013_s0] sm:$0xff]   ;;  %v2632_v29 = vunpack.c.l.bf16 %v2639_v21  ;;  %v2633_v30 = vunpack.c.h.bf16 %v2639_v21  ;;  %v2636_v31 = vunpack.c.l.bf16 %v2640_v22  ;;  %s2965_s14 = smov 116   ;;  %s2966_s22 = smov 112  }
   0x4   :  { %v34_v2 = vmul.f32 %v33_v1, %v33_v1  ;;  %v81_v20 = vsub.s32 0, %v47_v11  ;;  %v2624_v24 = vunpack.c.l.bf16 %v2623_v17  ;;  %v2625_v25 = vunpack.c.h.bf16 %v2623_v17  ;;  %v32_v27 = vld [vmem:[%s4015_s3] sm:$0x1]  ;;  %s2967_s1 = smov 108   ;;  %s2968_s16 = smov 104  }
   0x5   :  { %v48_v12 = vsub.s32 %v45_v10, %v47_v11  ;;  %v2637_v34 = vunpack.c.h.bf16 %v2640_v22  ;;  %v2889_v45 = vld [vmem:[%s4016_s4] sm:$0x3f]   ;;  %vm181_vm3 = vcmask 31744   ;;  %vm192_vm4 = vcmask 64512   ;;  %s2969_s24 = smov 12  }
   0x6   :  { %v36_v3 = vrot.slane %v34_v2, 7  ;;  %2748 = vmatprep.subr.msk.bf16.mxu0 %vm162_vm0, %v2889_v45  ;;  %2749 = vmatprep.subr.msk.bf16.mxu1 %vm162_vm0, %v2889_v45  ;;  %v226_v2 = vsel %vm162_vm0, %v2889_v45, 0  ;;  %vm215_vm5 = vcmask 97280   ;;  %vm2451_vm6 = vcmask 130048  }
   0x7   :  { %2677 = vmatpush3.bf16.msra.mxu0 %v226_v2  ;;  %2747 = vmatpush3.bf16.msra.mxu1 %v226_v2  ;;  %vm2460_vm7 = vcmask 162816   ;;  %vm2469_vm8 = vcmask 195584   ;;  %vm2478_vm9 = vcmask 228352   ;;  %vm2515_vm10 = vcmask 257024  }
   0x8   :  { %v38_v4 = vsub.f32 %v33_v1, %v36_v3 }
   0xa   :  { %v39_v5 = vmax.f32 %v38_v4, 0.0 }
   0xc   :  { %v40_v6 = vadd.f32 1e-05, %v39_v5 }
   0xe   :  { %2896 = vrsqrt.f32 %v40_v6 }
  0x1b   :  { %v2897_v13 = vpop.eup %2896 }
  0x1c   :  { %v49_v14 = vrot.slane %v2897_v13, %v48_v12 }
  0x1e   :  { %v50_v15 = vcombine.high %v49_v14, %v49_v14 }
  0x20   :  { %v57_v19 = vrot.slane %v50_v15, %v48_v12 }
  0x22   :  { %v59_v23 = vmul.f32 %v57_v19, %v31_v16 }
  0x24   :  { %v60_v32 = vmul.f32 %v59_v23, %v33_v1  ;;  %v82_v33 = vrot.slane %v59_v23, %v81_v20 }
  0x26   :  { %v61_v35 = vsub.f32 %v32_v27, %v60_v32  ;;  %v84_v36 = vmul.f32 %v2624_v24, %v82_v33  ;;  %v85_v37 = vmul.f32 %v2625_v25, %v82_v33  ;;  %v86_v38 = vmul.f32 %v2628_v26, %v82_v33 }
  0x27   :  { %v87_v39 = vmul.f32 %v2629_v28, %v82_v33  ;;  %v88_v40 = vmul.f32 %v2632_v29, %v82_v33  ;;  %v89_v41 = vmul.f32 %v2633_v30, %v82_v33  ;;  %v90_v42 = vmul.f32 %v2636_v31, %v82_v33 }
  0x28   :  { %v96_v43 = vrot.slane %v61_v35, %v81_v20  ;;  %v91_v44 = vmul.f32 %v2637_v34, %v82_v33 }
  0x2a   :  { %v3042_v46 = vadd.f32 %v96_v43, %v84_v36  ;;  %v3044_v47 = vadd.f32 %v96_v43, %v85_v37  ;;  %v3046_v48 = vadd.f32 %v96_v43, %v86_v38  ;;  %v3048_v49 = vadd.f32 %v96_v43, %v87_v39 }
  0x2b   :  { %v3050_v50 = vadd.f32 %v96_v43, %v88_v40  ;;  %v3052_v51 = vadd.f32 %v96_v43, %v89_v41  ;;  %v3054_v52 = vadd.f32 %v96_v43, %v90_v42  ;;  %v3056_v53 = vadd.f32 %v96_v43, %v91_v44 }
  0x2c   :  { %v106_v54 = vmax.f32 %v3042_v46, 0.0  ;;  %v107_v55 = vmax.f32 %v3044_v47, 0.0  ;;  %v108_v56 = vmax.f32 %v3046_v48, 0.0  ;;  %v109_v57 = vmax.f32 %v3048_v49, 0.0 }
  0x2d   :  { %v110_v58 = vmax.f32 %v3050_v50, 0.0  ;;  %v111_v59 = vmax.f32 %v3052_v51, 0.0  ;;  %v112_v60 = vmax.f32 %v3054_v52, 0.0  ;;  %v113_v61 = vmax.f32 %v3056_v53, 0.0  ;;  %v2890_v53 = vld [vmem:[%s4016_s4 + $0x8] sm:$0x3f]  }
  0x2e   :  { %v3068_v62 = vpack.c.bf16 %v107_v55, %v106_v54  ;;  %v3070_v63 = vpack.c.bf16 %v109_v57, %v108_v56  ;;  %v3101_v33 = vpack.i.bf16 %v109_v57, %v108_v56  ;;  %v3105_v34 = vpack.i.bf16 %v107_v55, %v106_v54  ;;  %2750 = vmatprep.subr.msk.bf16.mxu1 %vm162_vm0, %v2890_v53  ;;  %v2528_v56 = vld [vmem:[%s4017_s5] ss:$0 sm:$0xff] }
  0x2f   :  { %v3072_v0 = vpack.c.bf16 %v111_v59, %v110_v58  ;;  %v3074_v1 = vpack.c.bf16 %v113_v61, %v112_v60  ;;  %v3109_v35 = vpack.i.bf16 %v113_v61, %v112_v60  ;;  %v3111_v36 = vpack.i.bf16 %v111_v59, %v110_v58 }
  0x30   :  { %v123_v3 = vrot.slane %v3068_v62, 7  ;;  %v124_v4 = vrot.slane %v3070_v63, 7  ;;  %v562_v54 = vsel %vm162_vm0, %v2890_v53, 0 }
  0x31   :  { %v126_v5 = vrot.slane %v3072_v0, 7  ;;  %v127_v6 = vrot.slane %v3074_v1, 7 }
  0x32   :  { %v125_v7 = vsel %vm122_vm1, %v123_v3, %v124_v4  ;;  %v132_v8 = vsel %vm122_vm1, 0, %v123_v3  ;;  %v136_v9 = vsel %vm122_vm1, %v124_v4, 0 }
  0x33   :  { %v163_v10 = vrot.slane %v132_v8, 2  ;;  %v164_v11 = vrot.slane %v125_v7, 2  ;;  %v144_v12 = vrot.slane %v132_v8, 1  ;;  %v145_v13 = vrot.slane %v125_v7, 1 }
  0x34   :  { %v166_v14 = vrot.slane %v136_v9, 2  ;;  %v147_v15 = vrot.slane %v136_v9, 1  ;;  %v128_v16 = vsel %vm122_vm1, %v126_v5, %v127_v6  ;;  %v138_v17 = vsel %vm122_vm1, %v127_v6, 0 }
  0x35   :  { %v165_v18 = vsel %vm162_vm0, %v163_v10, %v164_v11  ;;  %v146_v19 = vsel %vm143_vm2, %v144_v12, %v145_v13  ;;  %v150_v20 = vrot.slane %v128_v16, 1  ;;  %v134_v21 = vsel %vm122_vm1, 0, %v126_v5 }
  0x36   :  { %173 = vrot.lane.b32.xlu1 %v165_v18, %s2961_s17  ;;  %154 = vrot.lane.b32.xlu0 %v146_v19, %s2962_s18  ;;  %v167_v22 = vsel %vm162_vm0, %v164_v11, %v166_v14  ;;  %v148_v23 = vsel %vm143_vm2, %v145_v13, %v147_v15  ;;  %v152_v24 = vrot.slane %v138_v17, 1  ;;  %v149_v25 = vrot.slane %v134_v21, 1 }
  0x37   :  { %v169_v26 = vrot.slane %v128_v16, 2  ;;  %v171_v29 = vrot.slane %v138_v17, 2  ;;  %v168_v30 = vrot.slane %v134_v21, 2 }
  0x38   :  { %v153_v27 = vsel %vm143_vm2, %v150_v20, %v152_v24  ;;  %v151_v28 = vsel %vm143_vm2, %v149_v25, %v150_v20 }
  0x39   :  { %v172_v31 = vsel %vm162_vm0, %v169_v26, %v171_v29  ;;  %v170_v32 = vsel %vm162_vm0, %v168_v30, %v169_v26 }
  0x3a   :  { %175 = vrot.lane.b32.xlu1 %v167_v22, %s2961_s17  ;;  %156 = vrot.lane.b32.xlu0 %v148_v23, %s2962_s18 }
  0x3e   :  { %160 = vrot.lane.b32.xlu1 %v153_v27, %s2962_s18  ;;  %158 = vrot.lane.b32.xlu0 %v151_v28, %s2962_s18 }
  0x42   :  { %179 = vrot.lane.b32.xlu1 %v172_v31, %s2961_s17  ;;  %177 = vrot.lane.b32.xlu0 %v170_v32, %s2961_s17 }
  0x46   :  { %2775 = vrot.lane.b32.xlu1 %v3101_v33, %s2963_s19  ;;  %2770 = vrot.lane.b32.xlu0 %v3105_v34, %s2963_s19 }
  0x4a   :  { %2785 = vrot.lane.b32.xlu1 %v3109_v35, %s2963_s19  ;;  %2780 = vrot.lane.b32.xlu0 %v3111_v36, %s2963_s19 }
  0xa8   :  { %v174_v37 = vpop.permute.xlu1 %173  ;;  %v155_v38 = vpop.permute.xlu0 %154 }
  0xa9   :  { %v183_v39 = vsel %vm181_vm3, %v132_v8, %v155_v38 }
  0xaa   :  { %v194_v40 = vsel %vm192_vm4, %v183_v39, %v174_v37 }
  0xab   :  { %2678 = vmatprep.mubr.msk.bf16.mxu0 %vm215_vm5, %v194_v40 }
  0xac   :  { %v176_v41 = vpop.permute.xlu1 %175  ;;  %v157_v42 = vpop.permute.xlu0 %156 }
  0xad   :  { %v186_v43 = vsel %vm181_vm3, %v125_v7, %v157_v42 }
  0xae   :  { %v196_v44 = vsel %vm192_vm4, %v186_v43, %v176_v41 }
  0xaf   :  { %2679 = vmatmul.mubr.msk.bf16.vlgmr.msra.gmra.mxu0 %vm215_vm5, %v196_v44 }
  0xb0   :  { %v161_v45 = vpop.permute.xlu1 %160  ;;  %v159_v46 = vpop.permute.xlu0 %158 }
  0xb1   :  { %v191_v47 = vsel %vm181_vm3, %v128_v16, %v161_v45  ;;  %v188_v48 = vsel %vm181_vm3, %v134_v21, %v159_v46 }
  0xb4   :  { %v180_v49 = vpop.permute.xlu1 %179  ;;  %v178_v50 = vpop.permute.xlu0 %177 }
  0xb5   :  { %v200_v51 = vsel %vm192_vm4, %v191_v47, %v180_v49  ;;  %v198_v52 = vsel %vm192_vm4, %v188_v48, %v178_v50 }
  0xb6   :  { %2682 = vmatprep.mubr.msk.bf16.mxu1 %vm215_vm5, %v198_v52 }
  0xb7   :  { %2683 = vmatmul.mubr.msk.bf16.vlgmr.msra.gmra.mxu1 %vm215_vm5, %v200_v51 }
  0xb8   :  { %2687 = vmatpush3.bf16.msra.mxu1 %v562_v54 }
 0x16f   :  { %v2680_v55 = vpop.f32.mrf.mxu0 }
 0x170   :  { %v3137_v60 = vadd.f32 %v2680_v55, %v2528_v56 }
 0x171   :  { %v262_v57 = vpop.f32.mrf.mxu0 }
 0x172   :  { %v3135_v58 = vadd.f32 %v2528_v56, %v262_v57  ;;  %v318_v6 = vmul.f32 %v3137_v60, %v3137_v60  ;;  %v296_v10 = vsel %vm181_vm3, %v3137_v60, 0.0 }
 0x173   :  { %v2681_v59 = vpop.f32.mrf.mxu0 }
 0x174   :  { %v316_v2 = vmul.f32 %v3135_v58, %v3135_v58  ;;  %v3141_v3 = vadd.f32 %v2681_v59, %v2528_v56  ;;  %v293_v7 = vsel %vm181_vm3, %v3135_v58, 0.0  ;;  %v327_v20 = vsel %vm181_vm3, %v318_v6, 0.0 }
 0x175   :  { %v265_v61 = vpop.f32.mrf.mxu0 }
 0x176   :  { %v3143_v4 = vadd.f32 %v2528_v56, %v265_v61  ;;  %v324_v13 = vsel %vm181_vm3, %v316_v2, 0.0  ;;  %v319_v14 = vmul.f32 %v3141_v3, %v3141_v3  ;;  %v298_v21 = vsel %vm181_vm3, %v3141_v3, 0.0 }
 0x177   :  { %v2684_v5 = vpop.f32.mrf.mxu1 }
 0x178   :  { %v294_v8 = vsel %vm181_vm3, %v3143_v4, 0.0  ;;  %v317_v9 = vmul.f32 %v3143_v4, %v3143_v4  ;;  %v3164_v22 = vadd.f32 %v2684_v5, %v2528_v56  ;;  %v329_v27 = vsel %vm181_vm3, %v319_v14, 0.0 }
 0x179   :  { %v295_v11 = vadd.f32 %v294_v8, %v293_v7  ;;  %v278_v12 = vpop.f32.mrf.mxu1 }
 0x17a   :  { %v325_v15 = vsel %vm181_vm3, %v317_v9, 0.0  ;;  %v3159_v16 = vadd.f32 %v2528_v56, %v278_v12  ;;  %v322_v37 = vmul.f32 %v3164_v22, %v3164_v22  ;;  %v304_v43 = vsel %vm181_vm3, %v3164_v22, 0.0 }
 0x17b   :  { %v297_v17 = vadd.f32 %v296_v10, %v295_v11  ;;  %v326_v18 = vadd.f32 %v325_v15, %v324_v13  ;;  %v2685_v19 = vpop.f32.mrf.mxu1 }
 0x17c   :  { %v320_v23 = vmul.f32 %v3159_v16, %v3159_v16  ;;  %v300_v28 = vsel %vm181_vm3, %v3159_v16, 0.0  ;;  %v3171_v29 = vadd.f32 %v2685_v19, %v2528_v56  ;;  %v335_v48 = vsel %vm181_vm3, %v322_v37, 0.0 }
 0x17d   :  { %v328_v24 = vadd.f32 %v327_v20, %v326_v18  ;;  %v299_v25 = vadd.f32 %v298_v21, %v297_v17  ;;  %v281_v26 = vpop.f32.mrf.mxu1  ;;  %v2776_v17 = vpop.permute.xlu1 %2775 }
 0x17e   :  { %v282_v30 = vadd.f32 %v2528_v56, %v281_v26  ;;  %v331_v38 = vsel %vm181_vm3, %v320_v23, 0.0  ;;  %v323_v44 = vmul.f32 %v3171_v29, %v3171_v29  ;;  %v306_v49 = vsel %vm181_vm3, %v3171_v29, 0.0  ;;  %v2771_v18 = vpop.permute.xlu0 %2770 }
 0x17f   :  { %v301_v31 = vadd.f32 %v300_v28, %v299_v25  ;;  %v330_v32 = vadd.f32 %v329_v27, %v328_v24  ;;  %v2534_v27 = vld [vmem:[%s4018_s6] ss:$0 sm:$0xff] }
 0x180   :  { %v302_v39 = vsel %vm181_vm3, %v282_v30, 0.0  ;;  %v321_v40 = vmul.f32 %v282_v30, %v282_v30  ;;  %v337_v52 = vsel %vm181_vm3, %v323_v44, 0.0 }
 0x181   :  { %v332_v41 = vadd.f32 %v331_v38, %v330_v32  ;;  %v303_v42 = vadd.f32 %v302_v39, %v301_v31  ;;  %v2786_v19 = vpop.permute.xlu1 %2785 }
 0x182   :  { %v333_v45 = vsel %vm181_vm3, %v321_v40, 0.0  ;;  %v2781_v20 = vpop.permute.xlu0 %2780 }
 0x183   :  { %v305_v46 = vadd.f32 %v304_v43, %v303_v42  ;;  %v334_v47 = vadd.f32 %v333_v45, %v332_v41 }
 0x185   :  { %v307_v50 = vadd.f32 %v306_v49, %v305_v46  ;;  %v336_v51 = vadd.f32 %v335_v48, %v334_v47 }
 0x187   :  { %v308_v53 = vrot.slane %v307_v50, 4  ;;  %v338_v54 = vadd.f32 %v337_v52, %v336_v51 }
 0x189   :  { %v309_v55 = vadd.f32 %v308_v53, %v307_v50  ;;  %v339_v56 = vrot.slane %v338_v54, 4 }
 0x18b   :  { %v310_v57 = vrot.slane %v309_v55, 2  ;;  %v340_v59 = vadd.f32 %v339_v56, %v338_v54 }
 0x18d   :  { %v311_v61 = vadd.f32 %v310_v57, %v309_v55  ;;  %v341_v2 = vrot.slane %v340_v59, 2 }
 0x18f   :  { %v312_v5 = vrot.slane %v311_v61, 1  ;;  %v342_v6 = vadd.f32 %v341_v2, %v340_v59 }
 0x191   :  { %v313_v7 = vadd.f32 %v312_v5, %v311_v61  ;;  %v343_v8 = vrot.slane %v342_v6, 1 }
 0x193   :  { %v315_v9 = vmul.f32 0.015625, %v313_v7  ;;  %v344_v10 = vadd.f32 %v343_v8, %v342_v6 }
 0x195   :  { %v345_v11 = vmul.f32 0.015625, %v344_v10  ;;  %v346_v12 = vmul.f32 %v315_v9, %v315_v9  ;;  %v354_v21 = vsub.f32 %v282_v30, %v315_v9  ;;  %v351_v23 = vsub.f32 %v3137_v60, %v315_v9 }
 0x196   :  { %v352_v24 = vsub.f32 %v3141_v3, %v315_v9  ;;  %v349_v25 = vsub.f32 %v3135_v58, %v315_v9  ;;  %v350_v28 = vsub.f32 %v3143_v4, %v315_v9  ;;  %v355_v31 = vsub.f32 %v3164_v22, %v315_v9  ;;  %v2535_v58 = vld [vmem:[%s4019_s7] ss:$0 sm:$0xff] }
 0x197   :  { %v347_v13 = vsub.f32 %v345_v11, %v346_v12  ;;  %v356_v32 = vsub.f32 %v3171_v29, %v315_v9  ;;  %v353_v37 = vsub.f32 %v3159_v16, %v315_v9 }
 0x199   :  { %v348_v14 = vmax.f32 %v347_v13, 0.0 }
 0x19b   :  { %v357_v15 = vadd.f32 1e-05, %v348_v14 }
 0x19d   :  { %2898 = vrsqrt.f32 %v357_v15 }
 0x1aa   :  { %v2899_v26 = vpop.eup %2898 }
 0x1ab   :  { %v364_v30 = vmul.f32 %v2899_v26, %v354_v21  ;;  %v361_v38 = vmul.f32 %v2899_v26, %v351_v23  ;;  %v362_v60 = vmul.f32 %v2899_v26, %v352_v24  ;;  %v359_v39 = vmul.f32 %v2899_v26, %v349_v25 }
 0x1ac   :  { %v360_v3 = vmul.f32 %v2899_v26, %v350_v28  ;;  %v365_v40 = vmul.f32 %v2899_v26, %v355_v31  ;;  %v366_v41 = vmul.f32 %v2899_v26, %v356_v32  ;;  %v363_v42 = vmul.f32 %v2899_v26, %v353_v37 }
 0x1ad   :  { %v376_v43 = vmul.f32 %v2534_v27, %v361_v38  ;;  %v377_v4 = vmul.f32 %v2534_v27, %v362_v60  ;;  %v374_v44 = vmul.f32 %v2534_v27, %v359_v39  ;;  %v379_v22 = vmul.f32 %v2534_v27, %v364_v30 }
 0x1ae   :  { %v375_v45 = vmul.f32 %v2534_v27, %v360_v3  ;;  %v380_v29 = vmul.f32 %v2534_v27, %v365_v40  ;;  %v381_v46 = vmul.f32 %v2534_v27, %v366_v41  ;;  %v378_v16 = vmul.f32 %v2534_v27, %v363_v42 }
 0x1af   :  { %v391_v47 = vadd.f32 %v2535_v58, %v376_v43  ;;  %v392_v48 = vadd.f32 %v2535_v58, %v377_v4  ;;  %v389_v49 = vadd.f32 %v2535_v58, %v374_v44  ;;  %v394_v50 = vadd.f32 %v2535_v58, %v379_v22 }
 0x1b0   :  { %v390_v51 = vadd.f32 %v2535_v58, %v375_v45  ;;  %v395_v52 = vadd.f32 %v2535_v58, %v380_v29  ;;  %v396_v53 = vadd.f32 %v2535_v58, %v381_v46  ;;  %v393_v54 = vadd.f32 %v2535_v58, %v378_v16 }
 0x1b1   :  { %v399_v55 = vmax.f32 %v391_v47, 0.0  ;;  %v400_v56 = vmax.f32 %v392_v48, 0.0  ;;  %v397_v57 = vmax.f32 %v389_v49, 0.0  ;;  %v402_v59 = vmax.f32 %v394_v50, 0.0 }
 0x1b2   :  { %v398_v61 = vmax.f32 %v390_v51, 0.0  ;;  %v403_v2 = vmax.f32 %v395_v52, 0.0  ;;  %v404_v5 = vmax.f32 %v396_v53, 0.0  ;;  %v401_v6 = vmax.f32 %v393_v54, 0.0 }
 0x1b3   :  { %v2912_v7 = vadd.low.f32.bf16 %v399_v55, %v2776_v17  ;;  %v2913_v8 = vadd.high.f32.bf16 %v400_v56, %v2776_v17  ;;  %v2914_v9 = vadd.low.f32.bf16 %v397_v57, %v2771_v18  ;;  %v2915_v10 = vadd.high.f32.bf16 %v402_v59, %v2781_v20 }
 0x1b4   :  { %v2916_v11 = vadd.high.f32.bf16 %v398_v61, %v2771_v18  ;;  %v2917_v12 = vadd.low.f32.bf16 %v403_v2, %v2786_v19  ;;  %v2918_v13 = vadd.high.f32.bf16 %v404_v5, %v2786_v19  ;;  %v2919_v14 = vadd.low.f32.bf16 %v401_v6, %v2781_v20 }
 0x1b5   :  { %v458_v15 = vpack.c.bf16 %v2913_v8, %v2912_v7  ;;  %v3199_v21 = vpack.c.bf16 %v400_v56, %v399_v55  ;;  %v3201_v23 = vpack.c.bf16 %v398_v61, %v397_v57  ;;  %v3203_v24 = vpack.c.bf16 %v404_v5, %v403_v2 }
 0x1b6   :  { %v457_v25 = vpack.c.bf16 %v2916_v11, %v2914_v9  ;;  %v460_v26 = vpack.c.bf16 %v2918_v13, %v2917_v12  ;;  %v459_v27 = vpack.c.bf16 %v2915_v10, %v2919_v14  ;;  %v3205_v28 = vpack.c.bf16 %v402_v59, %v401_v6  ;;  %v2891_v13 = vld [vmem:[%s4016_s4 + $0x10] sm:$0x3f]  }
 0x1b7   :  { %v466_v31 = vrot.slane %v458_v15, 7  ;;  %2751 = vmatprep.subr.msk.bf16.mxu0 %vm162_vm0, %v2891_v13  ;;  %v883_v14 = vsel %vm162_vm0, %v2891_v13, 0 }
 0x1b8   :  { %v465_v17 = vrot.slane %v457_v25, 7  ;;  %v468_v32 = vrot.slane %v459_v27, 7  ;;  %v469_v20 = vrot.slane %v460_v26, 7  ;;  %2697 = vmatpush3.bf16.msra.mxu0 %v883_v14  ;;  %v2539_v25 = vld [vmem:[%s4017_s5 + $0x1] ss:$0 sm:$0xff] }
 0x1b9   :  { %v476_v18 = vsel %vm122_vm1, %v466_v31, 0 }
 0x1ba   :  { %v472_v19 = vsel %vm122_vm1, 0, %v465_v17  ;;  %v467_v37 = vsel %vm122_vm1, %v465_v17, %v466_v31  ;;  %v486_v30 = vrot.slane %v476_v18, 1  ;;  %v474_v39 = vsel %vm122_vm1, 0, %v468_v32 }
 0x1bb   :  { %v484_v38 = vrot.slane %v467_v37, 1  ;;  %v483_v60 = vrot.slane %v472_v19, 1  ;;  %v502_v58 = vrot.slane %v467_v37, 2  ;;  %v504_v41 = vrot.slane %v476_v18, 2 }
 0x1bc   :  { %v501_v42 = vrot.slane %v472_v19, 2  ;;  %v470_v43 = vsel %vm122_vm1, %v468_v32, %v469_v20  ;;  %v478_v4 = vsel %vm122_vm1, %v469_v20, 0  ;;  %v488_v44 = vrot.slane %v474_v39, 1 }
 0x1bd   :  { %v487_v3 = vsel %vm143_vm2, %v484_v38, %v486_v30  ;;  %v485_v40 = vsel %vm143_vm2, %v483_v60, %v484_v38  ;;  %v505_v22 = vsel %vm162_vm0, %v502_v58, %v504_v41  ;;  %v489_v29 = vrot.slane %v470_v43, 1 }
 0x1be   :  { %495 = vrot.lane.b32.xlu1 %v487_v3, %s2962_s18  ;;  %493 = vrot.lane.b32.xlu0 %v485_v40, %s2962_s18  ;;  %v503_v45 = vsel %vm162_vm0, %v501_v42, %v502_v58  ;;  %v491_v46 = vrot.slane %v478_v4, 1  ;;  %v507_v16 = vrot.slane %v470_v43, 2  ;;  %v509_v49 = vrot.slane %v478_v4, 2 }
 0x1bf   :  { %v490_v48 = vsel %vm143_vm2, %v488_v44, %v489_v29  ;;  %v506_v50 = vrot.slane %v474_v39, 2 }
 0x1c0   :  { %v492_v47 = vsel %vm143_vm2, %v489_v29, %v491_v46  ;;  %v510_v51 = vsel %vm162_vm0, %v507_v16, %v509_v49 }
 0x1c1   :  { %v508_v52 = vsel %vm162_vm0, %v506_v50, %v507_v16 }
 0x1c2   :  { %513 = vrot.lane.b32.xlu1 %v505_v22, %s2961_s17  ;;  %511 = vrot.lane.b32.xlu0 %v503_v45, %s2961_s17 }
 0x1c6   :  { %499 = vrot.lane.b32.xlu1 %v492_v47, %s2962_s18  ;;  %497 = vrot.lane.b32.xlu0 %v490_v48, %s2962_s18 }
 0x1ca   :  { %517 = vrot.lane.b32.xlu1 %v510_v51, %s2961_s17  ;;  %515 = vrot.lane.b32.xlu0 %v508_v52, %s2961_s17 }
 0x1ce   :  { %2795 = vrot.lane.b32.xlu1 %v3101_v33, %s2964_s28  ;;  %2790 = vrot.lane.b32.xlu0 %v3105_v34, %s2964_s28 }
 0x1d2   :  { %2805 = vrot.lane.b32.xlu1 %v3109_v35, %s2964_s28  ;;  %2800 = vrot.lane.b32.xlu0 %v3111_v36, %s2964_s28 }
 0x230   :  { %v496_v53 = vpop.permute.xlu1 %495  ;;  %v494_v54 = vpop.permute.xlu0 %493 }
 0x231   :  { %v523_v55 = vsel %vm181_vm3, %v467_v37, %v496_v53  ;;  %v520_v56 = vsel %vm181_vm3, %v472_v19, %v494_v54 }
 0x234   :  { %v514_v57 = vpop.permute.xlu1 %513  ;;  %v512_v59 = vpop.permute.xlu0 %511 }
 0x235   :  { %v532_v61 = vsel %vm192_vm4, %v523_v55, %v514_v57  ;;  %v530_v2 = vsel %vm192_vm4, %v520_v56, %v512_v59 }
 0x236   :  { %2688 = vmatprep.mubr.msk.bf16.mxu1 %vm215_vm5, %v530_v2 }
 0x237   :  { %2689 = vmatmul.mubr.msk.bf16.vlgmr.msra.gmra.mxu1 %vm215_vm5, %v532_v61 }
 0x238   :  { %v500_v5 = vpop.permute.xlu1 %499  ;;  %v498_v6 = vpop.permute.xlu0 %497 }
 0x239   :  { %v528_v7 = vsel %vm181_vm3, %v470_v43, %v500_v5  ;;  %v525_v8 = vsel %vm181_vm3, %v474_v39, %v498_v6 }
 0x23c   :  { %v518_v9 = vpop.permute.xlu1 %517  ;;  %v516_v10 = vpop.permute.xlu0 %515 }
 0x23d   :  { %v536_v11 = vsel %vm192_vm4, %v528_v7, %v518_v9  ;;  %v534_v12 = vsel %vm192_vm4, %v525_v8, %v516_v10 }
 0x23e   :  { %2692 = vmatprep.mubr.msk.bf16.mxu1 %vm215_vm5, %v534_v12 }
 0x23f   :  { %2693 = vmatmul.mubr.msk.bf16.gmra.mxu1 %vm215_vm5, %v536_v11 }
 0x2f7   :  { %v2690_v15 = vpop.f32.mrf.mxu1 }
 0x2f8   :  { %v3255_v17 = vadd.f32 %v2690_v15, %v2539_v25 }
 0x2f9   :  { %v598_v26 = vpop.f32.mrf.mxu1 }
 0x2fa   :  { %v3253_v27 = vadd.f32 %v2539_v25, %v598_v26  ;;  %v653_v30 = vmul.f32 %v3255_v17, %v3255_v17  ;;  %v632_v58 = vsel %vm181_vm3, %v3255_v17, 0.0 }
 0x2fb   :  { %v2691_v31 = vpop.f32.mrf.mxu1 }
 0x2fc   :  { %v651_v18 = vmul.f32 %v3253_v27, %v3253_v27  ;;  %v3259_v19 = vadd.f32 %v2691_v31, %v2539_v25  ;;  %v629_v38 = vsel %vm181_vm3, %v3253_v27, 0.0  ;;  %v662_v29 = vsel %vm181_vm3, %v653_v30, 0.0 }
 0x2fd   :  { %v601_v32 = vpop.f32.mrf.mxu1 }
 0x2fe   :  { %v3261_v20 = vadd.f32 %v2539_v25, %v601_v32  ;;  %v659_v41 = vsel %vm181_vm3, %v651_v18, 0.0  ;;  %v654_v42 = vmul.f32 %v3259_v19, %v3259_v19  ;;  %v634_v46 = vsel %vm181_vm3, %v3259_v19, 0.0 }
 0x2ff   :  { %v2694_v37 = vpop.f32.mrf.mxu1 }
 0x300   :  { %v630_v60 = vsel %vm181_vm3, %v3261_v20, 0.0  ;;  %v652_v39 = vmul.f32 %v3261_v20, %v3261_v20  ;;  %v3282_v16 = vadd.f32 %v2694_v37, %v2539_v25  ;;  %v664_v51 = vsel %vm181_vm3, %v654_v42, 0.0 }
 0x301   :  { %v631_v3 = vadd.f32 %v630_v60, %v629_v38  ;;  %v614_v40 = vpop.f32.mrf.mxu1 }
 0x302   :  { %v660_v43 = vsel %vm181_vm3, %v652_v39, 0.0  ;;  %v3277_v4 = vadd.f32 %v2539_v25, %v614_v40  ;;  %v657_v57 = vmul.f32 %v3282_v16, %v3282_v16  ;;  %v640_v7 = vsel %vm181_vm3, %v3282_v16, 0.0 }
 0x303   :  { %v633_v44 = vadd.f32 %v632_v58, %v631_v3  ;;  %v661_v22 = vadd.f32 %v660_v43, %v659_v41  ;;  %v2695_v45 = vpop.f32.mrf.mxu1 }
 0x304   :  { %v655_v47 = vmul.f32 %v3277_v4, %v3277_v4  ;;  %v636_v52 = vsel %vm181_vm3, %v3277_v4, 0.0  ;;  %v626_v53 = vadd.f32 %v2695_v45, %v2539_v25  ;;  %v670_v12 = vsel %vm181_vm3, %v657_v57, 0.0  ;;  %v2546_v57 = vld [vmem:[%s4018_s6 + $0x1] ss:$0 sm:$0xff] }
 0x305   :  { %v663_v48 = vadd.f32 %v662_v29, %v661_v22  ;;  %v635_v49 = vadd.f32 %v634_v46, %v633_v44  ;;  %v617_v50 = vpop.f32.mrf.mxu1  ;;  %v2796_v46 = vpop.permute.xlu1 %2795 }
 0x306   :  { %v618_v54 = vadd.f32 %v2539_v25, %v617_v50  ;;  %v666_v59 = vsel %vm181_vm3, %v655_v47, 0.0  ;;  %v658_v8 = vmul.f32 %v626_v53, %v626_v53  ;;  %v642_v13 = vsel %vm181_vm3, %v626_v53, 0.0  ;;  %v2791_v47 = vpop.permute.xlu0 %2790 }
 0x307   :  { %v637_v55 = vadd.f32 %v636_v52, %v635_v49  ;;  %v665_v56 = vadd.f32 %v664_v51, %v663_v48 }
 0x308   :  { %v638_v61 = vsel %vm181_vm3, %v618_v54, 0.0  ;;  %v656_v2 = vmul.f32 %v618_v54, %v618_v54  ;;  %v672_v25 = vsel %vm181_vm3, %v658_v8, 0.0 }
 0x309   :  { %v667_v5 = vadd.f32 %v666_v59, %v665_v56  ;;  %v639_v6 = vadd.f32 %v638_v61, %v637_v55  ;;  %v2806_v48 = vpop.permute.xlu1 %2805 }
 0x30a   :  { %v668_v9 = vsel %vm181_vm3, %v656_v2, 0.0  ;;  %v2801_v49 = vpop.permute.xlu0 %2800 }
 0x30b   :  { %v641_v10 = vadd.f32 %v640_v7, %v639_v6  ;;  %v669_v11 = vadd.f32 %v668_v9, %v667_v5 }
 0x30d   :  { %v643_v14 = vadd.f32 %v642_v13, %v641_v10  ;;  %v671_v15 = vadd.f32 %v670_v12, %v669_v11 }
 0x30f   :  { %v644_v26 = vrot.slane %v643_v14, 4  ;;  %v673_v31 = vadd.f32 %v672_v25, %v671_v15 }
 0x311   :  { %v645_v32 = vadd.f32 %v644_v26, %v643_v14  ;;  %v674_v18 = vrot.slane %v673_v31, 4 }
 0x313   :  { %v646_v37 = vrot.slane %v645_v32, 2  ;;  %v675_v30 = vadd.f32 %v674_v18, %v673_v31 }
 0x315   :  { %v647_v38 = vadd.f32 %v646_v37, %v645_v32  ;;  %v676_v60 = vrot.slane %v675_v30, 2 }
 0x317   :  { %v648_v39 = vrot.slane %v647_v38, 1  ;;  %v677_v58 = vadd.f32 %v676_v60, %v675_v30 }
 0x319   :  { %v649_v3 = vadd.f32 %v648_v39, %v647_v38  ;;  %v678_v40 = vrot.slane %v677_v58, 1 }
 0x31b   :  { %v650_v41 = vmul.f32 0.015625, %v649_v3  ;;  %v679_v42 = vadd.f32 %v678_v40, %v677_v58 }
 0x31d   :  { %v680_v43 = vmul.f32 0.015625, %v679_v42  ;;  %v681_v44 = vmul.f32 %v650_v41, %v650_v41  ;;  %v689_v50 = vsub.f32 %v618_v54, %v650_v41  ;;  %v686_v51 = vsub.f32 %v3255_v17, %v650_v41 }
 0x31e   :  { %v687_v52 = vsub.f32 %v3259_v19, %v650_v41  ;;  %v684_v55 = vsub.f32 %v3253_v27, %v650_v41  ;;  %v685_v59 = vsub.f32 %v3261_v20, %v650_v41  ;;  %v690_v61 = vsub.f32 %v3282_v16, %v650_v41  ;;  %v2548_v27 = vld [vmem:[%s4019_s7 + $0x1] ss:$0 sm:$0xff] }
 0x31f   :  { %v682_v22 = vsub.f32 %v680_v43, %v681_v44  ;;  %v691_v2 = vsub.f32 %v626_v53, %v650_v41  ;;  %v688_v5 = vsub.f32 %v3277_v4, %v650_v41 }
 0x321   :  { %v683_v45 = vmax.f32 %v682_v22, 0.0 }
 0x323   :  { %v692_v29 = vadd.f32 1e-05, %v683_v45 }
 0x325   :  { %2900 = vrsqrt.f32 %v692_v29 }
 0x332   :  { %v2901_v56 = vpop.eup %2900 }
 0x333   :  { %v699_v6 = vmul.f32 %v2901_v56, %v689_v50  ;;  %v696_v54 = vmul.f32 %v2901_v56, %v686_v51  ;;  %v697_v7 = vmul.f32 %v2901_v56, %v687_v52  ;;  %v694_v17 = vmul.f32 %v2901_v56, %v684_v55 }
 0x334   :  { %v695_v19 = vmul.f32 %v2901_v56, %v685_v59  ;;  %v700_v8 = vmul.f32 %v2901_v56, %v690_v61  ;;  %v701_v9 = vmul.f32 %v2901_v56, %v691_v2  ;;  %v698_v10 = vmul.f32 %v2901_v56, %v688_v5 }
 0x335   :  { %v712_v11 = vmul.f32 %v2546_v57, %v696_v54  ;;  %v713_v12 = vmul.f32 %v2546_v57, %v697_v7  ;;  %v710_v20 = vmul.f32 %v2546_v57, %v694_v17  ;;  %v715_v13 = vmul.f32 %v2546_v57, %v699_v6 }
 0x336   :  { %v711_v16 = vmul.f32 %v2546_v57, %v695_v19  ;;  %v716_v53 = vmul.f32 %v2546_v57, %v700_v8  ;;  %v717_v14 = vmul.f32 %v2546_v57, %v701_v9  ;;  %v714_v4 = vmul.f32 %v2546_v57, %v698_v10 }
 0x337   :  { %v728_v15 = vadd.f32 %v2548_v27, %v712_v11  ;;  %v729_v25 = vadd.f32 %v2548_v27, %v713_v12  ;;  %v726_v26 = vadd.f32 %v2548_v27, %v710_v20  ;;  %v731_v31 = vadd.f32 %v2548_v27, %v715_v13 }
 0x338   :  { %v727_v32 = vadd.f32 %v2548_v27, %v711_v16  ;;  %v732_v18 = vadd.f32 %v2548_v27, %v716_v53  ;;  %v733_v37 = vadd.f32 %v2548_v27, %v717_v14  ;;  %v730_v30 = vadd.f32 %v2548_v27, %v714_v4 }
 0x339   :  { %v736_v38 = vmax.f32 %v728_v15, 0.0  ;;  %v737_v60 = vmax.f32 %v729_v25, 0.0  ;;  %v734_v39 = vmax.f32 %v726_v26, 0.0  ;;  %v739_v58 = vmax.f32 %v731_v31, 0.0 }
 0x33a   :  { %v735_v3 = vmax.f32 %v727_v32, 0.0  ;;  %v740_v40 = vmax.f32 %v732_v18, 0.0  ;;  %v741_v41 = vmax.f32 %v733_v37, 0.0  ;;  %v738_v42 = vmax.f32 %v730_v30, 0.0 }
 0x33b   :  { %v2920_v43 = vadd.low.f32.bf16 %v736_v38, %v2796_v46  ;;  %v2921_v44 = vadd.high.f32.bf16 %v737_v60, %v2796_v46  ;;  %v2922_v22 = vadd.low.f32.bf16 %v734_v39, %v2791_v47  ;;  %v2923_v45 = vadd.high.f32.bf16 %v739_v58, %v2801_v49 }
 0x33c   :  { %v2924_v29 = vadd.high.f32.bf16 %v735_v3, %v2791_v47  ;;  %v2925_v50 = vadd.low.f32.bf16 %v740_v40, %v2806_v48  ;;  %v2926_v51 = vadd.high.f32.bf16 %v741_v41, %v2806_v48  ;;  %v2927_v52 = vadd.low.f32.bf16 %v738_v42, %v2801_v49 }
 0x33d   :  { %v779_v55 = vpack.c.bf16 %v2921_v44, %v2920_v43  ;;  %v3311_v56 = vpack.c.bf16 %v737_v60, %v736_v38  ;;  %v3313_v57 = vpack.c.bf16 %v735_v3, %v734_v39  ;;  %v3315_v59 = vpack.c.bf16 %v741_v41, %v740_v40 }
 0x33e   :  { %v778_v61 = vpack.c.bf16 %v2924_v29, %v2922_v22  ;;  %v781_v2 = vpack.c.bf16 %v2926_v51, %v2925_v50  ;;  %v780_v5 = vpack.c.bf16 %v2923_v45, %v2927_v52  ;;  %v3317_v6 = vpack.c.bf16 %v739_v58, %v738_v42 }
 0x33f   :  { %v787_v54 = vrot.slane %v779_v55, 7 }
 0x340   :  { %v786_v46 = vrot.slane %v778_v61, 7  ;;  %v789_v7 = vrot.slane %v780_v5, 7  ;;  %v790_v49 = vrot.slane %v781_v2, 7  ;;  %v2892_v2 = vld [vmem:[%s4016_s4 + $0x18] sm:$0x3f]  }
 0x341   :  { %v797_v47 = vsel %vm122_vm1, %v787_v54, 0  ;;  %2752 = vmatprep.subr.msk.bf16.mxu1 %vm162_vm0, %v2892_v2  ;;  %v1204_v5 = vsel %vm162_vm0, %v2892_v2, 0 }
 0x342   :  { %v793_v48 = vsel %vm122_vm1, 0, %v786_v46  ;;  %v788_v17 = vsel %vm122_vm1, %v786_v46, %v787_v54  ;;  %v807_v27 = vrot.slane %v797_v47, 1  ;;  %v795_v9 = vsel %vm122_vm1, 0, %v789_v7  ;;  %2707 = vmatpush3.bf16.msra.mxu1 %v1204_v5  ;;  %v2552_v46 = vld [vmem:[%s4017_s5 + $0x2] ss:$0 sm:$0xff] }
 0x343   :  { %v805_v19 = vrot.slane %v788_v17, 1  ;;  %v804_v8 = vrot.slane %v793_v48, 1  ;;  %v823_v10 = vrot.slane %v788_v17, 2  ;;  %v825_v20 = vrot.slane %v797_v47, 2 }
 0x344   :  { %v822_v13 = vrot.slane %v793_v48, 2  ;;  %v791_v16 = vsel %vm122_vm1, %v789_v7, %v790_v49  ;;  %v799_v53 = vsel %vm122_vm1, %v790_v49, 0  ;;  %v809_v14 = vrot.slane %v795_v9, 1 }
 0x345   :  { %v808_v11 = vsel %vm143_vm2, %v805_v19, %v807_v27  ;;  %v806_v12 = vsel %vm143_vm2, %v804_v8, %v805_v19  ;;  %v826_v4 = vsel %vm162_vm0, %v823_v10, %v825_v20  ;;  %v810_v25 = vrot.slane %v791_v16, 1 }
 0x346   :  { %816 = vrot.lane.b32.xlu1 %v808_v11, %s2962_s18  ;;  %814 = vrot.lane.b32.xlu0 %v806_v12, %s2962_s18  ;;  %v824_v15 = vsel %vm162_vm0, %v822_v13, %v823_v10  ;;  %v812_v26 = vrot.slane %v799_v53, 1  ;;  %v828_v31 = vrot.slane %v791_v16, 2  ;;  %v830_v37 = vrot.slane %v799_v53, 2 }
 0x347   :  { %v811_v18 = vsel %vm143_vm2, %v809_v14, %v810_v25  ;;  %v827_v30 = vrot.slane %v795_v9, 2 }
 0x348   :  { %v813_v32 = vsel %vm143_vm2, %v810_v25, %v812_v26  ;;  %v831_v38 = vsel %vm162_vm0, %v828_v31, %v830_v37 }
 0x349   :  { %v829_v60 = vsel %vm162_vm0, %v827_v30, %v828_v31 }
 0x34a   :  { %834 = vrot.lane.b32.xlu1 %v826_v4, %s2961_s17  ;;  %832 = vrot.lane.b32.xlu0 %v824_v15, %s2961_s17 }
 0x34e   :  { %820 = vrot.lane.b32.xlu1 %v813_v32, %s2962_s18  ;;  %818 = vrot.lane.b32.xlu0 %v811_v18, %s2962_s18 }
 0x352   :  { %838 = vrot.lane.b32.xlu1 %v831_v38, %s2961_s17  ;;  %836 = vrot.lane.b32.xlu0 %v829_v60, %s2961_s17 }
 0x356   :  { %2815 = vrot.lane.b32.xlu1 %v3101_v33, %s2965_s14  ;;  %2810 = vrot.lane.b32.xlu0 %v3105_v34, %s2965_s14 }
 0x35a   :  { %2825 = vrot.lane.b32.xlu1 %v3109_v35, %s2965_s14  ;;  %2820 = vrot.lane.b32.xlu0 %v3111_v36, %s2965_s14 }
 0x3b8   :  { %v817_v39 = vpop.permute.xlu1 %816  ;;  %v815_v58 = vpop.permute.xlu0 %814 }
 0x3b9   :  { %v844_v3 = vsel %vm181_vm3, %v788_v17, %v817_v39  ;;  %v841_v40 = vsel %vm181_vm3, %v793_v48, %v815_v58 }
 0x3bc   :  { %v835_v41 = vpop.permute.xlu1 %834  ;;  %v833_v42 = vpop.permute.xlu0 %832 }
 0x3bd   :  { %v853_v43 = vsel %vm192_vm4, %v844_v3, %v835_v41  ;;  %v851_v44 = vsel %vm192_vm4, %v841_v40, %v833_v42 }
 0x3be   :  { %2698 = vmatprep.mubr.msk.bf16.mxu0 %vm215_vm5, %v851_v44 }
 0x3bf   :  { %2699 = vmatmul.mubr.msk.bf16.vlgmr.msra.gmra.mxu0 %vm215_vm5, %v853_v43 }
 0x3c0   :  { %v821_v22 = vpop.permute.xlu1 %820  ;;  %v819_v45 = vpop.permute.xlu0 %818 }
 0x3c1   :  { %v849_v29 = vsel %vm181_vm3, %v791_v16, %v821_v22  ;;  %v846_v50 = vsel %vm181_vm3, %v795_v9, %v819_v45 }
 0x3c4   :  { %v839_v51 = vpop.permute.xlu1 %838  ;;  %v837_v52 = vpop.permute.xlu0 %836 }
 0x3c5   :  { %v857_v55 = vsel %vm192_vm4, %v849_v29, %v839_v51  ;;  %v855_v61 = vsel %vm192_vm4, %v846_v50, %v837_v52 }
 0x3c6   :  { %2702 = vmatprep.mubr.msk.bf16.mxu0 %vm215_vm5, %v855_v61 }
 0x3c7   :  { %2703 = vmatmul.mubr.msk.bf16.gmra.mxu0 %vm215_vm5, %v857_v55 }
 0x47f   :  { %v2700_v54 = vpop.f32.mrf.mxu0 }
 0x480   :  { %v3367_v49 = vadd.f32 %v2700_v54, %v2552_v46 }
 0x481   :  { %v919_v7 = vpop.f32.mrf.mxu0 }
 0x482   :  { %v3365_v47 = vadd.f32 %v2552_v46, %v919_v7  ;;  %v974_v10 = vmul.f32 %v3367_v49, %v3367_v49  ;;  %v953_v13 = vsel %vm181_vm3, %v3367_v49, 0.0 }
 0x483   :  { %v2701_v48 = vpop.f32.mrf.mxu0 }
 0x484   :  { %v972_v27 = vmul.f32 %v3365_v47, %v3365_v47  ;;  %v3371_v19 = vadd.f32 %v2701_v48, %v2552_v46  ;;  %v950_v11 = vsel %vm181_vm3, %v3365_v47, 0.0  ;;  %v983_v18 = vsel %vm181_vm3, %v974_v10, 0.0 }
 0x485   :  { %v922_v17 = vpop.f32.mrf.mxu0 }
 0x486   :  { %v3373_v8 = vadd.f32 %v2552_v46, %v922_v17  ;;  %v980_v14 = vsel %vm181_vm3, %v972_v27, 0.0  ;;  %v975_v4 = vmul.f32 %v3371_v19, %v3371_v19  ;;  %v955_v37 = vsel %vm181_vm3, %v3371_v19, 0.0 }
 0x487   :  { %v2704_v9 = vpop.f32.mrf.mxu0 }
 0x488   :  { %v951_v12 = vsel %vm181_vm3, %v3373_v8, 0.0  ;;  %v973_v20 = vmul.f32 %v3373_v8, %v3373_v8  ;;  %v3394_v30 = vadd.f32 %v2704_v9, %v2552_v46  ;;  %v985_v3 = vsel %vm181_vm3, %v975_v4, 0.0 }
 0x489   :  { %v952_v16 = vadd.f32 %v951_v12, %v950_v11  ;;  %v935_v53 = vpop.f32.mrf.mxu0 }
 0x48a   :  { %v981_v15 = vsel %vm181_vm3, %v973_v20, 0.0  ;;  %v3389_v25 = vadd.f32 %v2552_v46, %v935_v53  ;;  %v978_v22 = vmul.f32 %v3394_v30, %v3394_v30  ;;  %v961_v55 = vsel %vm181_vm3, %v3394_v30, 0.0 }
 0x48b   :  { %v954_v26 = vadd.f32 %v953_v13, %v952_v16  ;;  %v982_v31 = vadd.f32 %v981_v15, %v980_v14  ;;  %v2705_v32 = vpop.f32.mrf.mxu0 }
 0x48c   :  { %v976_v38 = vmul.f32 %v3389_v25, %v3389_v25  ;;  %v957_v40 = vsel %vm181_vm3, %v3389_v25, 0.0  ;;  %v947_v41 = vadd.f32 %v2705_v32, %v2552_v46 }
 0x48d   :  { %v984_v60 = vadd.f32 %v983_v18, %v982_v31  ;;  %v956_v39 = vadd.f32 %v955_v37, %v954_v26  ;;  %v938_v58 = vpop.f32.mrf.mxu0 }
 0x48e   :  { %v939_v42 = vadd.f32 %v2552_v46, %v938_v58  ;;  %v987_v45 = vsel %vm181_vm3, %v976_v38, 0.0  ;;  %v979_v61 = vmul.f32 %v947_v41, %v947_v41  ;;  %v991_v46 = vsel %vm181_vm3, %v978_v22, 0.0  ;;  %v2816_v58 = vpop.permute.xlu1 %2815 }
 0x48f   :  { %v958_v43 = vadd.f32 %v957_v40, %v956_v39  ;;  %v986_v44 = vadd.f32 %v985_v3, %v984_v60  ;;  %v963_v7 = vsel %vm181_vm3, %v947_v41, 0.0  ;;  %v2811_v3 = vpop.permute.xlu0 %2810 }
 0x490   :  { %v959_v29 = vsel %vm181_vm3, %v939_v42, 0.0  ;;  %v977_v50 = vmul.f32 %v939_v42, %v939_v42  ;;  %v993_v27 = vsel %vm181_vm3, %v979_v61, 0.0 }
 0x491   :  { %v988_v51 = vadd.f32 %v987_v45, %v986_v44  ;;  %v960_v52 = vadd.f32 %v959_v29, %v958_v43 }
 0x492   :  { %v989_v2 = vsel %vm181_vm3, %v977_v50, 0.0  ;;  %v2826_v40 = vpop.permute.xlu1 %2825 }
 0x493   :  { %v962_v5 = vadd.f32 %v961_v55, %v960_v52  ;;  %v990_v54 = vadd.f32 %v989_v2, %v988_v51  ;;  %v2821_v43 = vpop.permute.xlu0 %2820  ;;  %v2559_v51 = vld [vmem:[%s4018_s6 + $0x2] ss:$0 sm:$0xff] }
 0x495   :  { %v964_v48 = vadd.f32 %v963_v7, %v962_v5  ;;  %v992_v17 = vadd.f32 %v991_v46, %v990_v54 }
 0x497   :  { %v965_v9 = vrot.slane %v964_v48, 4  ;;  %v994_v10 = vadd.f32 %v993_v27, %v992_v17 }
 0x499   :  { %v966_v11 = vadd.f32 %v965_v9, %v964_v48  ;;  %v995_v12 = vrot.slane %v994_v10, 4 }
 0x49b   :  { %v967_v20 = vrot.slane %v966_v11, 2  ;;  %v996_v13 = vadd.f32 %v995_v12, %v994_v10 }
 0x49d   :  { %v968_v16 = vadd.f32 %v967_v20, %v966_v11  ;;  %v997_v53 = vrot.slane %v996_v13, 2 }
 0x49f   :  { %v969_v14 = vrot.slane %v968_v16, 1  ;;  %v998_v4 = vadd.f32 %v997_v53, %v996_v13 }
 0x4a1   :  { %v970_v15 = vadd.f32 %v969_v14, %v968_v16  ;;  %v999_v26 = vrot.slane %v998_v4, 1 }
 0x4a3   :  { %v971_v31 = vmul.f32 0.015625, %v970_v15  ;;  %v1000_v32 = vadd.f32 %v999_v26, %v998_v4 }
 0x4a5   :  { %v1001_v18 = vmul.f32 0.015625, %v1000_v32  ;;  %v1002_v37 = vmul.f32 %v971_v31, %v971_v31  ;;  %v1010_v44 = vsub.f32 %v939_v42, %v971_v31  ;;  %v1007_v22 = vsub.f32 %v3367_v49, %v971_v31 }
 0x4a6   :  { %v1008_v45 = vsub.f32 %v3371_v19, %v971_v31  ;;  %v1005_v29 = vsub.f32 %v3365_v47, %v971_v31  ;;  %v1006_v52 = vsub.f32 %v3373_v8, %v971_v31  ;;  %v1011_v55 = vsub.f32 %v3394_v30, %v971_v31  ;;  %v2561_v47 = vld [vmem:[%s4019_s7 + $0x2] ss:$0 sm:$0xff] }
 0x4a7   :  { %v1003_v38 = vsub.f32 %v1001_v18, %v1002_v37  ;;  %v1012_v61 = vsub.f32 %v947_v41, %v971_v31  ;;  %v1009_v2 = vsub.f32 %v3389_v25, %v971_v31 }
 0x4a9   :  { %v1004_v60 = vmax.f32 %v1003_v38, 0.0 }
 0x4ab   :  { %v1013_v39 = vadd.f32 1e-05, %v1004_v60 }
 0x4ad   :  { %2902 = vrsqrt.f32 %v1013_v39 }
 0x4ba   :  { %v2903_v50 = vpop.eup %2902 }
 0x4bb   :  { %v1020_v5 = vmul.f32 %v2903_v50, %v1010_v44  ;;  %v1017_v42 = vmul.f32 %v2903_v50, %v1007_v22  ;;  %v1018_v54 = vmul.f32 %v2903_v50, %v1008_v45  ;;  %v1015_v49 = vmul.f32 %v2903_v50, %v1005_v29 }
 0x4bc   :  { %v1016_v19 = vmul.f32 %v2903_v50, %v1006_v52  ;;  %v1021_v46 = vmul.f32 %v2903_v50, %v1011_v55  ;;  %v1022_v7 = vmul.f32 %v2903_v50, %v1012_v61  ;;  %v1019_v48 = vmul.f32 %v2903_v50, %v1009_v2 }
 0x4bd   :  { %v1033_v17 = vmul.f32 %v2559_v51, %v1017_v42  ;;  %v1034_v27 = vmul.f32 %v2559_v51, %v1018_v54  ;;  %v1031_v8 = vmul.f32 %v2559_v51, %v1015_v49  ;;  %v1036_v9 = vmul.f32 %v2559_v51, %v1020_v5 }
 0x4be   :  { %v1032_v30 = vmul.f32 %v2559_v51, %v1016_v19  ;;  %v1037_v41 = vmul.f32 %v2559_v51, %v1021_v46  ;;  %v1038_v10 = vmul.f32 %v2559_v51, %v1022_v7  ;;  %v1035_v25 = vmul.f32 %v2559_v51, %v1019_v48 }
 0x4bf   :  { %v1049_v11 = vadd.f32 %v2561_v47, %v1033_v17  ;;  %v1050_v12 = vadd.f32 %v2561_v47, %v1034_v27  ;;  %v1047_v20 = vadd.f32 %v2561_v47, %v1031_v8  ;;  %v1052_v13 = vadd.f32 %v2561_v47, %v1036_v9 }
 0x4c0   :  { %v1048_v16 = vadd.f32 %v2561_v47, %v1032_v30  ;;  %v1053_v53 = vadd.f32 %v2561_v47, %v1037_v41  ;;  %v1054_v14 = vadd.f32 %v2561_v47, %v1038_v10  ;;  %v1051_v4 = vadd.f32 %v2561_v47, %v1035_v25 }
 0x4c1   :  { %v1057_v15 = vmax.f32 %v1049_v11, 0.0  ;;  %v1058_v26 = vmax.f32 %v1050_v12, 0.0  ;;  %v1055_v31 = vmax.f32 %v1047_v20, 0.0  ;;  %v1060_v32 = vmax.f32 %v1052_v13, 0.0 }
 0x4c2   :  { %v1056_v18 = vmax.f32 %v1048_v16, 0.0  ;;  %v1061_v37 = vmax.f32 %v1053_v53, 0.0  ;;  %v1062_v38 = vmax.f32 %v1054_v14, 0.0  ;;  %v1059_v60 = vmax.f32 %v1051_v4, 0.0 }
 0x4c3   :  { %v2928_v39 = vadd.low.f32.bf16 %v1057_v15, %v2816_v58  ;;  %v2929_v44 = vadd.high.f32.bf16 %v1058_v26, %v2816_v58  ;;  %v2930_v22 = vadd.low.f32.bf16 %v1055_v31, %v2811_v3  ;;  %v2931_v45 = vadd.high.f32.bf16 %v1060_v32, %v2821_v43 }
 0x4c4   :  { %v2932_v29 = vadd.high.f32.bf16 %v1056_v18, %v2811_v3  ;;  %v2933_v50 = vadd.low.f32.bf16 %v1061_v37, %v2826_v40  ;;  %v2934_v51 = vadd.high.f32.bf16 %v1062_v38, %v2826_v40  ;;  %v2935_v52 = vadd.low.f32.bf16 %v1059_v60, %v2821_v43 }
 0x4c5   :  { %v1100_v55 = vpack.c.bf16 %v2929_v44, %v2928_v39  ;;  %v3423_v61 = vpack.c.bf16 %v1058_v26, %v1057_v15  ;;  %v3425_v2 = vpack.c.bf16 %v1056_v18, %v1055_v31  ;;  %v3427_v5 = vpack.c.bf16 %v1062_v38, %v1061_v37 }
 0x4c6   :  { %v1099_v42 = vpack.c.bf16 %v2932_v29, %v2930_v22  ;;  %v1102_v54 = vpack.c.bf16 %v2934_v51, %v2933_v50  ;;  %v1101_v49 = vpack.c.bf16 %v2931_v45, %v2935_v52  ;;  %v3429_v47 = vpack.c.bf16 %v1060_v32, %v1059_v60 }
 0x4c7   :  { %v1108_v19 = vrot.slane %v1100_v55, 7 }
 0x4c8   :  { %v1107_v58 = vrot.slane %v1099_v42, 7  ;;  %v1110_v46 = vrot.slane %v1101_v49, 7  ;;  %v1111_v43 = vrot.slane %v1102_v54, 7 }
 0x4c9   :  { %v1118_v3 = vsel %vm122_vm1, %v1108_v19, 0 }
 0x4ca   :  { %v1114_v40 = vsel %vm122_vm1, 0, %v1107_v58  ;;  %v1109_v7 = vsel %vm122_vm1, %v1107_v58, %v1108_v19  ;;  %v1128_v48 = vrot.slane %v1118_v3, 1  ;;  %v1116_v8 = vsel %vm122_vm1, 0, %v1110_v46 }
 0x4cb   :  { %v1126_v17 = vrot.slane %v1109_v7, 1  ;;  %v1125_v27 = vrot.slane %v1114_v40, 1  ;;  %v1144_v9 = vrot.slane %v1109_v7, 2  ;;  %v1146_v10 = vrot.slane %v1118_v3, 2 }
 0x4cc   :  { %v1143_v25 = vrot.slane %v1114_v40, 2  ;;  %v1112_v11 = vsel %vm122_vm1, %v1110_v46, %v1111_v43  ;;  %v1120_v12 = vsel %vm122_vm1, %v1111_v43, 0  ;;  %v1130_v20 = vrot.slane %v1116_v8, 1  ;;  %v2893_v46 = vld [vmem:[%s4016_s4 + $0x20] sm:$0x3f]  }
 0x4cd   :  { %v1129_v30 = vsel %vm143_vm2, %v1126_v17, %v1128_v48  ;;  %v1127_v41 = vsel %vm143_vm2, %v1125_v27, %v1126_v17  ;;  %v1147_v13 = vsel %vm162_vm0, %v1144_v9, %v1146_v10  ;;  %v1131_v53 = vrot.slane %v1112_v11, 1  ;;  %2753 = vmatprep.subr.msk.bf16.mxu0 %vm162_vm0, %v2893_v46  ;;  %v2565_v43 = vld [vmem:[%s4017_s5 + $0x3] ss:$0 sm:$0xff] }
 0x4ce   :  { %1137 = vrot.lane.b32.xlu1 %v1129_v30, %s2962_s18  ;;  %1135 = vrot.lane.b32.xlu0 %v1127_v41, %s2962_s18  ;;  %v1145_v16 = vsel %vm162_vm0, %v1143_v25, %v1144_v9  ;;  %v1133_v14 = vrot.slane %v1120_v12, 1  ;;  %v1149_v4 = vrot.slane %v1112_v11, 2  ;;  %v1151_v31 = vrot.slane %v1120_v12, 2 }
 0x4cf   :  { %v1132_v26 = vsel %vm143_vm2, %v1130_v20, %v1131_v53  ;;  %v1148_v32 = vrot.slane %v1116_v8, 2  ;;  %v1525_v3 = vsel %vm162_vm0, %v2893_v46, 0 }
 0x4d0   :  { %v1134_v15 = vsel %vm143_vm2, %v1131_v53, %v1133_v14  ;;  %v1152_v18 = vsel %vm162_vm0, %v1149_v4, %v1151_v31  ;;  %2717 = vmatpush3.bf16.msra.mxu0 %v1525_v3 }
 0x4d1   :  { %v1150_v37 = vsel %vm162_vm0, %v1148_v32, %v1149_v4 }
 0x4d2   :  { %1155 = vrot.lane.b32.xlu1 %v1147_v13, %s2961_s17  ;;  %1153 = vrot.lane.b32.xlu0 %v1145_v16, %s2961_s17 }
 0x4d6   :  { %1141 = vrot.lane.b32.xlu1 %v1134_v15, %s2962_s18  ;;  %1139 = vrot.lane.b32.xlu0 %v1132_v26, %s2962_s18 }
 0x4da   :  { %1159 = vrot.lane.b32.xlu1 %v1152_v18, %s2961_s17  ;;  %1157 = vrot.lane.b32.xlu0 %v1150_v37, %s2961_s17 }
 0x4de   :  { %2835 = vrot.lane.b32.xlu1 %v3101_v33, %s2966_s22  ;;  %2830 = vrot.lane.b32.xlu0 %v3105_v34, %s2966_s22 }
 0x4e2   :  { %2845 = vrot.lane.b32.xlu1 %v3109_v35, %s2966_s22  ;;  %2840 = vrot.lane.b32.xlu0 %v3111_v36, %s2966_s22 }
 0x540   :  { %v1138_v38 = vpop.permute.xlu1 %1137  ;;  %v1136_v60 = vpop.permute.xlu0 %1135 }
 0x541   :  { %v1165_v39 = vsel %vm181_vm3, %v1109_v7, %v1138_v38  ;;  %v1162_v44 = vsel %vm181_vm3, %v1114_v40, %v1136_v60 }
 0x544   :  { %v1156_v22 = vpop.permute.xlu1 %1155  ;;  %v1154_v45 = vpop.permute.xlu0 %1153 }
 0x545   :  { %v1174_v29 = vsel %vm192_vm4, %v1165_v39, %v1156_v22  ;;  %v1172_v50 = vsel %vm192_vm4, %v1162_v44, %v1154_v45 }
 0x546   :  { %2708 = vmatprep.mubr.msk.bf16.mxu1 %vm215_vm5, %v1172_v50 }
 0x547   :  { %2709 = vmatmul.mubr.msk.bf16.vlgmr.msra.gmra.mxu1 %vm215_vm5, %v1174_v29 }
 0x548   :  { %v1142_v51 = vpop.permute.xlu1 %1141  ;;  %v1140_v52 = vpop.permute.xlu0 %1139 }
 0x549   :  { %v1170_v55 = vsel %vm181_vm3, %v1112_v11, %v1142_v51  ;;  %v1167_v42 = vsel %vm181_vm3, %v1116_v8, %v1140_v52 }
 0x54c   :  { %v1160_v54 = vpop.permute.xlu1 %1159  ;;  %v1158_v49 = vpop.permute.xlu0 %1157 }
 0x54d   :  { %v1178_v19 = vsel %vm192_vm4, %v1170_v55, %v1160_v54  ;;  %v1176_v58 = vsel %vm192_vm4, %v1167_v42, %v1158_v49 }
 0x54e   :  { %2712 = vmatprep.mubr.msk.bf16.mxu1 %vm215_vm5, %v1176_v58 }
 0x54f   :  { %2713 = vmatmul.mubr.msk.bf16.gmra.mxu1 %vm215_vm5, %v1178_v19 }
 0x607   :  { %v2710_v40 = vpop.f32.mrf.mxu1 }
 0x608   :  { %v3479_v27 = vadd.f32 %v2710_v40, %v2565_v43 }
 0x609   :  { %v1240_v7 = vpop.f32.mrf.mxu1 }
 0x60a   :  { %v3477_v48 = vadd.f32 %v2565_v43, %v1240_v7  ;;  %v1295_v25 = vmul.f32 %v3479_v27, %v3479_v27  ;;  %v1274_v13 = vsel %vm181_vm3, %v3479_v27, 0.0 }
 0x60b   :  { %v2711_v17 = vpop.f32.mrf.mxu1 }
 0x60c   :  { %v1293_v9 = vmul.f32 %v3477_v48, %v3477_v48  ;;  %v3483_v30 = vadd.f32 %v2711_v17, %v2565_v43  ;;  %v1271_v11 = vsel %vm181_vm3, %v3477_v48, 0.0  ;;  %v1304_v37 = vsel %vm181_vm3, %v1295_v25, 0.0 }
 0x60d   :  { %v1243_v8 = vpop.f32.mrf.mxu1 }
 0x60e   :  { %v3485_v41 = vadd.f32 %v2565_v43, %v1243_v8  ;;  %v1301_v14 = vsel %vm181_vm3, %v1293_v9, 0.0  ;;  %v1296_v4 = vmul.f32 %v3483_v30, %v3483_v30  ;;  %v1276_v38 = vsel %vm181_vm3, %v3483_v30, 0.0 }
 0x60f   :  { %v2714_v10 = vpop.f32.mrf.mxu1 }
 0x610   :  { %v1272_v12 = vsel %vm181_vm3, %v3485_v41, 0.0  ;;  %v1294_v20 = vmul.f32 %v3485_v41, %v3485_v41  ;;  %v3506_v60 = vadd.f32 %v2714_v10, %v2565_v43  ;;  %v1306_v29 = vsel %vm181_vm3, %v1296_v4, 0.0 }
 0x611   :  { %v1273_v16 = vadd.f32 %v1272_v12, %v1271_v11  ;;  %v1256_v53 = vpop.f32.mrf.mxu1 }
 0x612   :  { %v1302_v15 = vsel %vm181_vm3, %v1294_v20, 0.0  ;;  %v3501_v26 = vadd.f32 %v2565_v43, %v1256_v53  ;;  %v1299_v54 = vmul.f32 %v3506_v60, %v3506_v60  ;;  %v1282_v40 = vsel %vm181_vm3, %v3506_v60, 0.0 }
 0x613   :  { %v1275_v31 = vadd.f32 %v1274_v13, %v1273_v16  ;;  %v1303_v32 = vadd.f32 %v1302_v15, %v1301_v14  ;;  %v2715_v18 = vpop.f32.mrf.mxu1 }
 0x614   :  { %v1297_v39 = vmul.f32 %v3501_v26, %v3501_v26  ;;  %v1278_v50 = vsel %vm181_vm3, %v3501_v26, 0.0  ;;  %v1268_v51 = vadd.f32 %v2715_v18, %v2565_v43  ;;  %v1312_v9 = vsel %vm181_vm3, %v1299_v54, 0.0  ;;  %v2831_v54 = vpop.permute.xlu0 %2830 }
 0x615   :  { %v1305_v44 = vadd.f32 %v1304_v37, %v1303_v32  ;;  %v1277_v22 = vadd.f32 %v1276_v38, %v1275_v31  ;;  %v1259_v45 = vpop.f32.mrf.mxu1 }
 0x616   :  { %v1260_v52 = vadd.f32 %v2565_v43, %v1259_v45  ;;  %v1308_v49 = vsel %vm181_vm3, %v1297_v39, 0.0  ;;  %v1300_v7 = vmul.f32 %v1268_v51, %v1268_v51  ;;  %v1284_v10 = vsel %vm181_vm3, %v1268_v51, 0.0 }
 0x617   :  { %v1279_v55 = vadd.f32 %v1278_v50, %v1277_v22  ;;  %v1307_v42 = vadd.f32 %v1306_v29, %v1305_v44 }
 0x618   :  { %v1280_v19 = vsel %vm181_vm3, %v1260_v52, 0.0  ;;  %v1298_v58 = vmul.f32 %v1260_v52, %v1260_v52  ;;  %v1314_v12 = vsel %vm181_vm3, %v1300_v7, 0.0 }
 0x619   :  { %v1309_v46 = vadd.f32 %v1308_v49, %v1307_v42  ;;  %v1281_v3 = vadd.f32 %v1280_v19, %v1279_v55  ;;  %v2836_v42 = vpop.permute.xlu1 %2835  ;;  %v2841_v19 = vpop.permute.xlu0 %2840 }
 0x61a   :  { %v1310_v17 = vsel %vm181_vm3, %v1298_v58, 0.0 }
 0x61b   :  { %v1283_v8 = vadd.f32 %v1282_v40, %v1281_v3  ;;  %v1311_v43 = vadd.f32 %v1310_v17, %v1309_v46  ;;  %v2572_v17 = vld [vmem:[%s4018_s6 + $0x3] ss:$0 sm:$0xff] }
 0x61d   :  { %v1285_v25 = vadd.f32 %v1284_v10, %v1283_v8  ;;  %v1313_v11 = vadd.f32 %v1312_v9, %v1311_v43  ;;  %v2846_v49 = vpop.permute.xlu1 %2845 }
 0x61f   :  { %v1286_v20 = vrot.slane %v1285_v25, 4  ;;  %v1315_v13 = vadd.f32 %v1314_v12, %v1313_v11 }
 0x621   :  { %v1287_v16 = vadd.f32 %v1286_v20, %v1285_v25  ;;  %v1316_v53 = vrot.slane %v1315_v13, 4 }
 0x623   :  { %v1288_v14 = vrot.slane %v1287_v16, 2  ;;  %v1317_v4 = vadd.f32 %v1316_v53, %v1315_v13 }
 0x625   :  { %v1289_v15 = vadd.f32 %v1288_v14, %v1287_v16  ;;  %v1318_v31 = vrot.slane %v1317_v4, 2 }
 0x627   :  { %v1290_v32 = vrot.slane %v1289_v15, 1  ;;  %v1319_v18 = vadd.f32 %v1318_v31, %v1317_v4 }
 0x629   :  { %v1291_v37 = vadd.f32 %v1290_v32, %v1289_v15  ;;  %v1320_v38 = vrot.slane %v1319_v18, 1 }
 0x62b   :  { %v1292_v39 = vmul.f32 0.015625, %v1291_v37  ;;  %v1321_v44 = vadd.f32 %v1320_v38, %v1319_v18 }
 0x62d   :  { %v1322_v22 = vmul.f32 0.015625, %v1321_v44  ;;  %v1323_v45 = vmul.f32 %v1292_v39, %v1292_v39  ;;  %v1331_v58 = vsub.f32 %v1260_v52, %v1292_v39  ;;  %v1328_v46 = vsub.f32 %v3479_v27, %v1292_v39 }
 0x62e   :  { %v1329_v3 = vsub.f32 %v3483_v30, %v1292_v39  ;;  %v1326_v40 = vsub.f32 %v3477_v48, %v1292_v39  ;;  %v1327_v8 = vsub.f32 %v3485_v41, %v1292_v39  ;;  %v1332_v43 = vsub.f32 %v3506_v60, %v1292_v39  ;;  %v2574_v48 = vld [vmem:[%s4019_s7 + $0x3] ss:$0 sm:$0xff] }
 0x62f   :  { %v1324_v29 = vsub.f32 %v1322_v22, %v1323_v45  ;;  %v1333_v9 = vsub.f32 %v1268_v51, %v1292_v39  ;;  %v1330_v10 = vsub.f32 %v3501_v26, %v1292_v39 }
 0x631   :  { %v1325_v50 = vmax.f32 %v1324_v29, 0.0 }
 0x633   :  { %v1334_v55 = vadd.f32 1e-05, %v1325_v50 }
 0x635   :  { %2904 = vrsqrt.f32 %v1334_v55 }
 0x642   :  { %v2905_v7 = vpop.eup %2904 }
 0x643   :  { %v1341_v25 = vmul.f32 %v2905_v7, %v1331_v58  ;;  %v1338_v52 = vmul.f32 %v2905_v7, %v1328_v46  ;;  %v1339_v11 = vmul.f32 %v2905_v7, %v1329_v3  ;;  %v1336_v27 = vmul.f32 %v2905_v7, %v1326_v40 }
 0x644   :  { %v1337_v30 = vmul.f32 %v2905_v7, %v1327_v8  ;;  %v1342_v12 = vmul.f32 %v2905_v7, %v1332_v43  ;;  %v1343_v20 = vmul.f32 %v2905_v7, %v1333_v9  ;;  %v1340_v13 = vmul.f32 %v2905_v7, %v1330_v10 }
 0x645   :  { %v1354_v16 = vmul.f32 %v2572_v17, %v1338_v52  ;;  %v1355_v53 = vmul.f32 %v2572_v17, %v1339_v11  ;;  %v1352_v41 = vmul.f32 %v2572_v17, %v1336_v27  ;;  %v1357_v14 = vmul.f32 %v2572_v17, %v1341_v25 }
 0x646   :  { %v1353_v60 = vmul.f32 %v2572_v17, %v1337_v30  ;;  %v1358_v51 = vmul.f32 %v2572_v17, %v1342_v12  ;;  %v1359_v4 = vmul.f32 %v2572_v17, %v1343_v20  ;;  %v1356_v26 = vmul.f32 %v2572_v17, %v1340_v13 }
 0x647   :  { %v1370_v15 = vadd.f32 %v2574_v48, %v1354_v16  ;;  %v1371_v31 = vadd.f32 %v2574_v48, %v1355_v53  ;;  %v1368_v32 = vadd.f32 %v2574_v48, %v1352_v41  ;;  %v1373_v18 = vadd.f32 %v2574_v48, %v1357_v14 }
 0x648   :  { %v1369_v37 = vadd.f32 %v2574_v48, %v1353_v60  ;;  %v1374_v38 = vadd.f32 %v2574_v48, %v1358_v51  ;;  %v1375_v39 = vadd.f32 %v2574_v48, %v1359_v4  ;;  %v1372_v44 = vadd.f32 %v2574_v48, %v1356_v26 }
 0x649   :  { %v1378_v22 = vmax.f32 %v1370_v15, 0.0  ;;  %v1379_v45 = vmax.f32 %v1371_v31, 0.0  ;;  %v1376_v29 = vmax.f32 %v1368_v32, 0.0  ;;  %v1381_v50 = vmax.f32 %v1373_v18, 0.0 }
 0x64a   :  { %v1377_v55 = vmax.f32 %v1369_v37, 0.0  ;;  %v1382_v58 = vmax.f32 %v1374_v38, 0.0  ;;  %v1383_v46 = vmax.f32 %v1375_v39, 0.0  ;;  %v1380_v3 = vmax.f32 %v1372_v44, 0.0 }
 0x64b   :  { %v2936_v40 = vadd.low.f32.bf16 %v1378_v22, %v2836_v42  ;;  %v2937_v7 = vadd.high.f32.bf16 %v1379_v45, %v2836_v42  ;;  %v2938_v8 = vadd.low.f32.bf16 %v1376_v29, %v2831_v54  ;;  %v2939_v17 = vadd.high.f32.bf16 %v1381_v50, %v2841_v19 }
 0x64c   :  { %v2940_v43 = vadd.high.f32.bf16 %v1377_v55, %v2831_v54  ;;  %v2941_v9 = vadd.low.f32.bf16 %v1382_v58, %v2846_v49  ;;  %v2942_v10 = vadd.high.f32.bf16 %v1383_v46, %v2846_v49  ;;  %v2943_v25 = vadd.low.f32.bf16 %v1380_v3, %v2841_v19 }
 0x64d   :  { %v1421_v52 = vpack.c.bf16 %v2937_v7, %v2936_v40  ;;  %v3535_v11 = vpack.c.bf16 %v1379_v45, %v1378_v22  ;;  %v3537_v27 = vpack.c.bf16 %v1377_v55, %v1376_v29  ;;  %v3539_v48 = vpack.c.bf16 %v1383_v46, %v1382_v58 }
 0x64e   :  { %v1420_v30 = vpack.c.bf16 %v2940_v43, %v2938_v8  ;;  %v1423_v12 = vpack.c.bf16 %v2942_v10, %v2941_v9  ;;  %v1422_v20 = vpack.c.bf16 %v2939_v17, %v2943_v25  ;;  %v3541_v13 = vpack.c.bf16 %v1381_v50, %v1380_v3 }
 0x64f   :  { %v1429_v16 = vrot.slane %v1421_v52, 7 }
 0x650   :  { %v1428_v42 = vrot.slane %v1420_v30, 7  ;;  %v1431_v53 = vrot.slane %v1422_v20, 7  ;;  %v1432_v19 = vrot.slane %v1423_v12, 7 }
 0x651   :  { %v1439_v54 = vsel %vm122_vm1, %v1429_v16, 0 }
 0x652   :  { %v1435_v49 = vsel %vm122_vm1, 0, %v1428_v42  ;;  %v1430_v41 = vsel %vm122_vm1, %v1428_v42, %v1429_v16  ;;  %v1449_v14 = vrot.slane %v1439_v54, 1  ;;  %v1437_v4 = vsel %vm122_vm1, 0, %v1431_v53 }
 0x653   :  { %v1447_v60 = vrot.slane %v1430_v41, 1  ;;  %v1446_v51 = vrot.slane %v1435_v49, 1  ;;  %v1465_v26 = vrot.slane %v1430_v41, 2  ;;  %v1467_v32 = vrot.slane %v1439_v54, 2 }
 0x654   :  { %v1464_v18 = vrot.slane %v1435_v49, 2  ;;  %v1433_v37 = vsel %vm122_vm1, %v1431_v53, %v1432_v19  ;;  %v1441_v38 = vsel %vm122_vm1, %v1432_v19, 0  ;;  %v1451_v39 = vrot.slane %v1437_v4, 1 }
 0x655   :  { %v1450_v15 = vsel %vm143_vm2, %v1447_v60, %v1449_v14  ;;  %v1448_v31 = vsel %vm143_vm2, %v1446_v51, %v1447_v60  ;;  %v1468_v44 = vsel %vm162_vm0, %v1465_v26, %v1467_v32  ;;  %v1452_v45 = vrot.slane %v1433_v37, 1  ;;  %v2578_v51 = vld [vmem:[%s4017_s5 + $0x4] ss:$0 sm:$0xff] }
 0x656   :  { %1458 = vrot.lane.b32.xlu1 %v1450_v15, %s2962_s18  ;;  %1456 = vrot.lane.b32.xlu0 %v1448_v31, %s2962_s18  ;;  %v1466_v22 = vsel %vm162_vm0, %v1464_v18, %v1465_v26  ;;  %v1454_v29 = vrot.slane %v1441_v38, 1  ;;  %v1470_v50 = vrot.slane %v1433_v37, 2  ;;  %v1472_v46 = vrot.slane %v1441_v38, 2 }
 0x657   :  { %v1453_v58 = vsel %vm143_vm2, %v1451_v39, %v1452_v45  ;;  %v1469_v3 = vrot.slane %v1437_v4, 2 }
 0x658   :  { %v1455_v55 = vsel %vm143_vm2, %v1452_v45, %v1454_v29  ;;  %v1473_v40 = vsel %vm162_vm0, %v1470_v50, %v1472_v46 }
 0x659   :  { %v1471_v7 = vsel %vm162_vm0, %v1469_v3, %v1470_v50 }
 0x65a   :  { %1476 = vrot.lane.b32.xlu1 %v1468_v44, %s2961_s17  ;;  %1474 = vrot.lane.b32.xlu0 %v1466_v22, %s2961_s17 }
 0x65e   :  { %1462 = vrot.lane.b32.xlu1 %v1455_v55, %s2962_s18  ;;  %1460 = vrot.lane.b32.xlu0 %v1453_v58, %s2962_s18 }
 0x662   :  { %1480 = vrot.lane.b32.xlu1 %v1473_v40, %s2961_s17  ;;  %1478 = vrot.lane.b32.xlu0 %v1471_v7, %s2961_s17 }
 0x666   :  { %2855 = vrot.lane.b32.xlu1 %v3101_v33, %s2967_s1  ;;  %2850 = vrot.lane.b32.xlu0 %v3105_v34, %s2967_s1 }
 0x66a   :  { %2865 = vrot.lane.b32.xlu1 %v3109_v35, %s2967_s1  ;;  %2860 = vrot.lane.b32.xlu0 %v3111_v36, %s2967_s1 }
 0x6c8   :  { %v1459_v8 = vpop.permute.xlu1 %1458  ;;  %v1457_v17 = vpop.permute.xlu0 %1456 }
 0x6c9   :  { %v1486_v43 = vsel %vm181_vm3, %v1430_v41, %v1459_v8  ;;  %v1483_v9 = vsel %vm181_vm3, %v1435_v49, %v1457_v17  ;;  %v2894_v41 = vld [vmem:[%s4016_s4 + $0x28] sm:$0x3f]  }
 0x6ca   :  { %2754 = vmatprep.subr.msk.bf16.mxu1 %vm162_vm0, %v2894_v41  ;;  %v1846_v14 = vsel %vm162_vm0, %v2894_v41, 0 }
 0x6cb   :  { %2727 = vmatpush3.bf16.msra.mxu1 %v1846_v14 }
 0x6cc   :  { %v1477_v10 = vpop.permute.xlu1 %1476  ;;  %v1475_v25 = vpop.permute.xlu0 %1474 }
 0x6cd   :  { %v1495_v52 = vsel %vm192_vm4, %v1486_v43, %v1477_v10  ;;  %v1493_v30 = vsel %vm192_vm4, %v1483_v9, %v1475_v25 }
 0x6ce   :  { %2718 = vmatprep.mubr.msk.bf16.mxu0 %vm215_vm5, %v1493_v30 }
 0x6cf   :  { %2719 = vmatmul.mubr.msk.bf16.vlgmr.msra.gmra.mxu0 %vm215_vm5, %v1495_v52 }
 0x6d0   :  { %v1463_v12 = vpop.permute.xlu1 %1462  ;;  %v1461_v20 = vpop.permute.xlu0 %1460 }
 0x6d1   :  { %v1491_v16 = vsel %vm181_vm3, %v1433_v37, %v1463_v12  ;;  %v1488_v42 = vsel %vm181_vm3, %v1437_v4, %v1461_v20 }
 0x6d4   :  { %v1481_v53 = vpop.permute.xlu1 %1480  ;;  %v1479_v54 = vpop.permute.xlu0 %1478 }
 0x6d5   :  { %v1499_v49 = vsel %vm192_vm4, %v1491_v16, %v1481_v53  ;;  %v1497_v19 = vsel %vm192_vm4, %v1488_v42, %v1479_v54 }
 0x6d6   :  { %2722 = vmatprep.mubr.msk.bf16.mxu0 %vm215_vm5, %v1497_v19 }
 0x6d7   :  { %2723 = vmatmul.mubr.msk.bf16.gmra.mxu0 %vm215_vm5, %v1499_v49 }
 0x78f   :  { %v2720_v60 = vpop.f32.mrf.mxu0 }
 0x790   :  { %v3591_v31 = vadd.f32 %v2720_v60, %v2578_v51 }
 0x791   :  { %v1561_v4 = vpop.f32.mrf.mxu0 }
 0x792   :  { %v3589_v26 = vadd.f32 %v2578_v51, %v1561_v4  ;;  %v1616_v44 = vmul.f32 %v3591_v31, %v3591_v31  ;;  %v1595_v50 = vsel %vm181_vm3, %v3591_v31, 0.0 }
 0x793   :  { %v2721_v15 = vpop.f32.mrf.mxu0 }
 0x794   :  { %v1614_v18 = vmul.f32 %v3589_v26, %v3589_v26  ;;  %v3595_v37 = vadd.f32 %v2721_v15, %v2578_v51  ;;  %v1592_v22 = vsel %vm181_vm3, %v3589_v26, 0.0  ;;  %v1625_v9 = vsel %vm181_vm3, %v1616_v44, 0.0 }
 0x795   :  { %v1564_v32 = vpop.f32.mrf.mxu0 }
 0x796   :  { %v3597_v38 = vadd.f32 %v2578_v51, %v1564_v32  ;;  %v1622_v46 = vsel %vm181_vm3, %v1614_v18, 0.0  ;;  %v1617_v3 = vmul.f32 %v3595_v37, %v3595_v37  ;;  %v1597_v10 = vsel %vm181_vm3, %v3595_v37, 0.0 }
 0x797   :  { %v2724_v39 = vpop.f32.mrf.mxu0 }
 0x798   :  { %v1593_v45 = vsel %vm181_vm3, %v3597_v38, 0.0  ;;  %v1615_v29 = vmul.f32 %v3597_v38, %v3597_v38  ;;  %v3618_v25 = vadd.f32 %v2724_v39, %v2578_v51  ;;  %v1627_v16 = vsel %vm181_vm3, %v1617_v3, 0.0 }
 0x799   :  { %v1594_v55 = vadd.f32 %v1593_v45, %v1592_v22  ;;  %v1577_v58 = vpop.f32.mrf.mxu0 }
 0x79a   :  { %v1623_v40 = vsel %vm181_vm3, %v1615_v29, 0.0  ;;  %v3613_v7 = vadd.f32 %v2578_v51, %v1577_v58  ;;  %v1620_v41 = vmul.f32 %v3618_v25, %v3618_v25  ;;  %v1603_v18 = vsel %vm181_vm3, %v3618_v25, 0.0 }
 0x79b   :  { %v1596_v8 = vadd.f32 %v1595_v50, %v1594_v55  ;;  %v1624_v17 = vadd.f32 %v1623_v40, %v1622_v46  ;;  %v2725_v43 = vpop.f32.mrf.mxu0 }
 0x79c   :  { %v1618_v52 = vmul.f32 %v3613_v7, %v3613_v7  ;;  %v1599_v42 = vsel %vm181_vm3, %v3613_v7, 0.0  ;;  %v1589_v53 = vadd.f32 %v2725_v43, %v2578_v51  ;;  %v1633_v45 = vsel %vm181_vm3, %v1620_v41, 0.0 }
 0x79d   :  { %v1626_v30 = vadd.f32 %v1625_v9, %v1624_v17  ;;  %v1598_v12 = vadd.f32 %v1597_v10, %v1596_v8  ;;  %v1580_v20 = vpop.f32.mrf.mxu0 }
 0x79e   :  { %v1581_v54 = vadd.f32 %v2578_v51, %v1580_v20  ;;  %v1629_v14 = vsel %vm181_vm3, %v1618_v52, 0.0  ;;  %v1621_v39 = vmul.f32 %v1589_v53, %v1589_v53  ;;  %v1605_v29 = vsel %vm181_vm3, %v1589_v53, 0.0 }
 0x79f   :  { %v1600_v49 = vadd.f32 %v1599_v42, %v1598_v12  ;;  %v1628_v19 = vadd.f32 %v1627_v16, %v1626_v30 }
 0x7a0   :  { %v1601_v60 = vsel %vm181_vm3, %v1581_v54, 0.0  ;;  %v1619_v4 = vmul.f32 %v1581_v54, %v1581_v54  ;;  %v1635_v58 = vsel %vm181_vm3, %v1621_v39, 0.0 }
 0x7a1   :  { %v1630_v15 = vadd.f32 %v1629_v14, %v1628_v19  ;;  %v1602_v32 = vadd.f32 %v1601_v60, %v1600_v49 }
 0x7a2   :  { %v1631_v44 = vsel %vm181_vm3, %v1619_v4, 0.0  ;;  %v2856_v4 = vpop.permute.xlu1 %2855 }
 0x7a3   :  { %v1604_v22 = vadd.f32 %v1603_v18, %v1602_v32  ;;  %v1632_v51 = vadd.f32 %v1631_v44, %v1630_v15  ;;  %v2851_v15 = vpop.permute.xlu0 %2850 }
 0x7a5   :  { %v1606_v50 = vadd.f32 %v1605_v29, %v1604_v22  ;;  %v1634_v55 = vadd.f32 %v1633_v45, %v1632_v51  ;;  %v2585_v29 = vld [vmem:[%s4018_s6 + $0x4] ss:$0 sm:$0xff] }
 0x7a6   :  { %v2866_v32 = vpop.permute.xlu1 %2865 }
 0x7a7   :  { %v1607_v46 = vrot.slane %v1606_v50, 4  ;;  %v1636_v3 = vadd.f32 %v1635_v58, %v1634_v55  ;;  %v2861_v18 = vpop.permute.xlu0 %2860 }
 0x7a9   :  { %v1608_v40 = vadd.f32 %v1607_v46, %v1606_v50  ;;  %v1637_v8 = vrot.slane %v1636_v3, 4 }
 0x7ab   :  { %v1609_v17 = vrot.slane %v1608_v40, 2  ;;  %v1638_v43 = vadd.f32 %v1637_v8, %v1636_v3 }
 0x7ad   :  { %v1610_v9 = vadd.f32 %v1609_v17, %v1608_v40  ;;  %v1639_v10 = vrot.slane %v1638_v43, 2 }
 0x7af   :  { %v1611_v52 = vrot.slane %v1610_v9, 1  ;;  %v1640_v30 = vadd.f32 %v1639_v10, %v1638_v43 }
 0x7b1   :  { %v1612_v12 = vadd.f32 %v1611_v52, %v1610_v9  ;;  %v1641_v20 = vrot.slane %v1640_v30, 1 }
 0x7b3   :  { %v1613_v16 = vmul.f32 0.015625, %v1612_v12  ;;  %v1642_v42 = vadd.f32 %v1641_v20, %v1640_v30 }
 0x7b5   :  { %v1643_v49 = vmul.f32 0.015625, %v1642_v42  ;;  %v1644_v19 = vmul.f32 %v1613_v16, %v1613_v16  ;;  %v1652_v39 = vsub.f32 %v1581_v54, %v1613_v16  ;;  %v1649_v44 = vsub.f32 %v3591_v31, %v1613_v16 }
 0x7b6   :  { %v1650_v22 = vsub.f32 %v3595_v37, %v1613_v16  ;;  %v1647_v51 = vsub.f32 %v3589_v26, %v1613_v16  ;;  %v1648_v50 = vsub.f32 %v3597_v38, %v1613_v16  ;;  %v1653_v55 = vsub.f32 %v3618_v25, %v1613_v16  ;;  %v2587_v26 = vld [vmem:[%s4019_s7 + $0x4] ss:$0 sm:$0xff] }
 0x7b7   :  { %v1645_v41 = vsub.f32 %v1643_v49, %v1644_v19  ;;  %v1654_v58 = vsub.f32 %v1589_v53, %v1613_v16  ;;  %v1651_v46 = vsub.f32 %v3613_v7, %v1613_v16 }
 0x7b9   :  { %v1646_v14 = vmax.f32 %v1645_v41, 0.0 }
 0x7bb   :  { %v1655_v60 = vadd.f32 1e-05, %v1646_v14 }
 0x7bd   :  { %2906 = vrsqrt.f32 %v1655_v60 }
 0x7ca   :  { %v2907_v45 = vpop.eup %2906 }
 0x7cb   :  { %v1662_v3 = vmul.f32 %v2907_v45, %v1652_v39  ;;  %v1659_v54 = vmul.f32 %v2907_v45, %v1649_v44  ;;  %v1660_v40 = vmul.f32 %v2907_v45, %v1650_v22  ;;  %v1657_v31 = vmul.f32 %v2907_v45, %v1647_v51 }
 0x7cc   :  { %v1658_v37 = vmul.f32 %v2907_v45, %v1648_v50  ;;  %v1663_v8 = vmul.f32 %v2907_v45, %v1653_v55  ;;  %v1664_v17 = vmul.f32 %v2907_v45, %v1654_v58  ;;  %v1661_v43 = vmul.f32 %v2907_v45, %v1651_v46 }
 0x7cd   :  { %v1675_v9 = vmul.f32 %v2585_v29, %v1659_v54  ;;  %v1676_v10 = vmul.f32 %v2585_v29, %v1660_v40  ;;  %v1673_v38 = vmul.f32 %v2585_v29, %v1657_v31  ;;  %v1678_v52 = vmul.f32 %v2585_v29, %v1662_v3 }
 0x7ce   :  { %v1674_v25 = vmul.f32 %v2585_v29, %v1658_v37  ;;  %v1679_v53 = vmul.f32 %v2585_v29, %v1663_v8  ;;  %v1680_v30 = vmul.f32 %v2585_v29, %v1664_v17  ;;  %v1677_v7 = vmul.f32 %v2585_v29, %v1661_v43 }
 0x7cf   :  { %v1691_v12 = vadd.f32 %v2587_v26, %v1675_v9  ;;  %v1692_v20 = vadd.f32 %v2587_v26, %v1676_v10  ;;  %v1689_v16 = vadd.f32 %v2587_v26, %v1673_v38  ;;  %v1694_v42 = vadd.f32 %v2587_v26, %v1678_v52 }
 0x7d0   :  { %v1690_v49 = vadd.f32 %v2587_v26, %v1674_v25  ;;  %v1695_v19 = vadd.f32 %v2587_v26, %v1679_v53  ;;  %v1696_v41 = vadd.f32 %v2587_v26, %v1680_v30  ;;  %v1693_v14 = vadd.f32 %v2587_v26, %v1677_v7 }
 0x7d1   :  { %v1699_v60 = vmax.f32 %v1691_v12, 0.0  ;;  %v1700_v39 = vmax.f32 %v1692_v20, 0.0  ;;  %v1697_v44 = vmax.f32 %v1689_v16, 0.0  ;;  %v1702_v22 = vmax.f32 %v1694_v42, 0.0 }
 0x7d2   :  { %v1698_v51 = vmax.f32 %v1690_v49, 0.0  ;;  %v1703_v45 = vmax.f32 %v1695_v19, 0.0  ;;  %v1704_v50 = vmax.f32 %v1696_v41, 0.0  ;;  %v1701_v55 = vmax.f32 %v1693_v14, 0.0 }
 0x7d3   :  { %v2944_v58 = vadd.low.f32.bf16 %v1699_v60, %v2856_v4  ;;  %v2945_v46 = vadd.high.f32.bf16 %v1700_v39, %v2856_v4  ;;  %v2946_v3 = vadd.low.f32.bf16 %v1697_v44, %v2851_v15  ;;  %v2947_v29 = vadd.high.f32.bf16 %v1702_v22, %v2861_v18 }
 0x7d4   :  { %v2948_v54 = vadd.high.f32.bf16 %v1698_v51, %v2851_v15  ;;  %v2949_v40 = vadd.low.f32.bf16 %v1703_v45, %v2866_v32  ;;  %v2950_v31 = vadd.high.f32.bf16 %v1704_v50, %v2866_v32  ;;  %v2951_v37 = vadd.low.f32.bf16 %v1701_v55, %v2861_v18 }
 0x7d5   :  { %v1742_v8 = vpack.c.bf16 %v2945_v46, %v2944_v58  ;;  %v3647_v17 = vpack.c.bf16 %v1700_v39, %v1699_v60  ;;  %v3649_v26 = vpack.c.bf16 %v1698_v51, %v1697_v44  ;;  %v3651_v43 = vpack.c.bf16 %v1704_v50, %v1703_v45 }
 0x7d6   :  { %v1741_v9 = vpack.c.bf16 %v2948_v54, %v2946_v3  ;;  %v1744_v10 = vpack.c.bf16 %v2950_v31, %v2949_v40  ;;  %v1743_v38 = vpack.c.bf16 %v2947_v29, %v2951_v37  ;;  %v3653_v52 = vpack.c.bf16 %v1702_v22, %v1701_v55 }
 0x7d7   :  { %v1750_v25 = vrot.slane %v1742_v8, 7 }
 0x7d8   :  { %v1749_v4 = vrot.slane %v1741_v9, 7  ;;  %v1752_v53 = vrot.slane %v1743_v38, 7  ;;  %v1753_v18 = vrot.slane %v1744_v10, 7 }
 0x7d9   :  { %v1760_v15 = vsel %vm122_vm1, %v1750_v25, 0 }
 0x7da   :  { %v1756_v32 = vsel %vm122_vm1, 0, %v1749_v4  ;;  %v1751_v30 = vsel %vm122_vm1, %v1749_v4, %v1750_v25  ;;  %v1770_v7 = vrot.slane %v1760_v15, 1  ;;  %v1758_v16 = vsel %vm122_vm1, 0, %v1752_v53 }
 0x7db   :  { %v1768_v12 = vrot.slane %v1751_v30, 1  ;;  %v1767_v20 = vrot.slane %v1756_v32, 1  ;;  %v1786_v42 = vrot.slane %v1751_v30, 2  ;;  %v1788_v41 = vrot.slane %v1760_v15, 2 }
 0x7dc   :  { %v1785_v14 = vrot.slane %v1756_v32, 2  ;;  %v1754_v60 = vsel %vm122_vm1, %v1752_v53, %v1753_v18  ;;  %v1762_v39 = vsel %vm122_vm1, %v1753_v18, 0  ;;  %v1772_v44 = vrot.slane %v1758_v16, 1 }
 0x7dd   :  { %v1771_v49 = vsel %vm143_vm2, %v1768_v12, %v1770_v7  ;;  %v1769_v19 = vsel %vm143_vm2, %v1767_v20, %v1768_v12  ;;  %v1789_v22 = vsel %vm162_vm0, %v1786_v42, %v1788_v41  ;;  %v1773_v45 = vrot.slane %v1754_v60, 1  ;;  %v2591_v7 = vld [vmem:[%s4017_s5 + $0x5] ss:$0 sm:$0xff] }
 0x7de   :  { %1779 = vrot.lane.b32.xlu1 %v1771_v49, %s2962_s18  ;;  %1777 = vrot.lane.b32.xlu0 %v1769_v19, %s2962_s18  ;;  %v1787_v51 = vsel %vm162_vm0, %v1785_v14, %v1786_v42  ;;  %v1775_v50 = vrot.slane %v1762_v39, 1  ;;  %v1791_v55 = vrot.slane %v1754_v60, 2  ;;  %v1793_v3 = vrot.slane %v1762_v39, 2 }
 0x7df   :  { %v1774_v46 = vsel %vm143_vm2, %v1772_v44, %v1773_v45  ;;  %v1790_v29 = vrot.slane %v1758_v16, 2 }
 0x7e0   :  { %v1776_v58 = vsel %vm143_vm2, %v1773_v45, %v1775_v50  ;;  %v1794_v54 = vsel %vm162_vm0, %v1791_v55, %v1793_v3 }
 0x7e1   :  { %v1792_v40 = vsel %vm162_vm0, %v1790_v29, %v1791_v55 }
 0x7e2   :  { %1797 = vrot.lane.b32.xlu1 %v1789_v22, %s2961_s17  ;;  %1795 = vrot.lane.b32.xlu0 %v1787_v51, %s2961_s17 }
 0x7e6   :  { %1783 = vrot.lane.b32.xlu1 %v1776_v58, %s2962_s18  ;;  %1781 = vrot.lane.b32.xlu0 %v1774_v46, %s2962_s18 }
 0x7ea   :  { %1801 = vrot.lane.b32.xlu1 %v1794_v54, %s2961_s17  ;;  %1799 = vrot.lane.b32.xlu0 %v1792_v40, %s2961_s17 }
 0x7ee   :  { %2875 = vrot.lane.b32.xlu1 %v3101_v33, %s2968_s16  ;;  %2870 = vrot.lane.b32.xlu0 %v3105_v34, %s2968_s16 }
 0x7f2   :  { %2885 = vrot.lane.b32.xlu1 %v3109_v35, %s2968_s16  ;;  %2880 = vrot.lane.b32.xlu0 %v3111_v36, %s2968_s16 }
 0x850   :  { %v1780_v31 = vpop.permute.xlu1 %1779  ;;  %v1778_v37 = vpop.permute.xlu0 %1777 }
 0x851   :  { %v1807_v8 = vsel %vm181_vm3, %v1751_v30, %v1780_v31  ;;  %v1804_v9 = vsel %vm181_vm3, %v1756_v32, %v1778_v37 }
 0x854   :  { %v1798_v10 = vpop.permute.xlu1 %1797  ;;  %v1796_v38 = vpop.permute.xlu0 %1795 }
 0x855   :  { %v1816_v25 = vsel %vm192_vm4, %v1807_v8, %v1798_v10  ;;  %v1814_v4 = vsel %vm192_vm4, %v1804_v9, %v1796_v38 }
 0x856   :  { %2728 = vmatprep.mubr.msk.bf16.mxu1 %vm215_vm5, %v1814_v4 }
 0x857   :  { %2729 = vmatmul.mubr.msk.bf16.vlgmr.msra.gmra.mxu1 %vm215_vm5, %v1816_v25 }
 0x858   :  { %v1784_v33 = vpop.permute.xlu1 %1783  ;;  %v1782_v34 = vpop.permute.xlu0 %1781 }
 0x859   :  { %v1812_v35 = vsel %vm181_vm3, %v1754_v60, %v1784_v33  ;;  %v1809_v36 = vsel %vm181_vm3, %v1758_v16, %v1782_v34  ;;  %v2895_v16 = vld [vmem:[%s4016_s4 + $0x30] sm:$0x3f]  }
 0x85a   :  { %2755 = vmatprep.subr.msk.bf16.mxu0 %vm162_vm0, %v2895_v16  ;;  %v2167_v41 = vsel %vm162_vm0, %v2895_v16, 0 }
 0x85b   :  { %2737 = vmatpush3.bf16.msra.mxu0 %v2167_v41 }
 0x85c   :  { %v1802_v53 = vpop.permute.xlu1 %1801  ;;  %v1800_v15 = vpop.permute.xlu0 %1799 }
 0x85d   :  { %v1820_v32 = vsel %vm192_vm4, %v1812_v35, %v1802_v53  ;;  %v1818_v18 = vsel %vm192_vm4, %v1809_v36, %v1800_v15 }
 0x85e   :  { %2732 = vmatprep.mubr.msk.bf16.mxu1 %vm215_vm5, %v1818_v18 }
 0x85f   :  { %2733 = vmatmul.mubr.msk.bf16.gmra.mxu1 %vm215_vm5, %v1820_v32 }
 0x917   :  { %v2730_v30 = vpop.f32.mrf.mxu1 }
 0x918   :  { %v3701_v49 = vadd.f32 %v2730_v30, %v2591_v7 }
 0x919   :  { %v1882_v12 = vpop.f32.mrf.mxu1 }
 0x91a   :  { %v3696_v20 = vadd.f32 %v2591_v7, %v1882_v12  ;;  %v1937_v22 = vmul.f32 %v3701_v49, %v3701_v49  ;;  %v1916_v55 = vsel %vm181_vm3, %v3701_v49, 0.0 }
 0x91b   :  { %v2731_v42 = vpop.f32.mrf.mxu1 }
 0x91c   :  { %v1935_v14 = vmul.f32 %v3696_v20, %v3696_v20  ;;  %v3707_v60 = vadd.f32 %v2731_v42, %v2591_v7  ;;  %v1913_v51 = vsel %vm181_vm3, %v3696_v20, 0.0  ;;  %v1946_v9 = vsel %vm181_vm3, %v1937_v22, 0.0 }
 0x91d   :  { %v1885_v19 = vpop.f32.mrf.mxu1 }
 0x91e   :  { %v3709_v39 = vadd.f32 %v2591_v7, %v1885_v19  ;;  %v1943_v3 = vsel %vm181_vm3, %v1935_v14, 0.0  ;;  %v1938_v29 = vmul.f32 %v3707_v60, %v3707_v60  ;;  %v1918_v10 = vsel %vm181_vm3, %v3707_v60, 0.0 }
 0x91f   :  { %v2734_v44 = vpop.f32.mrf.mxu1 }
 0x920   :  { %v1914_v45 = vsel %vm181_vm3, %v3709_v39, 0.0  ;;  %v1936_v50 = vmul.f32 %v3709_v39, %v3709_v39  ;;  %v3730_v38 = vadd.f32 %v2734_v44, %v2591_v7  ;;  %v1948_v35 = vsel %vm181_vm3, %v1938_v29, 0.0 }
 0x921   :  { %v1915_v58 = vadd.f32 %v1914_v45, %v1913_v51  ;;  %v1898_v46 = vpop.f32.mrf.mxu1 }
 0x922   :  { %v1944_v54 = vsel %vm181_vm3, %v1936_v50, 0.0  ;;  %v3725_v40 = vadd.f32 %v2591_v7, %v1898_v46  ;;  %v1941_v30 = vmul.f32 %v3730_v38, %v3730_v38  ;;  %v1924_v14 = vsel %vm181_vm3, %v3730_v38, 0.0 }
 0x923   :  { %v1917_v31 = vadd.f32 %v1916_v55, %v1915_v58  ;;  %v1945_v37 = vadd.f32 %v1944_v54, %v1943_v3  ;;  %v2735_v8 = vpop.f32.mrf.mxu1 }
 0x924   :  { %v1939_v25 = vmul.f32 %v3725_v40, %v3725_v40  ;;  %v1920_v36 = vsel %vm181_vm3, %v3725_v40, 0.0  ;;  %v1910_v53 = vadd.f32 %v2735_v8, %v2591_v7  ;;  %v1954_v45 = vsel %vm181_vm3, %v1941_v30, 0.0 }
 0x925   :  { %v1947_v4 = vadd.f32 %v1946_v9, %v1945_v37  ;;  %v1919_v33 = vadd.f32 %v1918_v10, %v1917_v31  ;;  %v1901_v34 = vpop.f32.mrf.mxu1 }
 0x926   :  { %v1902_v15 = vadd.f32 %v2591_v7, %v1901_v34  ;;  %v1950_v12 = vsel %vm181_vm3, %v1939_v25, 0.0  ;;  %v1942_v44 = vmul.f32 %v1910_v53, %v1910_v53  ;;  %v1926_v50 = vsel %vm181_vm3, %v1910_v53, 0.0 }
 0x927   :  { %v1921_v32 = vadd.f32 %v1920_v36, %v1919_v33  ;;  %v1949_v18 = vadd.f32 %v1948_v35, %v1947_v4 }
 0x928   :  { %v1922_v16 = vsel %vm181_vm3, %v1902_v15, 0.0  ;;  %v1940_v42 = vmul.f32 %v1902_v15, %v1902_v15  ;;  %v1956_v46 = vsel %vm181_vm3, %v1942_v44, 0.0 }
 0x929   :  { %v1951_v19 = vadd.f32 %v1950_v12, %v1949_v18  ;;  %v1923_v41 = vadd.f32 %v1922_v16, %v1921_v32 }
 0x92a   :  { %v1952_v22 = vsel %vm181_vm3, %v1940_v42, 0.0  ;;  %v2876_v42 = vpop.permute.xlu1 %2875 }
 0x92b   :  { %v1925_v51 = vadd.f32 %v1924_v14, %v1923_v41  ;;  %v1953_v7 = vadd.f32 %v1952_v22, %v1951_v19  ;;  %v2871_v19 = vpop.permute.xlu0 %2870 }
 0x92d   :  { %v1927_v55 = vadd.f32 %v1926_v50, %v1925_v51  ;;  %v1955_v58 = vadd.f32 %v1954_v45, %v1953_v7  ;;  %v2598_v50 = vld [vmem:[%s4018_s6 + $0x5] ss:$0 sm:$0xff] }
 0x92e   :  { %v2886_v41 = vpop.permute.xlu1 %2885 }
 0x92f   :  { %v1928_v3 = vrot.slane %v1927_v55, 4  ;;  %v1957_v29 = vadd.f32 %v1956_v46, %v1955_v58  ;;  %v2881_v14 = vpop.permute.xlu0 %2880 }
 0x931   :  { %v1929_v54 = vadd.f32 %v1928_v3, %v1927_v55  ;;  %v1958_v31 = vrot.slane %v1957_v29, 4 }
 0x933   :  { %v1930_v37 = vrot.slane %v1929_v54, 2  ;;  %v1959_v8 = vadd.f32 %v1958_v31, %v1957_v29 }
 0x935   :  { %v1931_v9 = vadd.f32 %v1930_v37, %v1929_v54  ;;  %v1960_v10 = vrot.slane %v1959_v8, 2 }
 0x937   :  { %v1932_v25 = vrot.slane %v1931_v9, 1  ;;  %v1961_v4 = vadd.f32 %v1960_v10, %v1959_v8 }
 0x939   :  { %v1933_v33 = vadd.f32 %v1932_v25, %v1931_v9  ;;  %v1962_v34 = vrot.slane %v1961_v4, 1 }
 0x93b   :  { %v1934_v35 = vmul.f32 0.015625, %v1933_v33  ;;  %v1963_v36 = vadd.f32 %v1962_v34, %v1961_v4 }
 0x93d   :  { %v1964_v32 = vmul.f32 0.015625, %v1963_v36  ;;  %v1965_v18 = vmul.f32 %v1934_v35, %v1934_v35  ;;  %v1973_v44 = vsub.f32 %v1902_v15, %v1934_v35  ;;  %v1970_v22 = vsub.f32 %v3701_v49, %v1934_v35 }
 0x93e   :  { %v1971_v51 = vsub.f32 %v3707_v60, %v1934_v35  ;;  %v1968_v7 = vsub.f32 %v3696_v20, %v1934_v35  ;;  %v1969_v55 = vsub.f32 %v3709_v39, %v1934_v35  ;;  %v1974_v58 = vsub.f32 %v3730_v38, %v1934_v35  ;;  %v2600_v20 = vld [vmem:[%s4019_s7 + $0x5] ss:$0 sm:$0xff] }
 0x93f   :  { %v1966_v30 = vsub.f32 %v1964_v32, %v1965_v18  ;;  %v1975_v46 = vsub.f32 %v1910_v53, %v1934_v35  ;;  %v1972_v3 = vsub.f32 %v3725_v40, %v1934_v35 }
 0x941   :  { %v1967_v12 = vmax.f32 %v1966_v30, 0.0 }
 0x943   :  { %v1976_v16 = vadd.f32 1e-05, %v1967_v12 }
 0x945   :  { %2908 = vrsqrt.f32 %v1976_v16 }
 0x952   :  { %v2909_v45 = vpop.eup %2908 }
 0x953   :  { %v1983_v29 = vmul.f32 %v2909_v45, %v1973_v44  ;;  %v1980_v15 = vmul.f32 %v2909_v45, %v1970_v22  ;;  %v1981_v54 = vmul.f32 %v2909_v45, %v1971_v51  ;;  %v1978_v49 = vmul.f32 %v2909_v45, %v1968_v7 }
 0x954   :  { %v1979_v60 = vmul.f32 %v2909_v45, %v1969_v55  ;;  %v1984_v31 = vmul.f32 %v2909_v45, %v1974_v58  ;;  %v1985_v37 = vmul.f32 %v2909_v45, %v1975_v46  ;;  %v1982_v8 = vmul.f32 %v2909_v45, %v1972_v3 }
 0x955   :  { %v1996_v9 = vmul.f32 %v2598_v50, %v1980_v15  ;;  %v1997_v10 = vmul.f32 %v2598_v50, %v1981_v54  ;;  %v1994_v39 = vmul.f32 %v2598_v50, %v1978_v49  ;;  %v1999_v25 = vmul.f32 %v2598_v50, %v1983_v29 }
 0x956   :  { %v1995_v38 = vmul.f32 %v2598_v50, %v1979_v60  ;;  %v2000_v53 = vmul.f32 %v2598_v50, %v1984_v31  ;;  %v2001_v4 = vmul.f32 %v2598_v50, %v1985_v37  ;;  %v1998_v40 = vmul.f32 %v2598_v50, %v1982_v8 }
 0x957   :  { %v3759_v33 = vadd.f32 %v2600_v20, %v1996_v9  ;;  %v3761_v34 = vadd.f32 %v2600_v20, %v1997_v10  ;;  %v3763_v35 = vadd.f32 %v2600_v20, %v1994_v39  ;;  %v3765_v36 = vadd.f32 %v2600_v20, %v1999_v25 }
 0x958   :  { %v3767_v32 = vadd.f32 %v2600_v20, %v1995_v38  ;;  %v3769_v18 = vadd.f32 %v2600_v20, %v2000_v53  ;;  %v3771_v30 = vadd.f32 %v2600_v20, %v2001_v4  ;;  %v3773_v12 = vadd.f32 %v2600_v20, %v1998_v40 }
 0x959   :  { %v2020_v16 = vmax.f32 %v3759_v33, 0.0  ;;  %v2021_v44 = vmax.f32 %v3761_v34, 0.0  ;;  %v2018_v22 = vmax.f32 %v3763_v35, 0.0  ;;  %v2023_v51 = vmax.f32 %v3765_v36, 0.0 }
 0x95a   :  { %v2019_v7 = vmax.f32 %v3767_v32, 0.0  ;;  %v2024_v45 = vmax.f32 %v3769_v18, 0.0  ;;  %v2025_v50 = vmax.f32 %v3771_v30, 0.0  ;;  %v2022_v55 = vmax.f32 %v3773_v12, 0.0  ;;  %v2604_v18 = vld [vmem:[%s4017_s5 + $0x6] ss:$0 sm:$0xff] }
 0x95b   :  { %v2952_v58 = vadd.low.f32.bf16 %v2020_v16, %v2876_v42  ;;  %v2953_v46 = vadd.high.f32.bf16 %v2021_v44, %v2876_v42  ;;  %v2954_v3 = vadd.low.f32.bf16 %v2018_v22, %v2871_v19  ;;  %v2955_v29 = vadd.high.f32.bf16 %v2023_v51, %v2881_v14 }
 0x95c   :  { %v2956_v15 = vadd.high.f32.bf16 %v2019_v7, %v2871_v19  ;;  %v2957_v54 = vadd.low.f32.bf16 %v2024_v45, %v2886_v41  ;;  %v2958_v49 = vadd.high.f32.bf16 %v2025_v50, %v2886_v41  ;;  %v2959_v20 = vadd.low.f32.bf16 %v2022_v55, %v2881_v14 }
 0x95d   :  { %v2063_v60 = vpack.c.bf16 %v2953_v46, %v2952_v58 }
 0x95e   :  { %v2062_v42 = vpack.c.bf16 %v2956_v15, %v2954_v3  ;;  %v2065_v31 = vpack.c.bf16 %v2958_v49, %v2957_v54  ;;  %v2064_v37 = vpack.c.bf16 %v2955_v29, %v2959_v20 }
 0x95f   :  { %v2071_v8 = vrot.slane %v2063_v60, 7 }
 0x960   :  { %v2070_v9 = vrot.slane %v2062_v42, 7  ;;  %v2073_v10 = vrot.slane %v2064_v37, 7  ;;  %v2074_v25 = vrot.slane %v2065_v31, 7 }
 0x961   :  { %v2081_v39 = vsel %vm122_vm1, %v2071_v8, 0 }
 0x962   :  { %v3801_v19 = vsel %vm122_vm1, 0, %v2070_v9  ;;  %v2072_v38 = vsel %vm122_vm1, %v2070_v9, %v2071_v8  ;;  %v2091_v53 = vrot.slane %v2081_v39, 1  ;;  %v3806_v14 = vsel %vm122_vm1, 0, %v2073_v10 }
 0x963   :  { %v2089_v41 = vrot.slane %v2072_v38, 1  ;;  %v2088_v4 = vrot.slane %v3801_v19, 1  ;;  %v2107_v40 = vrot.slane %v2072_v38, 2  ;;  %v2109_v3 = vrot.slane %v2081_v39, 2 }
 0x964   :  { %v2106_v29 = vrot.slane %v3801_v19, 2  ;;  %v2075_v15 = vsel %vm122_vm1, %v2073_v10, %v2074_v25  ;;  %v2083_v54 = vsel %vm122_vm1, %v2074_v25, 0  ;;  %v2093_v49 = vrot.slane %v3806_v14, 1 }
 0x965   :  { %v2092_v58 = vsel %vm143_vm2, %v2089_v41, %v2091_v53  ;;  %v2090_v46 = vsel %vm143_vm2, %v2088_v4, %v2089_v41  ;;  %v2110_v20 = vsel %vm162_vm0, %v2107_v40, %v2109_v3  ;;  %v2094_v42 = vrot.slane %v2075_v15, 1 }
 0x966   :  { %2100 = vrot.lane.b32.xlu1 %v2092_v58, %s2962_s18  ;;  %2098 = vrot.lane.b32.xlu0 %v2090_v46, %s2962_s18  ;;  %v2108_v60 = vsel %vm162_vm0, %v2106_v29, %v2107_v40  ;;  %v2096_v31 = vrot.slane %v2083_v54, 1  ;;  %v2112_v37 = vrot.slane %v2075_v15, 2  ;;  %v2114_v10 = vrot.slane %v2083_v54, 2 }
 0x967   :  { %v2095_v9 = vsel %vm143_vm2, %v2093_v49, %v2094_v42  ;;  %v2111_v39 = vrot.slane %v3806_v14, 2 }
 0x968   :  { %v2097_v8 = vsel %vm143_vm2, %v2094_v42, %v2096_v31  ;;  %v2115_v25 = vsel %vm162_vm0, %v2112_v37, %v2114_v10 }
 0x969   :  { %v2113_v53 = vsel %vm162_vm0, %v2111_v39, %v2112_v37 }
 0x96a   :  { %2118 = vrot.lane.b32.xlu1 %v2110_v20, %s2961_s17  ;;  %2116 = vrot.lane.b32.xlu0 %v2108_v60, %s2961_s17 }
 0x96e   :  { %2104 = vrot.lane.b32.xlu1 %v2097_v8, %s2962_s18  ;;  %2102 = vrot.lane.b32.xlu0 %v2095_v9, %s2962_s18 }
 0x972   :  { %2122 = vrot.lane.b32.xlu1 %v2115_v25, %s2961_s17  ;;  %2120 = vrot.lane.b32.xlu0 %v2113_v53, %s2961_s17 }
 0x976   :  { %2357 = vrot.lane.b32.xlu1 %v3311_v56, %s2962_s18  ;;  %2355 = vrot.lane.b32.xlu0 %v3313_v57, %s2962_s18  ;;  %v2027_v56 = vpack.c.bf16 %v2021_v44, %v2020_v16  ;;  %v2026_v57 = vpack.c.bf16 %v2019_v7, %v2018_v22 }
 0x97a   :  { %2361 = vrot.lane.b32.xlu1 %v3315_v59, %s2962_s18  ;;  %2359 = vrot.lane.b32.xlu0 %v3317_v6, %s2962_s18  ;;  %s2970_s18 = smov 16   ;;  %v2029_v59 = vpack.c.bf16 %v2025_v50, %v2024_v45  ;;  %v2028_v6 = vpack.c.bf16 %v2023_v51, %v2022_v55 }
 0x97e   :  { %2369 = vrot.lane.b32.xlu1 %v3423_v61, %s2961_s17  ;;  %2367 = vrot.lane.b32.xlu0 %v3425_v2, %s2961_s17 }
 0x982   :  { %2373 = vrot.lane.b32.xlu1 %v3427_v5, %s2961_s17  ;;  %2371 = vrot.lane.b32.xlu0 %v3429_v47, %s2961_s17  ;;  %s2971_s17 = smov 20  }
 0x986   :  { %2381 = vrot.lane.b32.xlu1 %v3535_v11, %s2969_s24  ;;  %2379 = vrot.lane.b32.xlu0 %v3537_v27, %s2969_s24 }
 0x98a   :  { %2385 = vrot.lane.b32.xlu1 %v3539_v48, %s2969_s24  ;;  %2383 = vrot.lane.b32.xlu0 %v3541_v13, %s2969_s24 }
 0x98e   :  { %2393 = vrot.lane.b32.xlu1 %v3647_v17, %s2970_s18  ;;  %2391 = vrot.lane.b32.xlu0 %v3649_v26, %s2970_s18 }
 0x992   :  { %2397 = vrot.lane.b32.xlu1 %v3651_v43, %s2970_s18  ;;  %2395 = vrot.lane.b32.xlu0 %v3653_v52, %s2970_s18 }
 0x996   :  { %2405 = vrot.lane.b32.xlu1 %v2027_v56, %s2971_s17  ;;  %2403 = vrot.lane.b32.xlu0 %v2026_v57, %s2971_s17 }
 0x99a   :  { %2409 = vrot.lane.b32.xlu1 %v2029_v59, %s2971_s17  ;;  %2407 = vrot.lane.b32.xlu0 %v2028_v6, %s2971_s17 }
 0x9d8   :  { %v2101_v61 = vpop.permute.xlu1 %2100  ;;  %v2099_v2 = vpop.permute.xlu0 %2098 }
 0x9d9   :  { %v2128_v5 = vsel %vm181_vm3, %v2072_v38, %v2101_v61  ;;  %v2125_v47 = vsel %vm181_vm3, %v3801_v19, %v2099_v2 }
 0x9dc   :  { %v2119_v11 = vpop.permute.xlu1 %2118  ;;  %v2117_v27 = vpop.permute.xlu0 %2116 }
 0x9dd   :  { %v2137_v48 = vsel %vm192_vm4, %v2128_v5, %v2119_v11  ;;  %v2135_v13 = vsel %vm192_vm4, %v2125_v47, %v2117_v27 }
 0x9de   :  { %2738 = vmatprep.mubr.msk.bf16.mxu0 %vm215_vm5, %v2135_v13 }
 0x9df   :  { %2739 = vmatmul.mubr.msk.bf16.vlgmr.msra.gmra.mxu0 %vm215_vm5, %v2137_v48 }
 0x9e0   :  { %v2105_v17 = vpop.permute.xlu1 %2104  ;;  %v2103_v26 = vpop.permute.xlu0 %2102 }
 0x9e1   :  { %v2133_v43 = vsel %vm181_vm3, %v2075_v15, %v2105_v17  ;;  %v2130_v52 = vsel %vm181_vm3, %v3806_v14, %v2103_v26 }
 0x9e4   :  { %v2123_v33 = vpop.permute.xlu1 %2122  ;;  %v2121_v34 = vpop.permute.xlu0 %2120 }
 0x9e5   :  { %v2141_v35 = vsel %vm192_vm4, %v2133_v43, %v2123_v33  ;;  %v2139_v36 = vsel %vm192_vm4, %v2130_v52, %v2121_v34 }
 0x9e6   :  { %2742 = vmatprep.mubr.msk.bf16.mxu0 %vm215_vm5, %v2139_v36 }
 0x9e7   :  { %2743 = vmatmul.mubr.msk.bf16.gmra.mxu0 %vm215_vm5, %v2141_v35 }
 0xa9f   :  { %v2740_v32 = vpop.f32.mrf.mxu0 }
 0xaa0   :  { %v3888_v44 = vadd.f32 %v2740_v32, %v2604_v18 }
 0xaa1   :  { %v2203_v30 = vpop.f32.mrf.mxu0 }
 0xaa2   :  { %v3886_v12 = vadd.f32 %v2604_v18, %v2203_v30  ;;  %v2258_v55 = vmul.f32 %v3888_v44, %v3888_v44  ;;  %v2237_v4 = vsel %vm181_vm3, %v3888_v44, 0.0 }
 0xaa3   :  { %v2741_v16 = vpop.f32.mrf.mxu0 }
 0xaa4   :  { %v2256_v51 = vmul.f32 %v3886_v12, %v3886_v12  ;;  %v3892_v7 = vadd.f32 %v2741_v16, %v2604_v18  ;;  %v2234_v19 = vsel %vm181_vm3, %v3886_v12, 0.0  ;;  %v2267_v20 = vsel %vm181_vm3, %v2258_v55, 0.0 }
 0xaa5   :  { %v2206_v22 = vpop.f32.mrf.mxu0 }
 0xaa6   :  { %v3894_v45 = vadd.f32 %v2604_v18, %v2206_v22  ;;  %v2264_v58 = vsel %vm181_vm3, %v2256_v51, 0.0  ;;  %v2259_v46 = vmul.f32 %v3892_v7, %v3892_v7  ;;  %v2239_v60 = vsel %vm181_vm3, %v3892_v7, 0.0 }
 0xaa7   :  { %v2744_v50 = vpop.f32.mrf.mxu0 }
 0xaa8   :  { %v2235_v38 = vsel %vm181_vm3, %v3894_v45, 0.0  ;;  %v2257_v41 = vmul.f32 %v3894_v45, %v3894_v45  ;;  %v3915_v42 = vadd.f32 %v2744_v50, %v2604_v18  ;;  %v2269_v10 = vsel %vm181_vm3, %v2259_v46, 0.0 }
 0xaa9   :  { %v2236_v14 = vadd.f32 %v2235_v38, %v2234_v19  ;;  %v2219_v40 = vpop.f32.mrf.mxu0 }
 0xaaa   :  { %v2265_v3 = vsel %vm181_vm3, %v2257_v41, 0.0  ;;  %v3910_v29 = vadd.f32 %v2604_v18, %v2219_v40  ;;  %v2262_v59 = vmul.f32 %v3915_v42, %v3915_v42  ;;  %v2245_v11 = vsel %vm181_vm3, %v3915_v42, 0.0 }
 0xaab   :  { %v2238_v15 = vadd.f32 %v2237_v4, %v2236_v14  ;;  %v2266_v54 = vadd.f32 %v2265_v3, %v2264_v58  ;;  %v2745_v49 = vpop.f32.mrf.mxu0 }
 0xaac   :  { %v2260_v31 = vmul.f32 %v3910_v29, %v3910_v29  ;;  %v2241_v39 = vsel %vm181_vm3, %v3910_v29, 0.0  ;;  %v2231_v25 = vadd.f32 %v2745_v49, %v2604_v18  ;;  %v2275_v26 = vsel %vm181_vm3, %v2262_v59, 0.0 }
 0xaad   :  { %v2268_v37 = vadd.f32 %v2267_v20, %v2266_v54  ;;  %v2240_v8 = vadd.f32 %v2239_v60, %v2238_v15  ;;  %v2222_v9 = vpop.f32.mrf.mxu0 }
 0xaae   :  { %v2223_v53 = vadd.f32 %v2604_v18, %v2222_v9  ;;  %v2271_v6 = vsel %vm181_vm3, %v2260_v31, 0.0  ;;  %v2263_v27 = vmul.f32 %v2231_v25, %v2231_v25  ;;  %v2247_v43 = vsel %vm181_vm3, %v2231_v25, 0.0  ;;  %v2611_v31 = vld [vmem:[%s4018_s6 + $0x6] ss:$0 sm:$0xff]  ;;  %s2972_s6 = smov 24  }
 0xaaf   :  { %v2242_v56 = vadd.f32 %v2241_v39, %v2240_v8  ;;  %v2270_v57 = vadd.f32 %v2269_v10, %v2268_v37 }
 0xab0   :  { %v2243_v61 = vsel %vm181_vm3, %v2223_v53, 0.0  ;;  %v2261_v2 = vmul.f32 %v2223_v53, %v2223_v53  ;;  %v2277_v34 = vsel %vm181_vm3, %v2263_v27, 0.0 }
 0xab1   :  { %v2272_v5 = vadd.f32 %v2271_v6, %v2270_v57  ;;  %v2244_v47 = vadd.f32 %v2243_v61, %v2242_v56 }
 0xab2   :  { %v2273_v48 = vsel %vm181_vm3, %v2261_v2, 0.0 }
 0xab3   :  { %v2246_v13 = vadd.f32 %v2245_v11, %v2244_v47  ;;  %v2274_v17 = vadd.f32 %v2273_v48, %v2272_v5 }
 0xab5   :  { %v2248_v52 = vadd.f32 %v2247_v43, %v2246_v13  ;;  %v2276_v33 = vadd.f32 %v2275_v26, %v2274_v17 }
 0xab7   :  { %v2249_v35 = vrot.slane %v2248_v52, 4  ;;  %v2278_v36 = vadd.f32 %v2277_v34, %v2276_v33 }
 0xab9   :  { %v2250_v32 = vadd.f32 %v2249_v35, %v2248_v52  ;;  %v2279_v18 = vrot.slane %v2278_v36, 4 }
 0xabb   :  { %v2251_v30 = vrot.slane %v2250_v32, 2  ;;  %v2280_v16 = vadd.f32 %v2279_v18, %v2278_v36 }
 0xabd   :  { %v2252_v22 = vadd.f32 %v2251_v30, %v2250_v32  ;;  %v2281_v51 = vrot.slane %v2280_v16, 2 }
 0xabf   :  { %v2253_v50 = vrot.slane %v2252_v22, 1  ;;  %v2282_v55 = vadd.f32 %v2281_v51, %v2280_v16 }
 0xac1   :  { %v2254_v19 = vadd.f32 %v2253_v50, %v2252_v22  ;;  %v2283_v38 = vrot.slane %v2282_v55, 1 }
 0xac3   :  { %v2255_v41 = vmul.f32 0.015625, %v2254_v19  ;;  %v2284_v4 = vadd.f32 %v2283_v38, %v2282_v55  ;;  %v2358_v19 = vpop.permute.xlu1 %2357  ;;  %v2356_v38 = vpop.permute.xlu0 %2355 }
 0xac5   :  { %v2285_v14 = vmul.f32 0.015625, %v2284_v4  ;;  %v2286_v40 = vmul.f32 %v2255_v41, %v2255_v41  ;;  %v2294_v15 = vsub.f32 %v2223_v53, %v2255_v41  ;;  %v2291_v54 = vsub.f32 %v3888_v44, %v2255_v41 }
 0xac6   :  { %v2292_v49 = vsub.f32 %v3892_v7, %v2255_v41  ;;  %v2289_v20 = vsub.f32 %v3886_v12, %v2255_v41  ;;  %v2290_v37 = vsub.f32 %v3894_v45, %v2255_v41  ;;  %v2295_v8 = vsub.f32 %v3915_v42, %v2255_v41  ;;  %v2613_v12 = vld [vmem:[%s4019_s7 + $0x6] ss:$0 sm:$0xff] }
 0xac7   :  { %v2287_v58 = vsub.f32 %v2285_v14, %v2286_v40  ;;  %v2296_v9 = vsub.f32 %v2231_v25, %v2255_v41  ;;  %v2293_v10 = vsub.f32 %v3910_v29, %v2255_v41  ;;  %v2362_v41 = vpop.permute.xlu1 %2361  ;;  %v2360_v4 = vpop.permute.xlu0 %2359 }
 0xac9   :  { %v2288_v46 = vmax.f32 %v2287_v58, 0.0 }
 0xacb   :  { %v2297_v3 = vadd.f32 1e-05, %v2288_v46  ;;  %v2370_v14 = vpop.permute.xlu1 %2369  ;;  %v2368_v40 = vpop.permute.xlu0 %2367 }
 0xacd   :  { %2910 = vrsqrt.f32 %v2297_v3 }
 0xacf   :  { %v2374_v58 = vpop.permute.xlu1 %2373  ;;  %v2372_v46 = vpop.permute.xlu0 %2371 }
 0xad3   :  { %v2382_v3 = vpop.permute.xlu1 %2381 }
 0xada   :  { %v2911_v60 = vpop.eup %2910 }
 0xadb   :  { %v2304_v39 = vmul.f32 %v2911_v60, %v2294_v15  ;;  %v2301_v53 = vmul.f32 %v2911_v60, %v2291_v54  ;;  %v2302_v56 = vmul.f32 %v2911_v60, %v2292_v49  ;;  %v2299_v44 = vmul.f32 %v2911_v60, %v2289_v20  ;;  %v2380_v15 = vpop.permute.xlu0 %2379  ;;  %v2386_v54 = vpop.permute.xlu1 %2385 }
 0xadc   :  { %v2300_v7 = vmul.f32 %v2911_v60, %v2290_v37  ;;  %v2305_v57 = vmul.f32 %v2911_v60, %v2295_v8  ;;  %v2306_v59 = vmul.f32 %v2911_v60, %v2296_v9  ;;  %v2303_v6 = vmul.f32 %v2911_v60, %v2293_v10 }
 0xadd   :  { %v2320_v61 = vmul.f32 %v2611_v31, %v2304_v39  ;;  %v2317_v2 = vmul.f32 %v2611_v31, %v2301_v53  ;;  %v2318_v45 = vmul.f32 %v2611_v31, %v2302_v56  ;;  %v2315_v5 = vmul.f32 %v2611_v31, %v2299_v44 }
 0xade   :  { %v2316_v42 = vmul.f32 %v2611_v31, %v2300_v7  ;;  %v2321_v25 = vmul.f32 %v2611_v31, %v2305_v57  ;;  %v2322_v47 = vmul.f32 %v2611_v31, %v2306_v59  ;;  %v2319_v29 = vmul.f32 %v2611_v31, %v2303_v6 }
 0xadf   :  { %v2333_v11 = vadd.f32 %v2613_v12, %v2317_v2  ;;  %v2334_v27 = vadd.f32 %v2613_v12, %v2318_v45  ;;  %v2331_v48 = vadd.f32 %v2613_v12, %v2315_v5  ;;  %v2336_v13 = vadd.f32 %v2613_v12, %v2320_v61  ;;  %v2384_v49 = vpop.permute.xlu0 %2383  ;;  %v2394_v20 = vpop.permute.xlu1 %2393 }
 0xae0   :  { %v2332_v17 = vadd.f32 %v2613_v12, %v2316_v42  ;;  %v2337_v26 = vadd.f32 %v2613_v12, %v2321_v25  ;;  %v2338_v43 = vadd.f32 %v2613_v12, %v2322_v47  ;;  %v2335_v52 = vadd.f32 %v2613_v12, %v2319_v29 }
 0xae1   :  { %v2341_v33 = vmax.f32 %v2333_v11, 0.0  ;;  %v2342_v34 = vmax.f32 %v2334_v27, 0.0  ;;  %v2339_v35 = vmax.f32 %v2331_v48, 0.0  ;;  %v2344_v51 = vmax.f32 %v2336_v13, 0.0 }
 0xae2   :  { %v2340_v36 = vmax.f32 %v2332_v17, 0.0  ;;  %v2345_v18 = vmax.f32 %v2337_v26, 0.0  ;;  %v2346_v30 = vmax.f32 %v2338_v43, 0.0  ;;  %v2343_v22 = vmax.f32 %v2335_v52, 0.0 }
 0xae3   :  { %v2348_v32 = vpack.c.bf16 %v2342_v34, %v2341_v33  ;;  %v2392_v60 = vpop.permute.xlu0 %2391  ;;  %v2398_v31 = vpop.permute.xlu1 %2397  ;;  %v2428_v10 = vsel %vm181_vm3, %v3199_v21, %v2358_v19  ;;  %v2425_v53 = vsel %vm181_vm3, %v3201_v23, %v2356_v38  ;;  %v2434_v57 = vsel %vm181_vm3, %v3203_v24, %v2362_v41 }
 0xae4   :  { %v2347_v16 = vpack.c.bf16 %v2340_v36, %v2339_v35  ;;  %v2350_v50 = vpack.c.bf16 %v2346_v30, %v2345_v18  ;;  %v2349_v55 = vpack.c.bf16 %v2344_v51, %v2343_v22  ;;  %v2438_v56 = vsel %vm192_vm4, %v2428_v10, %v2370_v14 }
 0xae5   :  { %2417 = vrot.lane.b32.xlu1 %v2348_v32, %s2972_s6  ;;  %v2436_v12 = vsel %vm192_vm4, %v2425_v53, %v2368_v40  ;;  %v2446_v7 = vsel %vm215_vm5, %v2438_v56, %v2382_v3  ;;  %v2431_v23 = vsel %vm181_vm3, %v3205_v28, %v2360_v4  ;;  %v2442_v6 = vsel %vm192_vm4, %v2434_v57, %v2374_v58 }
 0xae6   :  { %2415 = vrot.lane.b32.xlu0 %v2347_v16, %s2972_s6  ;;  %v2444_v59 = vsel %vm215_vm5, %v2436_v12, %v2380_v15  ;;  %v2455_v21 = vsel %vm2451_vm6, %v2446_v7, %v2394_v20  ;;  %v2440_v5 = vsel %vm192_vm4, %v2431_v23, %v2372_v46  ;;  %v2450_v42 = vsel %vm215_vm5, %v2442_v6, %v2386_v54 }
 0xae7   :  { %v2396_v37 = vpop.permute.xlu0 %2395  ;;  %v2406_v8 = vpop.permute.xlu1 %2405  ;;  %v2453_v61 = vsel %vm2451_vm6, %v2444_v59, %v2392_v60  ;;  %v2448_v29 = vsel %vm215_vm5, %v2440_v5, %v2384_v49  ;;  %v2459_v27 = vsel %vm2451_vm6, %v2450_v42, %v2398_v31 }
 0xae8   :  { %v2464_v2 = vsel %vm2460_vm7, %v2455_v21, %v2406_v8  ;;  %v2457_v26 = vsel %vm2451_vm6, %v2448_v29, %v2396_v37 }
 0xae9   :  { %2421 = vrot.lane.b32.xlu1 %v2350_v50, %s2972_s6 }
 0xaea   :  { %2419 = vrot.lane.b32.xlu0 %v2349_v55, %s2972_s6 }
 0xaeb   :  { %v2404_v9 = vpop.permute.xlu0 %2403  ;;  %v2410_v39 = vpop.permute.xlu1 %2409 }
 0xaec   :  { %v2462_v24 = vsel %vm2460_vm7, %v2453_v61, %v2404_v9  ;;  %v2468_v43 = vsel %vm2460_vm7, %v2459_v27, %v2410_v39 }
 0xaef   :  { %v2408_v44 = vpop.permute.xlu0 %2407 }
 0xaf0   :  { %v2466_v35 = vsel %vm2460_vm7, %v2457_v26, %v2408_v44 }
 0xb57   :  { %v2418_v45 = vpop.permute.xlu1 %2417 }
 0xb58   :  { %v2473_v25 = vsel %vm2469_vm8, %v2464_v2, %v2418_v45  ;;  %v2416_v47 = vpop.permute.xlu0 %2415 }
 0xb59   :  { %v2482_v28 = vsel %vm2478_vm9, %v2473_v25, %v3070_v63  ;;  %v2471_v11 = vsel %vm2469_vm8, %v2462_v24, %v2416_v47 }
 0xb5a   :  { %v2616_v48 = vcombine.low %v2482_v28, %v2482_v28  ;;  %v2617_v13 = vcombine.high %v2482_v28, %v2482_v28  ;;  %v2480_v17 = vsel %vm2478_vm9, %v2471_v11, %v3068_v62 }
 0xb5b   :  { %v2614_v52 = vcombine.low %v2480_v17, %v2480_v17  ;;  %v2615_v33 = vcombine.high %v2480_v17, %v2480_v17  ;;  %v2422_v34 = vpop.permute.xlu1 %2421 }
 0xb5c   :  { %2518 = vst.msk [vmem:[%s4020_s8 + $0x8] sm:$0xf] %vm2515_vm10, %v2616_v48  ;;  %2519 = vst.msk [vmem:[%s4020_s8 + $0xc] sm:$0xf] %vm2515_vm10, %v2617_v13  ;;  %v2477_v62 = vsel %vm2469_vm8, %v2468_v43, %v2422_v34  ;;  %v2420_v63 = vpop.permute.xlu0 %2419 }
 0xb5d   :  { %2516 = vst.msk [vmem:[%s4020_s8] sm:$0xf] %vm2515_vm10, %v2614_v52  ;;  %2517 = vst.msk [vmem:[%s4020_s8 + $0x4] sm:$0xf] %vm2515_vm10, %v2615_v33  ;;  %v2486_v36 = vsel %vm2478_vm9, %v2477_v62, %v3074_v1  ;;  %v2475_v32 = vsel %vm2469_vm8, %v2466_v35, %v2420_v63 }
 0xb5e   :  { %v2620_v18 = vcombine.low %v2486_v36, %v2486_v36  ;;  %v2621_v30 = vcombine.high %v2486_v36, %v2486_v36  ;;  %v2484_v16 = vsel %vm2478_vm9, %v2475_v32, %v3072_v0 }
 0xb5f   :  { %v2618_v22 = vcombine.low %v2484_v16, %v2484_v16  ;;  %v2619_v51 = vcombine.high %v2484_v16, %v2484_v16 }
 0xb60   :  { %2522 = vst.msk [vmem:[%s4020_s8 + $0x18] sm:$0xf] %vm2515_vm10, %v2620_v18  ;;  %2523 = vst.msk [vmem:[%s4020_s8 + $0x1c] sm:$0xf] %vm2515_vm10, %v2621_v30 }
 0xb61   :  { %2520 = vst.msk [vmem:[%s4020_s8 + $0x10] sm:$0xf] %vm2515_vm10, %v2618_v22  ;;  %2521 = vst.msk [vmem:[%s4020_s8 + $0x14] sm:$0xf] %vm2515_vm10, %v2619_v51 }

// kernel: ecapa_tdnn_forward.17
= control target key start
LH: loop header
LB: loop body
LE: loop exit
PB: predicated region body
PF: predicated region fallthrough
CT: control target
= control target key end

     0   :  { %v220_v1 = vmov 0.0   ;;  %vm221_vm0 = vmmov 0   ;;  %s283_s0 = inlined_call_operand.vmem [shape: f32[2,64], index: 0, kind: input, shape index: {}]   ;;  %s284_s1 = inlined_call_operand.vmem [shape: bf16[64,16], index: 1, kind: input, shape index: {}]   ;;  %s285_s2 = inlined_call_operand.vmem [shape: f32[1,16], index: 2, kind: input, shape index: {}]   ;;  %s286_s3 = inlined_call_operand.vmem [shape: f32[1,16], index: 3, kind: input, shape index: {}]   ;;  %s287_s4 = inlined_call_operand.vmem [shape: f32[1,16], index: 4, kind: input, shape index: {}]   ;;  %s288_s5 = inlined_call_operand.hbm [shape: f32[2,16], index: 5, kind: output, shape index: {}]  }
   0x1   :  { %v192_v0 = vld [vmem:[%s284_s1 + $0x18] sm:$0xff]   ;;  %177 = vmatprep.subr.bf16.mxu0 %v220_v1  ;;  %v193_v2 = vld [vmem:[%s284_s1 + $0x10] sm:$0xff]   ;;  %185 = vmatprep.mubr.msk.bf16.mxu0 %vm221_vm0, %v220_v1 }
   0x2   :  { %178 = vmatpush3.bf16.msra.mxu0 %v192_v0 }
   0x3   :  { %179 = vmatprep.subr.bf16.mxu0 %v220_v1 }
   0x4   :  { %10 = vsyncpa [#allocation3], 0  ;;  %v194_v3 = vld [vmem:[%s284_s1 + $0x8] sm:$0xff]   ;;  %v195_v4 = vld [vmem:[%s284_s1] sm:$0xff]   ;;  %vm63_vm1 = vcmask 523264   ;;  %vm107_vm2 = vcmask 123904  }
   0x5   :  { %v22_v5 = vld [vmem:[%s283_s0] sm:$0x3]  ;;  %s222_s6 = smov [#allocation2]  }
   0x6   :  { %180 = vmatpush3.bf16.msra.mxu0 %v193_v2  ;;  %v23_v6 = vpack.c.bf16 %v22_v5, %v22_v5  ;;  %v164_v7 = vld [vmem:[%s285_s2] ss:$0 sm:$0xff]  ;;  %s156_s7 = sshll.u32 %s222_s6, 4  ;;  %s157_s7 = int_to_ptr.vmem [resolvable:$true] %s156_s7 }
   0x7   :  { %181 = vmatprep.subr.bf16.mxu0 %v220_v1  ;;  %v170_v36 = vld [vmem:[%s286_s3] ss:$0 sm:$0xff]  ;;  %s198_s8 = scalar_lea.vmem %s157_s7, 32  ;;  %p203_p1 = scmp.lt.s32.totalorder %s157_s7, %s157_s7 }
   0x8   :  { %v171_v38 = vld [vmem:[%s287_s4] ss:$0 sm:$0xff]  ;;  %p199_p0 = scmp.ne.s32.totalorder %s157_s7, %s198_s8  ;;  %p204_p2 = scmp.lt.s32.totalorder %s198_s8, %s198_s8 }
   0xa   :  { %182 = vmatpush3.bf16.msra.mxu0 %v194_v3  ;;  %p205_p3 = por %p204_p2, %p203_p1 }
   0xb   :  { %183 = vmatprep.subr.bf16.mxu0 %v220_v1 }
   0xc   :  { %p206_p4 = pnand %p205_p3, %p199_p0 }
   0xe   :  { %184 = vmatpush3.bf16.msra.mxu0 %v195_v4 }
  0x11   :  { %186 = vmatmul.mubr.msk.bf16.vlgmr.msra.gmra.mxu0 %vm63_vm1, %v23_v6 }
  0xd1   :  { %v101_v8 = vpop.f32.mrf.mxu0 }
  0xd2   :  { %v102_v9 = vadd.f32 %v164_v7, %v101_v8 }
  0xd3   :  { %v187_v10 = vpop.f32.mrf.mxu0 }
  0xd4   :  { %v117_v11 = vmul.f32 %v102_v9, %v102_v9  ;;  %v108_v12 = vsel %vm107_vm2, %v102_v9, 0.0 }
  0xd5   :  { %v104_v13 = vpop.f32.mrf.mxu0  ;;  %v109_v14 = vrot.slane %v108_v12, 4 }
  0xd6   :  { %v118_v15 = vsel %vm107_vm2, %v117_v11, 0.0 }
  0xd7   :  { %v188_v16 = vpop.f32.mrf.mxu0  ;;  %v110_v17 = vadd.f32 %v109_v14, %v108_v12  ;;  %v119_v18 = vrot.slane %v118_v15, 4 }
  0xd9   :  { %v111_v19 = vrot.slane %v110_v17, 2  ;;  %v120_v20 = vadd.f32 %v119_v18, %v118_v15 }
  0xdb   :  { %v112_v21 = vadd.f32 %v111_v19, %v110_v17  ;;  %v121_v22 = vrot.slane %v120_v20, 2 }
  0xdd   :  { %v113_v23 = vrot.slane %v112_v21, 1  ;;  %v122_v24 = vadd.f32 %v121_v22, %v120_v20 }
  0xdf   :  { %v114_v25 = vadd.f32 %v113_v23, %v112_v21  ;;  %v123_v26 = vrot.slane %v122_v24, 1 }
  0xe1   :  { %v116_v27 = vmul.f32 0.5, %v114_v25  ;;  %v124_v28 = vadd.f32 %v123_v26, %v122_v24 }
  0xe3   :  { %v125_v29 = vmul.f32 0.5, %v124_v28  ;;  %v126_v30 = vmul.f32 %v116_v27, %v116_v27  ;;  %v129_v34 = vsub.f32 %v102_v9, %v116_v27 }
  0xe5   :  { %v127_v31 = vsub.f32 %v125_v29, %v126_v30 }
  0xe7   :  { %v128_v32 = vmax.f32 %v127_v31, 0.0 }
  0xe9   :  { %v130_v33 = vadd.f32 1e-05, %v128_v32 }
  0xeb   :  { %196 = vrsqrt.f32 %v130_v33 }
  0xf8   :  { %v197_v35 = vpop.eup %196 }
  0xf9   :  { %v132_v37 = vmul.f32 %v197_v35, %v129_v34 }
  0xfb   :  { %v140_v39 = vmul.f32 %v170_v36, %v132_v37 }
  0xfd   :  { %v148_v40 = vadd.f32 %v171_v38, %v140_v39 }
  0xff   :  { %149 = vst.msk [vmem:[#allocation2] sm:$0x3] %vm107_vm2, %v148_v40 }
 0x100   :  { %209 = shalt.err (!%p206_p4)
}
 0x101   :  { %159 = dma.vmem_to_hbm [thread:$0]  %s157_s7, 32, %s288_s5, [#allocation3]  }
 0x102   :  { %218 = dma.done.wait [#allocation3], 32  }
 0x103   :  { %219 = vsyncadd [#allocation3], 4294967264 }
 0x104   :  { %163 = vsyncpa [#allocation3], 1 }

</bundles_post_ra>
